<compile_context>
chip_gen: v7x
topology: tpu7x:2x2x1
jax: 0.10.0
libtpu: 0.0.40
codegen_flags: <defaults>
</compile_context>

<pallas_src>
import functools

import jax
import jax.numpy as jnp
from jax.experimental import pallas as pl
from jax.experimental.pallas import tpu as pltpu


# ---------------------------------------------------------------------------
# Per-generation VMEM budget / tiling helpers
# ---------------------------------------------------------------------------
def _query_vmem_capacity_bytes():
    try:
        info = pltpu.get_tpu_info()
        cap = getattr(info, "vmem_capacity_bytes", None)
        if cap:
            return int(cap)
    except Exception:
        pass
    return 64 * 1024 * 1024  # conservative default (v7x per-TensorCore VMEM)


_VMEM_CAP = _query_vmem_capacity_bytes()
_VMEM_LIMIT = max(32 * 1024 * 1024,
                  min(int(_VMEM_CAP * 0.75), 100 * 1024 * 1024))


def _round_up(v, m):
    return -(-v // m) * m


def _wpad(W):
    """Padded flat width for an image of width W (>= W+2, multiple of 8)."""
    return max(8, _round_up(W + 2, 8))


def _pick_conv_rows(H, W, Cin, Cout, pooled):
    """Row-band height th (divisor of H, even if pooled) for the halo conv."""
    Wp = _wpad(W)
    budget = int(_VMEM_CAP * 0.45)

    def est(th):
        M = th * Wp
        nb = (th + 2) * Wp + 8
        xbuf = 2 * nb * Cin * 2            # double-buffered flat halo tiles
        operands = 2 * M * Cin * 2         # in-flight tap operand loads
        acc = 2 * M * Cout * 4             # f32 accumulator + epilogue temps
        outb = 2 * M * Cout * 2            # double-buffered output block
        wgt = 2 * 9 * Cin * Cout * 2       # resident weights (double-buffered)
        return xbuf + operands + acc + outb + wgt

    cands = [th for th in range(H, 0, -1)
             if H % th == 0 and (th % 2 == 0 or not pooled)]
    for th in cands:                       # largest band within the row cap
        if th * Wp <= 2048 and est(th) <= budget:
            return th
    for th in cands:
        if est(th) <= budget:
            return th
    return cands[-1]


def _pick_unpool_rows(h, Wq, Wpo, C):
    budget = int(_VMEM_CAP * 0.25)
    for tq in range(h, 0, -1):
        if h % tq:
            continue
        nbytes = 4 * (tq * Wq * C * 6 + 2 * tq * Wpo * C * 2)
        if nbytes <= budget:
            return tq
    return 1


# ---------------------------------------------------------------------------
# In-kernel pooling helpers (operate on values in the flat padded layout)
# ---------------------------------------------------------------------------
def _pool2x2(y3, W):
    """y3: (rows, Wp, C); returns (max, idx) of shape (rows//2, W//2, C)."""
    rows, Wp, C = y3.shape
    r2, W2 = rows // 2, W // 2
    y4 = y3.reshape(r2, 2, Wp, C)
    r0, r1 = y4[:, 0], y4[:, 1]

    def col_pairs(z):
        zp = z.reshape(r2, Wp // 2, 2, C)
        # image columns sit at padded columns [1, W+1): pool pair p is
        # (padded col 2p+1, padded col 2p+2)
        return zp[:, 0:W2, 1, :], zp[:, 1:W2 + 1, 0, :]

    a, b = col_pairs(r0)
    c, d = col_pairs(r1)
    m = jnp.maximum(jnp.maximum(a, b), jnp.maximum(c, d))
    # First-occurrence tie-break, row-major within the 2x2 window (0..3).
    idx = jnp.where(a == m, 0, jnp.where(b == m, 1, jnp.where(c == m, 2, 3)))
    return m, idx.astype(jnp.int32)


def _pad_cols(z, Wq):
    """(r, w, C) -> (r, Wq, C): left zero pad of 1, zero right pad."""
    r, wv, C = z.shape
    left = jnp.zeros((r, 1, C), z.dtype)
    right = jnp.zeros((r, Wq - wv - 1, C), z.dtype)
    return jnp.concatenate([left, z, right], axis=1)


# ---------------------------------------------------------------------------
# Conv3x3 + folded BatchNorm + ReLU (halo-DMA path, flat padded layout)
# ---------------------------------------------------------------------------
def _halo_conv_core(x_hbm, w_ref, s_ref, b_ref, xbuf, sem, *, th, W, Wp, nt):
    """Fetch one row band of the flat padded activation and run the 9-tap
    conv + folded BN + ReLU.  Returns the f32 band (th*Wp, Cout)."""
    n = pl.program_id(0)
    t = pl.program_id(1)
    Cin = xbuf.shape[-1]
    Cout = w_ref.shape[-1]
    M = th * Wp

    def mk_copies(tt, slot):
        top = pltpu.make_async_copy(
            x_hbm.at[n, pl.ds((tt * th - 1) * Wp, Wp), :],
            xbuf.at[slot, pl.ds(0, Wp), :], sem.at[slot, 0])
        body = pltpu.make_async_copy(
            x_hbm.at[n, pl.ds(tt * th * Wp, M), :],
            xbuf.at[slot, pl.ds(Wp, M), :], sem.at[slot, 1])
        bot = pltpu.make_async_copy(
            x_hbm.at[n, pl.ds((tt * th + th) * Wp, Wp), :],
            xbuf.at[slot, pl.ds((th + 1) * Wp, Wp), :], sem.at[slot, 2])
        return top, body, bot

    def start_fetch(tt, slot):
        top, body, bot = mk_copies(tt, slot)

        @pl.when(tt > 0)
        def _():
            top.start()

        body.start()

        @pl.when(tt < nt - 1)
        def _():
            bot.start()

    def wait_fetch(tt, slot):
        top, body, bot = mk_copies(tt, slot)

        @pl.when(tt > 0)
        def _():
            top.wait()

        body.wait()

        @pl.when(tt < nt - 1)
        def _():
            bot.wait()

    slot = t % 2

    @pl.when(t == 0)                  # prime the pipeline for this image
    def _():
        start_fetch(t, slot)

    @pl.when(t + 1 < nt)              # prefetch the next row band
    def _():
        start_fetch(t + 1, 1 - slot)

    wait_fetch(t, slot)               # wait for the current row band

    # Zero the (image-boundary) halo rows that were not DMA'd.
    @pl.when(t == 0)
    def _():
        xbuf[0, pl.ds(0, Wp), :] = jnp.zeros((Wp, Cin), jnp.bfloat16)

    @pl.when(t == nt - 1)
    def _():
        xbuf[(nt - 1) % 2, pl.ds((th + 1) * Wp, Wp), :] = jnp.zeros(
            (Wp, Cin), jnp.bfloat16)

    # 9 accumulating MXU dots; every LHS is a contiguous row-offset slice of
    # the flat halo buffer (no gathers, no concat, no full-buffer value).
    acc = jnp.zeros((M, Cout), jnp.float32)
    for dy in range(3):
        for dx in range(3):
            k = dy * 3 + dx
            # offset -1 only affects the junk output column 0 -> clamp to 0
            off = max(dy * Wp + dx - 1, 0)
            lhs = xbuf[slot, pl.ds(off, M), :]
            acc = acc + jnp.dot(lhs, w_ref[k * Cin:(k + 1) * Cin, :],
                                preferred_element_type=jnp.float32)
    return jnp.maximum(acc * s_ref[...] + b_ref[...], 0.0)


def _conv_kernel(x_hbm, w_ref, s_ref, b_ref, o_ref, xbuf, sem, *,
                 th, W, Wp, nt):
    y = _halo_conv_core(x_hbm, w_ref, s_ref, b_ref, xbuf, sem,
                        th=th, W=W, Wp=Wp, nt=nt)
    M = th * Wp
    # zero the pad columns so the next layer can rely on them
    col = jax.lax.broadcasted_iota(jnp.int32, (M, 1), 0) % Wp
    valid = jnp.logical_and(col >= 1, col <= W)
    o_ref[0] = jnp.where(valid, y, 0.0).astype(o_ref.dtype)


def _conv_pool_kernel(x_hbm, w_ref, s_ref, b_ref, p_ref, i_ref, xbuf, sem, *,
                      th, W, Wp, nt, Wq):
    y = _halo_conv_core(x_hbm, w_ref, s_ref, b_ref, xbuf, sem,
                        th=th, W=W, Wp=Wp, nt=nt)
    Cout = w_ref.shape[-1]
    m, idx = _pool2x2(y.reshape(th, Wp, Cout), W)
    p_ref[0] = _pad_cols(m, Wq).reshape((th // 2) * Wq, Cout).astype(p_ref.dtype)
    i_ref[0] = _pad_cols(idx, Wq).reshape((th // 2) * Wq, Cout)


def conv3x3_bn_relu_flat(x_flat, w, scale, bias, *, H, W, pool=False):
    """3x3 conv (stride 1, pad 1) + folded BN + ReLU on the flat padded
    layout.  If pool=True, a fused 2x2 max-pool (+argmax indices) epilogue is
    applied and only the pooled activation is written back to HBM."""
    N = x_flat.shape[0]
    Cin = x_flat.shape[-1]
    Wp = _wpad(W)
    Cout = w.shape[-1]
    assert w.shape[0] == 9 * Cin and x_flat.shape[1] == H * Wp

    # lane-dense stores for the very narrow classifier head (n_classes=2)
    pad_c = 128 - Cout if Cout < 64 else 0
    if pad_c:
        w = jnp.pad(w, ((0, 0), (0, pad_c)))
        scale = jnp.pad(scale, ((0, 0), (0, pad_c)))
        bias = jnp.pad(bias, ((0, 0), (0, pad_c)))
    Cp = Cout + pad_c

    th = _pick_conv_rows(H, W, Cin, Cp, pool)
    nt = H // th
    M = th * Wp
    nb = (th + 2) * Wp + 8

    in_specs = [
        pl.BlockSpec(memory_space=pl.ANY),                     # activation (HBM)
        pl.BlockSpec((9 * Cin, Cp), lambda n, t: (0, 0)),      # weights (resident)
        pl.BlockSpec((1, Cp), lambda n, t: (0, 0)),
        pl.BlockSpec((1, Cp), lambda n, t: (0, 0)),
    ]
    scratch = [pltpu.VMEM((2, nb, Cin), jnp.bfloat16),
               pltpu.SemaphoreType.DMA((2, 3))]
    cparams = pltpu.CompilerParams(
        dimension_semantics=("parallel", "arbitrary"),
        vmem_limit_bytes=_VMEM_LIMIT)

    if not pool:
        kernel = functools.partial(_conv_kernel, th=th, W=W, Wp=Wp, nt=nt)
        out = pl.pallas_call(
            kernel,
            out_shape=jax.ShapeDtypeStruct((N, H * Wp, Cp), jnp.bfloat16),
            grid=(N, nt),
            in_specs=in_specs,
            out_specs=pl.BlockSpec((1, M, Cp), lambda n, t: (n, t, 0)),
            scratch_shapes=scratch,
            compiler_params=cparams,
        )(x_flat, w, scale, bias)
        if pad_c:
            out = out[..., :Cout]
        return out

    Hq, Wq = H // 2, _wpad(W // 2)
    kernel = functools.partial(_conv_pool_kernel, th=th, W=W, Wp=Wp, nt=nt, Wq=Wq)
    pooled, idx = pl.pallas_call(
        kernel,
        out_shape=(jax.ShapeDtypeStruct((N, Hq * Wq, Cp), jnp.bfloat16),
                   jax.ShapeDtypeStruct((N, Hq * Wq, Cp), jnp.int32)),
        grid=(N, nt),
        in_specs=in_specs,
        out_specs=(pl.BlockSpec((1, (th // 2) * Wq, Cp), lambda n, t: (n, t, 0)),
                   pl.BlockSpec((1, (th // 2) * Wq, Cp), lambda n, t: (n, t, 0))),
        scratch_shapes=scratch,
        compiler_params=cparams,
    )(x_flat, w, scale, bias)
    return pooled, idx


# ---------------------------------------------------------------------------
# Small-spatial / small-Cin fallback: im2col outside + one batched matmul
# ---------------------------------------------------------------------------
def _im2col_kernel(p_ref, w_ref, s_ref, b_ref, o_ref):
    acc = jnp.dot(p_ref[...], w_ref[...], preferred_element_type=jnp.float32)
    o_ref[...] = jnp.maximum(acc * s_ref[...] + b_ref[...], 0.0).astype(o_ref.dtype)


def conv3x3_bn_relu_small(x_nhwc, w, scale, bias):
    """Fallback conv for tiny spatial sizes / the Cin=3 stem (dense NHWC in,
    dense NHWC out).  N is folded into M and the whole batch runs in one
    grid step (amortizes the big weight DMA over the batch)."""
    N, H, W, Cin = x_nhwc.shape
    Cout = w.shape[-1]
    xpad = jnp.pad(x_nhwc, ((0, 0), (1, 1), (1, 1), (0, 0)))
    patches = jnp.concatenate(
        [xpad[:, dy:dy + H, dx:dx + W, :].reshape(N * H * W, Cin)
         for dy in range(3) for dx in range(3)], axis=-1)
    out = pl.pallas_call(
        _im2col_kernel,
        out_shape=jax.ShapeDtypeStruct((N * H * W, Cout), jnp.bfloat16),
        compiler_params=pltpu.CompilerParams(vmem_limit_bytes=_VMEM_LIMIT),
    )(patches, w, scale, bias)
    return out.reshape(N, H, W, Cout)


# ---------------------------------------------------------------------------
# Standalone MaxPool / MaxUnpool kernels (flat padded layout)
# ---------------------------------------------------------------------------
def _pool_kernel(x_ref, p_ref, i_ref, *, H, W, Wp, Wq):
    C = x_ref.shape[-1]
    m, idx = _pool2x2(x_ref[0].reshape(H, Wp, C), W)
    p_ref[0] = _pad_cols(m, Wq).reshape((H // 2) * Wq, C).astype(p_ref.dtype)
    i_ref[0] = _pad_cols(idx, Wq).reshape((H // 2) * Wq, C)


def maxpool2x2_flat(x_flat, *, H, W):
    """Standalone 2x2 max-pool (used on the tiny fallback levels)."""
    N, _, C = x_flat.shape
    Wp, Wq = _wpad(W), _wpad(W // 2)
    Hq = H // 2
    kernel = functools.partial(_pool_kernel, H=H, W=W, Wp=Wp, Wq=Wq)
    pooled, idx = pl.pallas_call(
        kernel,
        out_shape=(jax.ShapeDtypeStruct((N, Hq * Wq, C), x_flat.dtype),
                   jax.ShapeDtypeStruct((N, Hq * Wq, C), jnp.int32)),
        grid=(N,),
        in_specs=[pl.BlockSpec((1, H * Wp, C), lambda n: (n, 0, 0))],
        out_specs=(pl.BlockSpec((1, Hq * Wq, C), lambda n: (n, 0, 0)),
                   pl.BlockSpec((1, Hq * Wq, C), lambda n: (n, 0, 0))),
        compiler_params=pltpu.CompilerParams(
            dimension_semantics=("parallel",),
            vmem_limit_bytes=_VMEM_LIMIT),
    )(x_flat)
    return pooled, idx


def _unpool_kernel(x_ref, i_ref, o_ref, *, tq, w, Wq, Wpo):
    C = x_ref.shape[-1]
    x = x_ref[0].reshape(tq, Wq, C)
    iv = i_ref[0].reshape(tq, Wq, C)
    xv = x[:, 1:w + 1, :]
    idx = iv[:, 1:w + 1, :]
    zero = jnp.zeros_like(xv)
    a = jnp.where(idx == 0, xv, zero)
    b = jnp.where(idx == 1, xv, zero)
    c = jnp.where(idx == 2, xv, zero)
    d = jnp.where(idx == 3, xv, zero)
    ev = jnp.stack([a, b], axis=2).reshape(tq, 2 * w, C)   # even output rows
    od = jnp.stack([c, d], axis=2).reshape(tq, 2 * w, C)   # odd output rows
    ev = _pad_cols(ev, Wpo)
    od = _pad_cols(od, Wpo)
    out = jnp.stack([ev, od], axis=1).reshape(tq * 2 * Wpo, C)
    o_ref[0] = out.astype(o_ref.dtype)


def maxunpool2x2_flat(x_flat, idx_flat, *, h, w):
    """MaxUnpool2d(2,2): scatter pooled values to their argmax positions."""
    N, _, C = x_flat.shape
    Wq = _wpad(w)
    Ho, Wo = 2 * h, 2 * w
    Wpo = _wpad(Wo)
    tq = _pick_unpool_rows(h, Wq, Wpo, C)
    nt = h // tq
    kernel = functools.partial(_unpool_kernel, tq=tq, w=w, Wq=Wq, Wpo=Wpo)
    return pl.pallas_call(
        kernel,
        out_shape=jax.ShapeDtypeStruct((N, Ho * Wpo, C), x_flat.dtype),
        grid=(N, nt),
        in_specs=[pl.BlockSpec((1, tq * Wq, C), lambda n, t: (n, t, 0)),
                  pl.BlockSpec((1, tq * Wq, C), lambda n, t: (n, t, 0))],
        out_specs=pl.BlockSpec((1, 2 * tq * Wpo, C), lambda n, t: (n, t, 0)),
        compiler_params=pltpu.CompilerParams(
            dimension_semantics=("parallel", "parallel"),
            vmem_limit_bytes=_VMEM_LIMIT),
    )(x_flat, idx_flat)


# ---------------------------------------------------------------------------
# Layout conversion helpers (dense NHWC <-> flat padded)
# ---------------------------------------------------------------------------
def nhwc_to_flat(x):
    N, H, W, C = x.shape
    Wp = _wpad(W)
    xp = jnp.pad(x, ((0, 0), (0, 0), (1, Wp - W - 1), (0, 0)))
    return xp.reshape(N, H * Wp, C)


def flat_to_nhwc(x_flat, H, W):
    N, _, C = x_flat.shape
    Wp = _wpad(W)
    return x_flat.reshape(N, H, Wp, C)[:, :, 1:W + 1, :]


# ---------------------------------------------------------------------------
# Parameter init (deterministic, synthetic) and full forward pass
# ---------------------------------------------------------------------------
def _init_conv(key, cin, cout):
    eps = 1e-5
    std = (2.0 / (cin * 9)) ** 0.5
    w = jax.random.normal(key, (3, 3, cin, cout), jnp.float32) * std
    conv_b = jnp.zeros((cout,), jnp.float32)
    # BatchNorm2d defaults: gamma=1, beta=0, running_mean=0, running_var=1.
    gamma = jnp.ones((cout,), jnp.float32)
    beta = jnp.zeros((cout,), jnp.float32)
    run_mean = jnp.zeros((cout,), jnp.float32)
    run_var = jnp.ones((cout,), jnp.float32)
    scale = gamma / jnp.sqrt(run_var + eps)
    bias = beta + scale * (conv_b - run_mean)
    # Folded-K layout: row index = (dy*3 + dx)*cin + ci (tap-major, ch-minor)
    w_folded = w.reshape(9 * cin, cout).astype(jnp.bfloat16)
    return (w_folded, scale.reshape(1, cout), bias.reshape(1, cout))


def init_segnet_params(key, n_classes=2, in_channels=3):
    down_cfg = [
        [(in_channels, 64), (64, 64)],
        [(64, 128), (128, 128)],
        [(128, 256), (256, 256), (256, 256)],
        [(256, 512), (512, 512), (512, 512)],
        [(512, 512), (512, 512), (512, 512)],
    ]
    up_cfg = [
        [(512, 512), (512, 512), (512, 512)],   # up5
        [(512, 512), (512, 512), (512, 256)],   # up4
        [(256, 256), (256, 256), (256, 128)],   # up3
        [(128, 128), (128, 64)],                # up2
        [(64, 64), (64, n_classes)],            # up1
    ]
    n_layers = sum(len(b) for b in down_cfg + up_cfg)
    keys = iter(jax.random.split(key, n_layers))
    down_params = [[_init_conv(next(keys), ci, co) for ci, co in blk]
                   for blk in down_cfg]
    up_params = [[_init_conv(next(keys), ci, co) for ci, co in blk]
                 for blk in up_cfg]
    return down_params, up_params


def segnet_forward(x_nchw, params):
    down_params, up_params = params
    n_classes = up_params[-1][-1][0].shape[-1]
    x_dense = jnp.transpose(x_nchw, (0, 2, 3, 1)).astype(jnp.bfloat16)
    _, h, w, _ = x_dense.shape

    # ---- stem (Cin=3): im2col path, then enter the flat padded layout ----
    cur = nhwc_to_flat(conv3x3_bn_relu_small(x_dense, *down_params[0][0]))

    # ---- encoder ----
    stack = []
    for li, blk in enumerate(down_params):
        convs = blk[1:] if li == 0 else blk
        use_halo = (w % 8 == 0) and (w >= 8)
        if use_halo:
            for p in convs[:-1]:
                cur = conv3x3_bn_relu_flat(cur, *p, H=h, W=w, pool=False)
            cur, idx = conv3x3_bn_relu_flat(cur, *convs[-1], H=h, W=w, pool=True)
        else:
            for p in convs:
                cur = nhwc_to_flat(
                    conv3x3_bn_relu_small(flat_to_nhwc(cur, h, w), *p))
            cur, idx = maxpool2x2_flat(cur, H=h, W=w)
        stack.append((idx, h, w))
        h, w = h // 2, w // 2

    # ---- decoder ----
    for blk in up_params:
        idx, hu, wu = stack.pop()
        cur = maxunpool2x2_flat(cur, idx, h=h, w=w)
        h, w = hu, wu
        use_halo = (w % 8 == 0) and (w >= 8)
        for p in blk:
            if use_halo:
                cur = conv3x3_bn_relu_flat(cur, *p, H=h, W=w, pool=False)
            else:
                cur = nhwc_to_flat(
                    conv3x3_bn_relu_small(flat_to_nhwc(cur, h, w), *p))

    out = flat_to_nhwc(cur, h, w)[..., :n_classes]
    return jnp.transpose(out, (0, 3, 1, 2)).astype(jnp.float32)


if __name__ == "__main__":
    n_classes, in_channels = 2, 3
    key = jax.random.PRNGKey(0)
    pkey, xkey = jax.random.split(key)
    params = init_segnet_params(pkey, n_classes=n_classes,
                                in_channels=in_channels)
    # Spatial size 32 so that 5 levels of 2x2 pooling stay well-defined.
    x = jax.random.normal(xkey, (2, in_channels, 32, 32), jnp.float32)  # NCHW
    out = segnet_forward(x, params)
    out = jax.block_until_ready(out)
    assert out.shape == (2, n_classes, 32, 32), out.shape
    assert out.dtype == jnp.float32
    print("KERNEL_OK")
</pallas_src>

<mosaic_0001>
module attributes {stable_mosaic.version = 11 : i64} {
  func.func @_im2col_kernel(%arg0: memref<2048x27xbf16, #tpu.memory_space<vmem>>, %arg1: memref<27x64xbf16, #tpu.memory_space<vmem>>, %arg2: memref<1x64xf32, #tpu.memory_space<vmem>>, %arg3: memref<1x64xf32, #tpu.memory_space<vmem>>, %arg4: memref<2048x64xbf16, #tpu.memory_space<vmem>>) attributes {dimension_semantics = [], scalar_prefetch = 0 : i64, scratch_operands = 0 : i64, tpu.core_type = #tpu.core_type<tc>} {
    %c0 = arith.constant 0 : index
    %c0_0 = arith.constant 0 : index
    %0 = vector.load %arg0[%c0, %c0_0] : memref<2048x27xbf16, #tpu.memory_space<vmem>>, vector<2048x27xbf16>
    %c0_1 = arith.constant 0 : index
    %c0_2 = arith.constant 0 : index
    %1 = vector.load %arg1[%c0_1, %c0_2] : memref<27x64xbf16, #tpu.memory_space<vmem>>, vector<27x64xbf16>
    %cst = arith.constant dense<0.000000e+00> : vector<2048x64xf32>
    %2 = tpu.matmul %0, %1, %cst {dimension_numbers = #tpu.dot_dimension_numbers<[1], [0], [0], [1], [0, 0, 1, 1], [], []>} : vector<2048x27xbf16>, vector<27x64xbf16>, vector<2048x64xf32> -> vector<2048x64xf32>
    %c0_3 = arith.constant 0 : index
    %c0_4 = arith.constant 0 : index
    %3 = vector.load %arg2[%c0_3, %c0_4] : memref<1x64xf32, #tpu.memory_space<vmem>>, vector<1x64xf32>
    %4 = vector.broadcast %3 : vector<1x64xf32> to vector<2048x64xf32>
    %5 = arith.mulf %2, %4 : vector<2048x64xf32>
    %c0_5 = arith.constant 0 : index
    %c0_6 = arith.constant 0 : index
    %6 = vector.load %arg3[%c0_5, %c0_6] : memref<1x64xf32, #tpu.memory_space<vmem>>, vector<1x64xf32>
    %7 = vector.broadcast %6 : vector<1x64xf32> to vector<2048x64xf32>
    %8 = arith.addf %5, %7 : vector<2048x64xf32>
    %cst_7 = arith.constant 0.000000e+00 : f32
    %9 = vector.broadcast %cst_7 : f32 to vector<2048x64xf32>
    %10 = arith.maximumf %8, %9 : vector<2048x64xf32>
    %11 = arith.truncf %10 : vector<2048x64xf32> to vector<2048x64xbf16>
    %c0_8 = arith.constant 0 : index
    %c0_9 = arith.constant 0 : index
    %12 = vector.load %arg4[%c0_8, %c0_9] : memref<2048x64xbf16, #tpu.memory_space<vmem>>, vector<2048x64xbf16>
    tpu.vector_store %arg4[%c0_8, %c0_9], %11 {strides = array<i32>} : memref<2048x64xbf16, #tpu.memory_space<vmem>>, vector<2048x64xbf16>,
    return
  }
}

</mosaic_0001>

<bundles_post_ra>
// kernel: tpu_custom_call.1
= control target key start
LH: loop header
LB: loop body
LE: loop exit
PB: predicated region body
PF: predicated region fallthrough
CT: control target
= control target key end

     0   :  { %vm1314_vm0 = vcmask 1044480   ;;  %vm1315_vm1 = vcmask 1045504   ;;  %vm929_vm2 = vcmask 220160   ;;  %v5746_v1 = vmov 65535   ;;  %s7856_s1 = inlined_call_operand.vmem [shape: bf16[27,64], index: 1, kind: input, shape index: {}]   ;;  %s7857_s0 = inlined_call_operand.vmem [shape: bf16[2048,27], index: 0, kind: input, shape index: {}]   ;;  %s7858_s2 = inlined_call_operand.vmem [shape: f32[1,64], index: 2, kind: input, shape index: {}]   ;;  %s7859_s3 = inlined_call_operand.vmem [shape: f32[1,64], index: 3, kind: input, shape index: {}]   ;;  %s7860_s4 = inlined_call_operand.vmem [shape: bf16[2048,64], index: 4, kind: output, shape index: {}]  }
   0x1   :  { %v5612_v0 = vld [vmem:[%s7856_s1] sm:$0xff]   ;;  %v1316_v2 = vsel %vm1314_vm0, 4294967295, %v5746_v1  ;;  %v5613_v3 = vld [vmem:[%s7856_s1 + $0x8] sm:$0x3f]   ;;  %v5618_v10 = vld [vmem:[%s7857_s0 + $0x10] sm:$0xff]   ;;  %vm4184_vm3 = vcmask 519168  }
   0x2   :  { %5347 = vmatprep.subr.bf16.mxu0 %v5612_v0  ;;  %5607 = vmatprep.subr.bf16.mxu1 %v5612_v0  ;;  %v1317_v4 = vsel %vm1315_vm1, %v1316_v2, 0  ;;  %v5614_v5 = vld [vmem:[%s7857_s0] sm:$0xff]   ;;  %v5616_v8 = vld [vmem:[%s7857_s0 + $0x8] sm:$0xff]   ;;  %v5619_v11 = vld [vmem:[%s7857_s0 + $0x210] sm:$0xff]  }
   0x3   :  { %5348 = vmatpush3.bf16.msra.mxu0 %v5612_v0  ;;  %5609 = vmatpush3.bf16.msra.mxu1 %v5612_v0  ;;  %v1319_v6 = vand.u32 %v5613_v3, %v1317_v4  ;;  %v5615_v7 = vld [vmem:[%s7857_s0 + $0x200] sm:$0xff]   ;;  %v5617_v9 = vld [vmem:[%s7857_s0 + $0x208] sm:$0xff]   ;;  %v5620_v12 = vld [vmem:[%s7857_s0 + $0x18] sm:$0xff]  }
   0x4   :  { %5351 = vmatprep.mubr.msk.bf16.mxu0 %vm929_vm2, %v5614_v5  ;;  %5479 = vmatprep.mubr.msk.bf16.mxu1 %vm929_vm2, %v5615_v7  ;;  %v5621_v13 = vld [vmem:[%s7857_s0 + $0x218] sm:$0xff]   ;;  %v5622_v14 = vld [vmem:[%s7857_s0 + $0x20] sm:$0xff]   ;;  %v5624_v16 = vld [vmem:[%s7857_s0 + $0x28] sm:$0xff]  }
   0x5   :  { %5349 = vmatprep.subr.bf16.mxu0 %v1319_v6  ;;  %5608 = vmatprep.subr.bf16.mxu1 %v1319_v6  ;;  %v5623_v15 = vld [vmem:[%s7857_s0 + $0x220] sm:$0xff]   ;;  %v5625_v17 = vld [vmem:[%s7857_s0 + $0x228] sm:$0xff]   ;;  %v5626_v18 = vld [vmem:[%s7857_s0 + $0x30] sm:$0xff]  }
   0x6   :  { %v5627_v19 = vld [vmem:[%s7857_s0 + $0x230] sm:$0xff]   ;;  %v5628_v20 = vld [vmem:[%s7857_s0 + $0x38] sm:$0xff]   ;;  %v5630_v22 = vld [vmem:[%s7857_s0 + $0x40] sm:$0xff]  }
   0x7   :  { %5350 = vmatpush3.bf16.msra.mxu0 %v1319_v6  ;;  %5610 = vmatpush3.bf16.msra.mxu1 %v1319_v6  ;;  %v5629_v21 = vld [vmem:[%s7857_s0 + $0x238] sm:$0xff]   ;;  %v5631_v23 = vld [vmem:[%s7857_s0 + $0x240] sm:$0xff]   ;;  %v5632_v24 = vld [vmem:[%s7857_s0 + $0x48] sm:$0xff]  }
   0x8   :  { %v5633_v25 = vld [vmem:[%s7857_s0 + $0x248] sm:$0xff]   ;;  %v5634_v26 = vld [vmem:[%s7857_s0 + $0x50] sm:$0xff]   ;;  %v5636_v28 = vld [vmem:[%s7857_s0 + $0x58] sm:$0xff]  }
   0x9   :  { %v5635_v27 = vld [vmem:[%s7857_s0 + $0x250] sm:$0xff]   ;;  %v5637_v29 = vld [vmem:[%s7857_s0 + $0x258] sm:$0xff]   ;;  %v5638_v30 = vld [vmem:[%s7857_s0 + $0x60] sm:$0xff]  }
   0xa   :  { %5352 = vmatmul.mubr.msk.bf16.vlgmr.msra.gmra.mrb[0].mxu0 %vm929_vm2, %v5616_v8  ;;  %5480 = vmatmul.mubr.msk.bf16.vlgmr.msra.gmra.mrb[0].mxu1 %vm929_vm2, %v5617_v9  ;;  %v5639_v31 = vld [vmem:[%s7857_s0 + $0x260] sm:$0xff]   ;;  %v5640_v32 = vld [vmem:[%s7857_s0 + $0x68] sm:$0xff]   ;;  %v5642_v34 = vld [vmem:[%s7857_s0 + $0x70] sm:$0xff]  }
   0xb   :  { %5355 = vmatprep.mubr.msk.bf16.mxu0 %vm929_vm2, %v5618_v10  ;;  %5483 = vmatprep.mubr.msk.bf16.mxu1 %vm929_vm2, %v5619_v11  ;;  %v5641_v33 = vld [vmem:[%s7857_s0 + $0x268] sm:$0xff]   ;;  %v5643_v35 = vld [vmem:[%s7857_s0 + $0x270] sm:$0xff]   ;;  %v5644_v36 = vld [vmem:[%s7857_s0 + $0x78] sm:$0xff]  }
   0xc   :  { %v5645_v37 = vld [vmem:[%s7857_s0 + $0x278] sm:$0xff]   ;;  %v5646_v38 = vld [vmem:[%s7857_s0 + $0x80] sm:$0xff]   ;;  %v5648_v40 = vld [vmem:[%s7857_s0 + $0x88] sm:$0xff]  }
   0xd   :  { %v5647_v39 = vld [vmem:[%s7857_s0 + $0x280] sm:$0xff]   ;;  %v5649_v41 = vld [vmem:[%s7857_s0 + $0x288] sm:$0xff]   ;;  %v5650_v42 = vld [vmem:[%s7857_s0 + $0x90] sm:$0xff]  }
   0xe   :  { %v5651_v43 = vld [vmem:[%s7857_s0 + $0x290] sm:$0xff]   ;;  %v5652_v44 = vld [vmem:[%s7857_s0 + $0x98] sm:$0xff]   ;;  %v5654_v46 = vld [vmem:[%s7857_s0 + $0xa0] sm:$0xff]  }
   0xf   :  { %v5653_v45 = vld [vmem:[%s7857_s0 + $0x298] sm:$0xff]   ;;  %v5655_v47 = vld [vmem:[%s7857_s0 + $0x2a0] sm:$0xff]   ;;  %v5656_v48 = vld [vmem:[%s7857_s0 + $0xa8] sm:$0xff]  }
  0x10   :  { %v5657_v49 = vld [vmem:[%s7857_s0 + $0x2a8] sm:$0xff]   ;;  %v5658_v50 = vld [vmem:[%s7857_s0 + $0xb0] sm:$0xff]   ;;  %v5660_v52 = vld [vmem:[%s7857_s0 + $0xb8] sm:$0xff]  }
  0x11   :  { %v5659_v51 = vld [vmem:[%s7857_s0 + $0x2b0] sm:$0xff]   ;;  %v5661_v53 = vld [vmem:[%s7857_s0 + $0x2b8] sm:$0xff]   ;;  %v5662_v54 = vld [vmem:[%s7857_s0 + $0xc0] sm:$0xff]  }
  0x12   :  { %5356 = vmatmul.mubr.msk.bf16.gmra.mrb[4].mxu0 %vm929_vm2, %v5620_v12  ;;  %5484 = vmatmul.mubr.msk.bf16.gmra.mrb[4].mxu1 %vm929_vm2, %v5621_v13  ;;  %v5663_v55 = vld [vmem:[%s7857_s0 + $0x2c0] sm:$0xff]   ;;  %v5664_v56 = vld [vmem:[%s7857_s0 + $0xc8] sm:$0xff]   ;;  %v5666_v58 = vld [vmem:[%s7857_s0 + $0xd0] sm:$0xff]  }
  0x13   :  { %5359 = vmatprep.mubr.msk.bf16.mxu0 %vm929_vm2, %v5622_v14  ;;  %5487 = vmatprep.mubr.msk.bf16.mxu1 %vm929_vm2, %v5623_v15  ;;  %v5665_v57 = vld [vmem:[%s7857_s0 + $0x2c8] sm:$0xff]   ;;  %v5667_v59 = vld [vmem:[%s7857_s0 + $0x2d0] sm:$0xff]   ;;  %v5668_v60 = vld [vmem:[%s7857_s0 + $0xd8] sm:$0xff]  }
  0x14   :  { %v5669_v61 = vld [vmem:[%s7857_s0 + $0x2d8] sm:$0xff]   ;;  %v5670_v62 = vld [vmem:[%s7857_s0 + $0xe0] sm:$0xff]   ;;  %v5672_v0 = vld [vmem:[%s7857_s0 + $0xe8] sm:$0xff]  }
  0x15   :  { %v5671_v63 = vld [vmem:[%s7857_s0 + $0x2e0] sm:$0xff]   ;;  %v5673_v1 = vld [vmem:[%s7857_s0 + $0x2e8] sm:$0xff]   ;;  %v5674_v2 = vld [vmem:[%s7857_s0 + $0xf0] sm:$0xff]  }
  0x16   :  { %v5675_v3 = vld [vmem:[%s7857_s0 + $0x2f0] sm:$0xff]   ;;  %v5676_v4 = vld [vmem:[%s7857_s0 + $0xf8] sm:$0xff]   ;;  %v5678_v6 = vld [vmem:[%s7857_s0 + $0x100] sm:$0xff]  }
  0x17   :  { %v5677_v5 = vld [vmem:[%s7857_s0 + $0x2f8] sm:$0xff]   ;;  %v5679_v7 = vld [vmem:[%s7857_s0 + $0x300] sm:$0xff]   ;;  %v5680_v8 = vld [vmem:[%s7857_s0 + $0x108] sm:$0xff]  }
  0x18   :  { %v5681_v9 = vld [vmem:[%s7857_s0 + $0x308] sm:$0xff]   ;;  %v5682_v10 = vld [vmem:[%s7857_s0 + $0x110] sm:$0xff]   ;;  %v5684_v12 = vld [vmem:[%s7857_s0 + $0x118] sm:$0xff]  }
  0x19   :  { %v5683_v11 = vld [vmem:[%s7857_s0 + $0x310] sm:$0xff]   ;;  %v5685_v13 = vld [vmem:[%s7857_s0 + $0x318] sm:$0xff]   ;;  %v5686_v14 = vld [vmem:[%s7857_s0 + $0x120] sm:$0xff]  }
  0x1a   :  { %5360 = vmatmul.mubr.msk.bf16.gmra.mrb[8].mxu0 %vm929_vm2, %v5624_v16  ;;  %5488 = vmatmul.mubr.msk.bf16.gmra.mrb[8].mxu1 %vm929_vm2, %v5625_v17  ;;  %v5687_v15 = vld [vmem:[%s7857_s0 + $0x320] sm:$0xff]   ;;  %v5688_v16 = vld [vmem:[%s7857_s0 + $0x128] sm:$0xff]  }
  0x1b   :  { %5363 = vmatprep.mubr.msk.bf16.mxu0 %vm929_vm2, %v5626_v18  ;;  %5491 = vmatprep.mubr.msk.bf16.mxu1 %vm929_vm2, %v5627_v19  ;;  %v5689_v17 = vld [vmem:[%s7857_s0 + $0x328] sm:$0xff]   ;;  %v5690_v18 = vld [vmem:[%s7857_s0 + $0x130] sm:$0xff]  }
  0x1c   :  { %v5691_v19 = vld [vmem:[%s7857_s0 + $0x330] sm:$0xff]  }
  0x22   :  { %5364 = vmatmul.mubr.msk.bf16.gmra.mrb[12].mxu0 %vm929_vm2, %v5628_v20  ;;  %5492 = vmatmul.mubr.msk.bf16.gmra.mrb[12].mxu1 %vm929_vm2, %v5629_v21  ;;  %v5692_v20 = vld [vmem:[%s7857_s0 + $0x138] sm:$0xff]  }
  0x23   :  { %5367 = vmatprep.mubr.msk.bf16.mxu0 %vm929_vm2, %v5630_v22  ;;  %5495 = vmatprep.mubr.msk.bf16.mxu1 %vm929_vm2, %v5631_v23  ;;  %v5693_v21 = vld [vmem:[%s7857_s0 + $0x338] sm:$0xff]   ;;  %v5694_v22 = vld [vmem:[%s7857_s0 + $0x140] sm:$0xff]  }
  0x24   :  { %v5695_v23 = vld [vmem:[%s7857_s0 + $0x340] sm:$0xff]  }
  0x2a   :  { %5368 = vmatmul.mubr.msk.bf16.gmra.mrb[16].mxu0 %vm929_vm2, %v5632_v24  ;;  %5496 = vmatmul.mubr.msk.bf16.gmra.mrb[16].mxu1 %vm929_vm2, %v5633_v25  ;;  %v5696_v24 = vld [vmem:[%s7857_s0 + $0x148] sm:$0xff]  }
  0x2b   :  { %5371 = vmatprep.mubr.msk.bf16.mxu0 %vm929_vm2, %v5634_v26  ;;  %5499 = vmatprep.mubr.msk.bf16.mxu1 %vm929_vm2, %v5635_v27  ;;  %v5697_v25 = vld [vmem:[%s7857_s0 + $0x348] sm:$0xff]   ;;  %v5698_v26 = vld [vmem:[%s7857_s0 + $0x150] sm:$0xff]  }
  0x2c   :  { %v5699_v27 = vld [vmem:[%s7857_s0 + $0x350] sm:$0xff]  }
  0x32   :  { %5372 = vmatmul.mubr.msk.bf16.gmra.mrb[20].mxu0 %vm929_vm2, %v5636_v28  ;;  %5500 = vmatmul.mubr.msk.bf16.gmra.mrb[20].mxu1 %vm929_vm2, %v5637_v29  ;;  %v5700_v28 = vld [vmem:[%s7857_s0 + $0x158] sm:$0xff]  }
  0x33   :  { %5375 = vmatprep.mubr.msk.bf16.mxu0 %vm929_vm2, %v5638_v30  ;;  %5503 = vmatprep.mubr.msk.bf16.mxu1 %vm929_vm2, %v5639_v31  ;;  %v5701_v29 = vld [vmem:[%s7857_s0 + $0x358] sm:$0xff]   ;;  %v5702_v30 = vld [vmem:[%s7857_s0 + $0x160] sm:$0xff]  }
  0x34   :  { %v5703_v31 = vld [vmem:[%s7857_s0 + $0x360] sm:$0xff]  }
  0x3a   :  { %5376 = vmatmul.mubr.msk.bf16.gmra.mrb[24].mxu0 %vm929_vm2, %v5640_v32  ;;  %5504 = vmatmul.mubr.msk.bf16.gmra.mrb[24].mxu1 %vm929_vm2, %v5641_v33  ;;  %v5704_v32 = vld [vmem:[%s7857_s0 + $0x168] sm:$0xff]  }
  0x3b   :  { %5379 = vmatprep.mubr.msk.bf16.mxu0 %vm929_vm2, %v5642_v34  ;;  %5507 = vmatprep.mubr.msk.bf16.mxu1 %vm929_vm2, %v5643_v35  ;;  %v5705_v33 = vld [vmem:[%s7857_s0 + $0x368] sm:$0xff]   ;;  %v5706_v34 = vld [vmem:[%s7857_s0 + $0x170] sm:$0xff]  }
  0x3c   :  { %v5707_v35 = vld [vmem:[%s7857_s0 + $0x370] sm:$0xff]  }
  0x42   :  { %5380 = vmatmul.mubr.msk.bf16.gmra.mrb[28].mxu0 %vm929_vm2, %v5644_v36  ;;  %5508 = vmatmul.mubr.msk.bf16.gmra.mrb[28].mxu1 %vm929_vm2, %v5645_v37  ;;  %v5708_v36 = vld [vmem:[%s7857_s0 + $0x178] sm:$0xff]  }
  0x43   :  { %5383 = vmatprep.mubr.msk.bf16.mxu0 %vm929_vm2, %v5646_v38  ;;  %5511 = vmatprep.mubr.msk.bf16.mxu1 %vm929_vm2, %v5647_v39  ;;  %v5709_v37 = vld [vmem:[%s7857_s0 + $0x378] sm:$0xff]   ;;  %v5710_v38 = vld [vmem:[%s7857_s0 + $0x180] sm:$0xff]  }
  0x44   :  { %v5711_v39 = vld [vmem:[%s7857_s0 + $0x380] sm:$0xff]  }
  0x4a   :  { %5384 = vmatmul.mubr.msk.bf16.gmra.mrb[32].mxu0 %vm929_vm2, %v5648_v40  ;;  %5512 = vmatmul.mubr.msk.bf16.gmra.mrb[32].mxu1 %vm929_vm2, %v5649_v41  ;;  %v5712_v40 = vld [vmem:[%s7857_s0 + $0x188] sm:$0xff]  }
  0x4b   :  { %5387 = vmatprep.mubr.msk.bf16.mxu0 %vm929_vm2, %v5650_v42  ;;  %5515 = vmatprep.mubr.msk.bf16.mxu1 %vm929_vm2, %v5651_v43  ;;  %v5713_v41 = vld [vmem:[%s7857_s0 + $0x388] sm:$0xff]   ;;  %v5714_v42 = vld [vmem:[%s7857_s0 + $0x190] sm:$0xff]  }
  0x4c   :  { %v5715_v43 = vld [vmem:[%s7857_s0 + $0x390] sm:$0xff]  }
  0x52   :  { %5388 = vmatmul.mubr.msk.bf16.gmra.mrb[36].mxu0 %vm929_vm2, %v5652_v44  ;;  %5516 = vmatmul.mubr.msk.bf16.gmra.mrb[36].mxu1 %vm929_vm2, %v5653_v45  ;;  %v5716_v44 = vld [vmem:[%s7857_s0 + $0x198] sm:$0xff]  }
  0x53   :  { %5391 = vmatprep.mubr.msk.bf16.mxu0 %vm929_vm2, %v5654_v46  ;;  %5519 = vmatprep.mubr.msk.bf16.mxu1 %vm929_vm2, %v5655_v47  ;;  %v5717_v45 = vld [vmem:[%s7857_s0 + $0x398] sm:$0xff]   ;;  %v5718_v46 = vld [vmem:[%s7857_s0 + $0x1a0] sm:$0xff]  }
  0x54   :  { %v5719_v47 = vld [vmem:[%s7857_s0 + $0x3a0] sm:$0xff]  }
  0x5a   :  { %5392 = vmatmul.mubr.msk.bf16.gmra.mrb[40].mxu0 %vm929_vm2, %v5656_v48  ;;  %5520 = vmatmul.mubr.msk.bf16.gmra.mrb[40].mxu1 %vm929_vm2, %v5657_v49  ;;  %v5720_v48 = vld [vmem:[%s7857_s0 + $0x1a8] sm:$0xff]  }
  0x5b   :  { %5395 = vmatprep.mubr.msk.bf16.mxu0 %vm929_vm2, %v5658_v50  ;;  %5523 = vmatprep.mubr.msk.bf16.mxu1 %vm929_vm2, %v5659_v51  ;;  %v5721_v49 = vld [vmem:[%s7857_s0 + $0x3a8] sm:$0xff]   ;;  %v5722_v50 = vld [vmem:[%s7857_s0 + $0x1b0] sm:$0xff]  }
  0x5c   :  { %v5723_v51 = vld [vmem:[%s7857_s0 + $0x3b0] sm:$0xff]  }
  0x62   :  { %5396 = vmatmul.mubr.msk.bf16.gmra.mrb[44].mxu0 %vm929_vm2, %v5660_v52  ;;  %5524 = vmatmul.mubr.msk.bf16.gmra.mrb[44].mxu1 %vm929_vm2, %v5661_v53  ;;  %v6219_v52 = vld [vmem:[%s7858_s2] ss:$0 sm:$0xff] }
  0x63   :  { %5399 = vmatprep.mubr.msk.bf16.mxu0 %vm929_vm2, %v5662_v54  ;;  %5527 = vmatprep.mubr.msk.bf16.mxu1 %vm929_vm2, %v5663_v55  ;;  %v6226_v54 = vld [vmem:[%s7859_s3] ss:$0 sm:$0xff] }
  0x6a   :  { %5400 = vmatmul.mubr.msk.bf16.gmra.mrb[48].mxu0 %vm929_vm2, %v5664_v56  ;;  %5528 = vmatmul.mubr.msk.bf16.gmra.mrb[48].mxu1 %vm929_vm2, %v5665_v57 }
  0x6b   :  { %5403 = vmatprep.mubr.msk.bf16.mxu0 %vm929_vm2, %v5666_v58  ;;  %5531 = vmatprep.mubr.msk.bf16.mxu1 %vm929_vm2, %v5667_v59 }
  0x72   :  { %5404 = vmatmul.mubr.msk.bf16.gmra.mrb[52].mxu0 %vm929_vm2, %v5668_v60  ;;  %5532 = vmatmul.mubr.msk.bf16.gmra.mrb[52].mxu1 %vm929_vm2, %v5669_v61  ;;  %v5724_v60 = vld [vmem:[%s7857_s0 + $0x1b8] sm:$0xff]  }
  0x73   :  { %5407 = vmatprep.mubr.msk.bf16.mxu0 %vm929_vm2, %v5670_v62  ;;  %5535 = vmatprep.mubr.msk.bf16.mxu1 %vm929_vm2, %v5671_v63  ;;  %v5725_v61 = vld [vmem:[%s7857_s0 + $0x3b8] sm:$0xff]  }
  0x7a   :  { %5408 = vmatmul.mubr.msk.bf16.gmra.mrb[56].mxu0 %vm929_vm2, %v5672_v0  ;;  %5536 = vmatmul.mubr.msk.bf16.gmra.mrb[56].mxu1 %vm929_vm2, %v5673_v1 }
  0x7b   :  { %5411 = vmatprep.mubr.msk.bf16.mxu0 %vm929_vm2, %v5674_v2  ;;  %5539 = vmatprep.mubr.msk.bf16.mxu1 %vm929_vm2, %v5675_v3  ;;  %v5726_v2 = vld [vmem:[%s7857_s0 + $0x1c0] sm:$0xff]  }
  0x7c   :  { %v5727_v3 = vld [vmem:[%s7857_s0 + $0x3c0] sm:$0xff]  }
  0x82   :  { %5412 = vmatmul.mubr.msk.bf16.gmra.mrb[60].mxu0 %vm929_vm2, %v5676_v4  ;;  %5540 = vmatmul.mubr.msk.bf16.gmra.mrb[60].mxu1 %vm929_vm2, %v5677_v5 }
  0x83   :  { %5415 = vmatprep.mubr.msk.bf16.mxu0 %vm929_vm2, %v5678_v6  ;;  %5543 = vmatprep.mubr.msk.bf16.mxu1 %vm929_vm2, %v5679_v7 }
  0x8a   :  { %5416 = vmatmul.mubr.msk.bf16.gmra.mrb[64].mxu0 %vm929_vm2, %v5680_v8  ;;  %5544 = vmatmul.mubr.msk.bf16.gmra.mrb[64].mxu1 %vm929_vm2, %v5681_v9 }
  0x8b   :  { %5419 = vmatprep.mubr.msk.bf16.mxu0 %vm929_vm2, %v5682_v10  ;;  %5547 = vmatprep.mubr.msk.bf16.mxu1 %vm929_vm2, %v5683_v11 }
  0x92   :  { %5420 = vmatmul.mubr.msk.bf16.gmra.mrb[68].mxu0 %vm929_vm2, %v5684_v12  ;;  %5548 = vmatmul.mubr.msk.bf16.gmra.mrb[68].mxu1 %vm929_vm2, %v5685_v13 }
  0x93   :  { %5423 = vmatprep.mubr.msk.bf16.mxu0 %vm929_vm2, %v5686_v14  ;;  %5551 = vmatprep.mubr.msk.bf16.mxu1 %vm929_vm2, %v5687_v15 }
  0x9a   :  { %5424 = vmatmul.mubr.msk.bf16.gmra.mrb[72].mxu0 %vm929_vm2, %v5688_v16  ;;  %5552 = vmatmul.mubr.msk.bf16.gmra.mrb[72].mxu1 %vm929_vm2, %v5689_v17 }
  0x9b   :  { %5427 = vmatprep.mubr.msk.bf16.mxu0 %vm929_vm2, %v5690_v18  ;;  %5555 = vmatprep.mubr.msk.bf16.mxu1 %vm929_vm2, %v5691_v19 }
  0xa2   :  { %5428 = vmatmul.mubr.msk.bf16.gmra.mrb[76].mxu0 %vm929_vm2, %v5692_v20  ;;  %5556 = vmatmul.mubr.msk.bf16.gmra.mrb[76].mxu1 %vm929_vm2, %v5693_v21 }
  0xa3   :  { %5431 = vmatprep.mubr.msk.bf16.mxu0 %vm929_vm2, %v5694_v22  ;;  %5559 = vmatprep.mubr.msk.bf16.mxu1 %vm929_vm2, %v5695_v23 }
  0xaa   :  { %5432 = vmatmul.mubr.msk.bf16.gmra.mrb[80].mxu0 %vm929_vm2, %v5696_v24  ;;  %5560 = vmatmul.mubr.msk.bf16.gmra.mrb[80].mxu1 %vm929_vm2, %v5697_v25 }
  0xab   :  { %5435 = vmatprep.mubr.msk.bf16.mxu0 %vm929_vm2, %v5698_v26  ;;  %5563 = vmatprep.mubr.msk.bf16.mxu1 %vm929_vm2, %v5699_v27 }
  0xb2   :  { %5436 = vmatmul.mubr.msk.bf16.gmra.mrb[84].mxu0 %vm929_vm2, %v5700_v28  ;;  %5564 = vmatmul.mubr.msk.bf16.gmra.mrb[84].mxu1 %vm929_vm2, %v5701_v29 }
  0xb3   :  { %5439 = vmatprep.mubr.msk.bf16.mxu0 %vm929_vm2, %v5702_v30  ;;  %5567 = vmatprep.mubr.msk.bf16.mxu1 %vm929_vm2, %v5703_v31 }
  0xba   :  { %5440 = vmatmul.mubr.msk.bf16.gmra.mrb[88].mxu0 %vm929_vm2, %v5704_v32  ;;  %5568 = vmatmul.mubr.msk.bf16.gmra.mrb[88].mxu1 %vm929_vm2, %v5705_v33 }
  0xbb   :  { %5443 = vmatprep.mubr.msk.bf16.mxu0 %vm929_vm2, %v5706_v34  ;;  %5571 = vmatprep.mubr.msk.bf16.mxu1 %vm929_vm2, %v5707_v35 }
  0xc2   :  { %5444 = vmatmul.mubr.msk.bf16.gmra.mrb[92].mxu0 %vm929_vm2, %v5708_v36  ;;  %5572 = vmatmul.mubr.msk.bf16.gmra.mrb[92].mxu1 %vm929_vm2, %v5709_v37 }
  0xc3   :  { %5447 = vmatprep.mubr.msk.bf16.mxu0 %vm929_vm2, %v5710_v38  ;;  %5575 = vmatprep.mubr.msk.bf16.mxu1 %vm929_vm2, %v5711_v39  ;;  %v5728_v38 = vld [vmem:[%s7857_s0 + $0x1c8] sm:$0xff]  }
  0xc4   :  { %v5729_v39 = vld [vmem:[%s7857_s0 + $0x3c8] sm:$0xff]  }
  0xca   :  { %5448 = vmatmul.mubr.msk.bf16.gmra.mrb[96].mxu0 %vm929_vm2, %v5712_v40  ;;  %5576 = vmatmul.mubr.msk.bf16.gmra.mrb[96].mxu1 %vm929_vm2, %v5713_v41 }
  0xcb   :  { %5451 = vmatprep.mubr.msk.bf16.mxu0 %vm929_vm2, %v5714_v42  ;;  %5579 = vmatprep.mubr.msk.bf16.mxu1 %vm929_vm2, %v5715_v43 }
  0xd2   :  { %5452 = vmatmul.mubr.msk.bf16.gmra.mrb[100].mxu0 %vm929_vm2, %v5716_v44  ;;  %5580 = vmatmul.mubr.msk.bf16.gmra.mrb[100].mxu1 %vm929_vm2, %v5717_v45 }
  0xd3   :  { %5455 = vmatprep.mubr.msk.bf16.mxu0 %vm929_vm2, %v5718_v46  ;;  %5583 = vmatprep.mubr.msk.bf16.mxu1 %vm929_vm2, %v5719_v47  ;;  %v5730_v46 = vld [vmem:[%s7857_s0 + $0x1d0] sm:$0xff]  }
  0xd4   :  { %v5731_v47 = vld [vmem:[%s7857_s0 + $0x3d0] sm:$0xff]  }
  0xda   :  { %5456 = vmatmul.mubr.msk.bf16.gmra.mrb[104].mxu0 %vm929_vm2, %v5720_v48  ;;  %5584 = vmatmul.mubr.msk.bf16.gmra.mrb[104].mxu1 %vm929_vm2, %v5721_v49 }
  0xdb   :  { %5459 = vmatprep.mubr.msk.bf16.mxu0 %vm929_vm2, %v5722_v50  ;;  %5587 = vmatprep.mubr.msk.bf16.mxu1 %vm929_vm2, %v5723_v51 }
  0xdd   :  { %v5353_v53 = vpop.f32.mrb[0].mxu0  ;;  %v5481_v55 = vpop.f32.mrb[0].mxu1 }
  0xde   :  { %v2387_v56 = vmul.f32 %v5353_v53, %v6219_v52  ;;  %v2515_v57 = vmul.f32 %v5481_v55, %v6219_v52  ;;  %v1355_v58 = vpop.f32.mrb[1].mxu0  ;;  %v1867_v59 = vpop.f32.mrb[1].mxu1 }
  0xdf   :  { %v2385_v62 = vmul.f32 %v6219_v52, %v1355_v58  ;;  %v2513_v63 = vmul.f32 %v6219_v52, %v1867_v59  ;;  %v5354_v0 = vpop.f32.mrb[2].mxu0  ;;  %v5482_v1 = vpop.f32.mrb[2].mxu1 }
  0xe0   :  { %v2650_v4 = vadd.f32 %v6226_v54, %v2387_v56  ;;  %v2778_v5 = vadd.f32 %v6226_v54, %v2515_v57  ;;  %v2388_v6 = vmul.f32 %v5354_v0, %v6219_v52  ;;  %v2516_v7 = vmul.f32 %v5482_v1, %v6219_v52  ;;  %v1358_v8 = vpop.f32.mrb[3].mxu0  ;;  %v1870_v9 = vpop.f32.mrb[3].mxu1 }
  0xe1   :  { %v2648_v10 = vadd.f32 %v6226_v54, %v2385_v62  ;;  %v2776_v11 = vadd.f32 %v6226_v54, %v2513_v63  ;;  %v2386_v12 = vmul.f32 %v6219_v52, %v1358_v8  ;;  %v2514_v13 = vmul.f32 %v6219_v52, %v1870_v9 }
  0xe2   :  { %v2906_v14 = vmax.f32 %v2650_v4, 0.0  ;;  %v3034_v15 = vmax.f32 %v2778_v5, 0.0  ;;  %v2651_v16 = vadd.f32 %v6226_v54, %v2388_v6  ;;  %v2779_v17 = vadd.f32 %v6226_v54, %v2516_v7  ;;  %5460 = vmatmul.mubr.msk.bf16.gmra.mrb[108].mxu0 %vm929_vm2, %v5724_v60  ;;  %5588 = vmatmul.mubr.msk.bf16.gmra.mrb[108].mxu1 %vm929_vm2, %v5725_v61 }
  0xe3   :  { %v2904_v18 = vmax.f32 %v2648_v10, 0.0  ;;  %v3032_v19 = vmax.f32 %v2776_v11, 0.0  ;;  %v2649_v20 = vadd.f32 %v6226_v54, %v2386_v12  ;;  %v2777_v21 = vadd.f32 %v6226_v54, %v2514_v13  ;;  %5463 = vmatprep.mubr.msk.bf16.mxu0 %vm929_vm2, %v5726_v2  ;;  %5591 = vmatprep.mubr.msk.bf16.mxu1 %vm929_vm2, %v5727_v3 }
  0xe4   :  { %v4963_v22 = vpack.c.bf16 %v2906_v14, %v2906_v14  ;;  %v5091_v23 = vpack.c.bf16 %v3034_v15, %v3034_v15  ;;  %v2907_v24 = vmax.f32 %v2651_v16, 0.0  ;;  %v3035_v25 = vmax.f32 %v2779_v17, 0.0 }
  0xe5   :  { %v4961_v26 = vpack.c.bf16 %v2904_v18, %v2904_v18  ;;  %v5089_v27 = vpack.c.bf16 %v3032_v19, %v3032_v19  ;;  %v2905_v28 = vmax.f32 %v2649_v20, 0.0  ;;  %v3033_v29 = vmax.f32 %v2777_v21, 0.0  ;;  %v5357_v30 = vpop.f32.mrb[4].mxu0  ;;  %v5485_v31 = vpop.f32.mrb[4].mxu1  ;;  %v5732_v20 = vld [vmem:[%s7857_s0 + $0x1d8] sm:$0xff]  }
  0xe6   :  { %4187 = vst.msk [vmem:[%s7860_s4 + $0x8] sm:$0xf] %vm4184_vm3, %v4963_v22  ;;  %4315 = vst.msk [vmem:[%s7860_s4 + $0x208] sm:$0xf] %vm4184_vm3, %v5091_v23  ;;  %v4964_v32 = vpack.c.bf16 %v2907_v24, %v2907_v24  ;;  %v5092_v33 = vpack.c.bf16 %v3035_v25, %v3035_v25  ;;  %v2391_v34 = vmul.f32 %v5357_v30, %v6219_v52  ;;  %v1371_v36 = vpop.f32.mrb[5].mxu0  ;;  %v1883_v37 = vpop.f32.mrb[5].mxu1 }
  0xe7   :  { %v2519_v35 = vmul.f32 %v5485_v31, %v6219_v52  ;;  %4185 = vst.msk [vmem:[%s7860_s4] sm:$0xf] %vm4184_vm3, %v4961_v26  ;;  %4313 = vst.msk [vmem:[%s7860_s4 + $0x200] sm:$0xf] %vm4184_vm3, %v5089_v27  ;;  %v4962_v40 = vpack.c.bf16 %v2905_v28, %v2905_v28  ;;  %v5090_v41 = vpack.c.bf16 %v3033_v29, %v3033_v29  ;;  %v5358_v44 = vpop.f32.mrb[6].mxu0  ;;  %v5486_v45 = vpop.f32.mrb[6].mxu1 }
  0xe8   :  { %v2389_v42 = vmul.f32 %v6219_v52, %v1371_v36  ;;  %v2517_v43 = vmul.f32 %v6219_v52, %v1883_v37  ;;  %4188 = vst.msk [vmem:[%s7860_s4 + $0xc] sm:$0xf] %vm4184_vm3, %v4964_v32  ;;  %4316 = vst.msk [vmem:[%s7860_s4 + $0x20c] sm:$0xf] %vm4184_vm3, %v5092_v33  ;;  %v2654_v48 = vadd.f32 %v6226_v54, %v2391_v34  ;;  %v1374_v53 = vpop.f32.mrb[7].mxu0  ;;  %v1886_v55 = vpop.f32.mrb[7].mxu1 }
  0xe9   :  { %v2782_v49 = vadd.f32 %v6226_v54, %v2519_v35  ;;  %v2392_v50 = vmul.f32 %v5358_v44, %v6219_v52  ;;  %v2520_v51 = vmul.f32 %v5486_v45, %v6219_v52  ;;  %4186 = vst.msk [vmem:[%s7860_s4 + $0x4] sm:$0xf] %vm4184_vm3, %v4962_v40  ;;  %4314 = vst.msk [vmem:[%s7860_s4 + $0x204] sm:$0xf] %vm4184_vm3, %v5090_v41  ;;  %v5733_v21 = vld [vmem:[%s7857_s0 + $0x3d8] sm:$0xff]   ;;  %v5734_v28 = vld [vmem:[%s7857_s0 + $0x1e0] sm:$0xff]  }
  0xea   :  { %v2652_v56 = vadd.f32 %v6226_v54, %v2389_v42  ;;  %v2780_v57 = vadd.f32 %v6226_v54, %v2517_v43  ;;  %v2390_v58 = vmul.f32 %v6219_v52, %v1374_v53  ;;  %v2518_v59 = vmul.f32 %v6219_v52, %v1886_v55  ;;  %5464 = vmatmul.mubr.msk.bf16.gmra.mrb[112].mxu0 %vm929_vm2, %v5728_v38  ;;  %v5735_v29 = vld [vmem:[%s7857_s0 + $0x3e0] sm:$0xff]  }
  0xeb   :  { %v2910_v60 = vmax.f32 %v2654_v48, 0.0  ;;  %v3038_v61 = vmax.f32 %v2782_v49, 0.0  ;;  %v2655_v62 = vadd.f32 %v6226_v54, %v2392_v50  ;;  %v2783_v63 = vadd.f32 %v6226_v54, %v2520_v51  ;;  %5592 = vmatmul.mubr.msk.bf16.gmra.mrb[112].mxu1 %vm929_vm2, %v5729_v39  ;;  %5467 = vmatprep.mubr.msk.bf16.mxu0 %vm929_vm2, %v5730_v46 }
  0xec   :  { %v2908_v0 = vmax.f32 %v2652_v56, 0.0  ;;  %v3036_v1 = vmax.f32 %v2780_v57, 0.0  ;;  %v2653_v2 = vadd.f32 %v6226_v54, %v2390_v58  ;;  %v2781_v3 = vadd.f32 %v6226_v54, %v2518_v59  ;;  %5595 = vmatprep.mubr.msk.bf16.mxu1 %vm929_vm2, %v5731_v47 }
  0xed   :  { %v4967_v4 = vpack.c.bf16 %v2910_v60, %v2910_v60  ;;  %v5095_v5 = vpack.c.bf16 %v3038_v61, %v3038_v61  ;;  %v2911_v6 = vmax.f32 %v2655_v62, 0.0  ;;  %v3039_v7 = vmax.f32 %v2783_v63, 0.0  ;;  %v5361_v12 = vpop.f32.mrb[8].mxu0  ;;  %v5489_v13 = vpop.f32.mrb[8].mxu1 }
  0xee   :  { %v4965_v8 = vpack.c.bf16 %v2908_v0, %v2908_v0  ;;  %v5093_v9 = vpack.c.bf16 %v3036_v1, %v3036_v1  ;;  %v2909_v10 = vmax.f32 %v2653_v2, 0.0  ;;  %v3037_v11 = vmax.f32 %v2781_v3, 0.0  ;;  %v1387_v18 = vpop.f32.mrb[9].mxu0  ;;  %v1899_v19 = vpop.f32.mrb[9].mxu1  ;;  %v5736_v2 = vld [vmem:[%s7857_s0 + $0x1e8] sm:$0xff]  }
  0xef   :  { %4191 = vst.msk [vmem:[%s7860_s4 + $0x18] sm:$0xf] %vm4184_vm3, %v4967_v4  ;;  %4319 = vst.msk [vmem:[%s7860_s4 + $0x218] sm:$0xf] %vm4184_vm3, %v5095_v5  ;;  %v4968_v14 = vpack.c.bf16 %v2911_v6, %v2911_v6  ;;  %v5096_v15 = vpack.c.bf16 %v3039_v7, %v3039_v7  ;;  %v2395_v16 = vmul.f32 %v5361_v12, %v6219_v52  ;;  %v5362_v26 = vpop.f32.mrb[10].mxu0  ;;  %v5490_v27 = vpop.f32.mrb[10].mxu1 }
  0xf0   :  { %v2523_v17 = vmul.f32 %v5489_v13, %v6219_v52  ;;  %4189 = vst.msk [vmem:[%s7860_s4 + $0x10] sm:$0xf] %vm4184_vm3, %v4965_v8  ;;  %4317 = vst.msk [vmem:[%s7860_s4 + $0x210] sm:$0xf] %vm4184_vm3, %v5093_v9  ;;  %v4966_v22 = vpack.c.bf16 %v2909_v10, %v2909_v10  ;;  %v5094_v23 = vpack.c.bf16 %v3037_v11, %v3037_v11  ;;  %v1390_v34 = vpop.f32.mrb[11].mxu0  ;;  %v1902_v35 = vpop.f32.mrb[11].mxu1 }
  0xf1   :  { %v2393_v24 = vmul.f32 %v6219_v52, %v1387_v18  ;;  %v2521_v25 = vmul.f32 %v6219_v52, %v1899_v19  ;;  %4192 = vst.msk [vmem:[%s7860_s4 + $0x1c] sm:$0xf] %vm4184_vm3, %v4968_v14  ;;  %4320 = vst.msk [vmem:[%s7860_s4 + $0x21c] sm:$0xf] %vm4184_vm3, %v5096_v15  ;;  %v2658_v30 = vadd.f32 %v6226_v54, %v2395_v16  ;;  %v5737_v3 = vld [vmem:[%s7857_s0 + $0x3e8] sm:$0xff]   ;;  %v5738_v10 = vld [vmem:[%s7857_s0 + $0x1f0] sm:$0xff]  }
  0xf2   :  { %v2786_v31 = vadd.f32 %v6226_v54, %v2523_v17  ;;  %v2396_v32 = vmul.f32 %v5362_v26, %v6219_v52  ;;  %v2524_v33 = vmul.f32 %v5490_v27, %v6219_v52  ;;  %4190 = vst.msk [vmem:[%s7860_s4 + $0x14] sm:$0xf] %vm4184_vm3, %v4966_v22  ;;  %4318 = vst.msk [vmem:[%s7860_s4 + $0x214] sm:$0xf] %vm4184_vm3, %v5094_v23  ;;  %5468 = vmatmul.mubr.msk.bf16.gmra.mrb[116].mxu0 %vm929_vm2, %v5732_v20  ;;  %v5739_v11 = vld [vmem:[%s7857_s0 + $0x3f0] sm:$0xff]  }
  0xf3   :  { %v2656_v36 = vadd.f32 %v6226_v54, %v2393_v24  ;;  %v2784_v37 = vadd.f32 %v6226_v54, %v2521_v25  ;;  %v2394_v38 = vmul.f32 %v6219_v52, %v1390_v34  ;;  %v2522_v39 = vmul.f32 %v6219_v52, %v1902_v35  ;;  %5596 = vmatmul.mubr.msk.bf16.gmra.mrb[116].mxu1 %vm929_vm2, %v5733_v21 }
  0xf4   :  { %v2914_v40 = vmax.f32 %v2658_v30, 0.0  ;;  %v3042_v41 = vmax.f32 %v2786_v31, 0.0  ;;  %v2659_v42 = vadd.f32 %v6226_v54, %v2396_v32  ;;  %v2787_v43 = vadd.f32 %v6226_v54, %v2524_v33  ;;  %5471 = vmatprep.mubr.msk.bf16.mxu0 %vm929_vm2, %v5734_v28  ;;  %5599 = vmatprep.mubr.msk.bf16.mxu1 %vm929_vm2, %v5735_v29 }
  0xf5   :  { %v2912_v44 = vmax.f32 %v2656_v36, 0.0  ;;  %v3040_v45 = vmax.f32 %v2784_v37, 0.0  ;;  %v2657_v46 = vadd.f32 %v6226_v54, %v2394_v38  ;;  %v2785_v47 = vadd.f32 %v6226_v54, %v2522_v39  ;;  %v5365_v58 = vpop.f32.mrb[12].mxu0  ;;  %v5493_v59 = vpop.f32.mrb[12].mxu1 }
  0xf6   :  { %v4971_v48 = vpack.c.bf16 %v2914_v40, %v2914_v40  ;;  %v5099_v49 = vpack.c.bf16 %v3042_v41, %v3042_v41  ;;  %v2915_v50 = vmax.f32 %v2659_v42, 0.0  ;;  %v3043_v51 = vmax.f32 %v2787_v43, 0.0  ;;  %v1403_v0 = vpop.f32.mrb[13].mxu0  ;;  %v1915_v1 = vpop.f32.mrb[13].mxu1 }
  0xf7   :  { %v4969_v53 = vpack.c.bf16 %v2912_v44, %v2912_v44  ;;  %v5097_v55 = vpack.c.bf16 %v3040_v45, %v3040_v45  ;;  %v2913_v56 = vmax.f32 %v2657_v46, 0.0  ;;  %v3041_v57 = vmax.f32 %v2785_v47, 0.0  ;;  %v5366_v8 = vpop.f32.mrb[14].mxu0  ;;  %v5494_v9 = vpop.f32.mrb[14].mxu1  ;;  %v5740_v46 = vld [vmem:[%s7857_s0 + $0x1f8] sm:$0xff]  }
  0xf8   :  { %4195 = vst.msk [vmem:[%s7860_s4 + $0x28] sm:$0xf] %vm4184_vm3, %v4971_v48  ;;  %4323 = vst.msk [vmem:[%s7860_s4 + $0x228] sm:$0xf] %vm4184_vm3, %v5099_v49  ;;  %v4972_v60 = vpack.c.bf16 %v2915_v50, %v2915_v50  ;;  %v5100_v61 = vpack.c.bf16 %v3043_v51, %v3043_v51  ;;  %v2399_v62 = vmul.f32 %v5365_v58, %v6219_v52  ;;  %v1406_v16 = vpop.f32.mrb[15].mxu0  ;;  %v1918_v17 = vpop.f32.mrb[15].mxu1 }
  0xf9   :  { %v2527_v63 = vmul.f32 %v5493_v59, %v6219_v52  ;;  %4193 = vst.msk [vmem:[%s7860_s4 + $0x20] sm:$0xf] %vm4184_vm3, %v4969_v53  ;;  %4321 = vst.msk [vmem:[%s7860_s4 + $0x220] sm:$0xf] %vm4184_vm3, %v5097_v55  ;;  %v4970_v4 = vpack.c.bf16 %v2913_v56, %v2913_v56  ;;  %v5098_v5 = vpack.c.bf16 %v3041_v57, %v3041_v57  ;;  %v5741_v47 = vld [vmem:[%s7857_s0 + $0x3f8] sm:$0xff]  }
  0xfa   :  { %v2397_v6 = vmul.f32 %v6219_v52, %v1403_v0  ;;  %v2525_v7 = vmul.f32 %v6219_v52, %v1915_v1  ;;  %4196 = vst.msk [vmem:[%s7860_s4 + $0x2c] sm:$0xf] %vm4184_vm3, %v4972_v60  ;;  %4324 = vst.msk [vmem:[%s7860_s4 + $0x22c] sm:$0xf] %vm4184_vm3, %v5100_v61  ;;  %v2662_v12 = vadd.f32 %v6226_v54, %v2399_v62  ;;  %5472 = vmatmul.mubr.msk.bf16.gmra.mrb[120].mxu0 %vm929_vm2, %v5736_v2 }
  0xfb   :  { %v2790_v13 = vadd.f32 %v6226_v54, %v2527_v63  ;;  %v2400_v14 = vmul.f32 %v5366_v8, %v6219_v52  ;;  %v2528_v15 = vmul.f32 %v5494_v9, %v6219_v52  ;;  %4194 = vst.msk [vmem:[%s7860_s4 + $0x24] sm:$0xf] %vm4184_vm3, %v4970_v4  ;;  %4322 = vst.msk [vmem:[%s7860_s4 + $0x224] sm:$0xf] %vm4184_vm3, %v5098_v5  ;;  %5600 = vmatmul.mubr.msk.bf16.gmra.mrb[120].mxu1 %vm929_vm2, %v5737_v3 }
  0xfc   :  { %v2660_v18 = vadd.f32 %v6226_v54, %v2397_v6  ;;  %v2788_v19 = vadd.f32 %v6226_v54, %v2525_v7  ;;  %v2398_v20 = vmul.f32 %v6219_v52, %v1406_v16  ;;  %v2526_v21 = vmul.f32 %v6219_v52, %v1918_v17  ;;  %5475 = vmatprep.mubr.msk.bf16.mxu0 %vm929_vm2, %v5738_v10 }
  0xfd   :  { %v2918_v22 = vmax.f32 %v2662_v12, 0.0  ;;  %v3046_v23 = vmax.f32 %v2790_v13, 0.0  ;;  %v2663_v24 = vadd.f32 %v6226_v54, %v2400_v14  ;;  %v2791_v25 = vadd.f32 %v6226_v54, %v2528_v15  ;;  %5603 = vmatprep.mubr.msk.bf16.mxu1 %vm929_vm2, %v5739_v11  ;;  %v5369_v38 = vpop.f32.mrb[16].mxu0  ;;  %v5497_v39 = vpop.f32.mrb[16].mxu1 }
  0xfe   :  { %v2916_v26 = vmax.f32 %v2660_v18, 0.0  ;;  %v3044_v27 = vmax.f32 %v2788_v19, 0.0  ;;  %v2661_v28 = vadd.f32 %v6226_v54, %v2398_v20  ;;  %v2789_v29 = vadd.f32 %v6226_v54, %v2526_v21  ;;  %v1419_v44 = vpop.f32.mrb[17].mxu0  ;;  %v1931_v45 = vpop.f32.mrb[17].mxu1 }
  0xff   :  { %v4975_v30 = vpack.c.bf16 %v2918_v22, %v2918_v22  ;;  %v5103_v31 = vpack.c.bf16 %v3046_v23, %v3046_v23  ;;  %v2919_v32 = vmax.f32 %v2663_v24, 0.0  ;;  %v3047_v33 = vmax.f32 %v2791_v25, 0.0  ;;  %v5370_v53 = vpop.f32.mrb[18].mxu0  ;;  %v5498_v55 = vpop.f32.mrb[18].mxu1 }
 0x100   :  { %v4973_v34 = vpack.c.bf16 %v2916_v26, %v2916_v26  ;;  %v5101_v35 = vpack.c.bf16 %v3044_v27, %v3044_v27  ;;  %v2917_v36 = vmax.f32 %v2661_v28, 0.0  ;;  %v3045_v37 = vmax.f32 %v2789_v29, 0.0  ;;  %v1422_v60 = vpop.f32.mrb[19].mxu0  ;;  %v1934_v61 = vpop.f32.mrb[19].mxu1 }
 0x101   :  { %4199 = vst.msk [vmem:[%s7860_s4 + $0x38] sm:$0xf] %vm4184_vm3, %v4975_v30  ;;  %4327 = vst.msk [vmem:[%s7860_s4 + $0x238] sm:$0xf] %vm4184_vm3, %v5103_v31  ;;  %v4976_v40 = vpack.c.bf16 %v2919_v32, %v2919_v32  ;;  %v5104_v41 = vpack.c.bf16 %v3047_v33, %v3047_v33  ;;  %v2403_v42 = vmul.f32 %v5369_v38, %v6219_v52 }
 0x102   :  { %v2531_v43 = vmul.f32 %v5497_v39, %v6219_v52  ;;  %4197 = vst.msk [vmem:[%s7860_s4 + $0x30] sm:$0xf] %vm4184_vm3, %v4973_v34  ;;  %4325 = vst.msk [vmem:[%s7860_s4 + $0x230] sm:$0xf] %vm4184_vm3, %v5101_v35  ;;  %v4974_v48 = vpack.c.bf16 %v2917_v36, %v2917_v36  ;;  %v5102_v49 = vpack.c.bf16 %v3045_v37, %v3045_v37  ;;  %5476 = vmatmul.mubr.msk.bf16.gmra.mrb[124].mxu0 %vm929_vm2, %v5740_v46 }
 0x103   :  { %v2401_v50 = vmul.f32 %v6219_v52, %v1419_v44  ;;  %v2529_v51 = vmul.f32 %v6219_v52, %v1931_v45  ;;  %4200 = vst.msk [vmem:[%s7860_s4 + $0x3c] sm:$0xf] %vm4184_vm3, %v4976_v40  ;;  %4328 = vst.msk [vmem:[%s7860_s4 + $0x23c] sm:$0xf] %vm4184_vm3, %v5104_v41  ;;  %v2666_v56 = vadd.f32 %v6226_v54, %v2403_v42  ;;  %5604 = vmatmul.mubr.msk.bf16.gmra.mrb[124].mxu1 %vm929_vm2, %v5741_v47 }
 0x104   :  { %v2794_v57 = vadd.f32 %v6226_v54, %v2531_v43  ;;  %v2404_v58 = vmul.f32 %v5370_v53, %v6219_v52  ;;  %v2532_v59 = vmul.f32 %v5498_v55, %v6219_v52  ;;  %4198 = vst.msk [vmem:[%s7860_s4 + $0x34] sm:$0xf] %vm4184_vm3, %v4974_v48  ;;  %4326 = vst.msk [vmem:[%s7860_s4 + $0x234] sm:$0xf] %vm4184_vm3, %v5102_v49 }
 0x105   :  { %v2664_v62 = vadd.f32 %v6226_v54, %v2401_v50  ;;  %v2792_v63 = vadd.f32 %v6226_v54, %v2529_v51  ;;  %v2402_v0 = vmul.f32 %v6219_v52, %v1422_v60  ;;  %v2530_v1 = vmul.f32 %v6219_v52, %v1934_v61  ;;  %v5373_v18 = vpop.f32.mrb[20].mxu0  ;;  %v5501_v19 = vpop.f32.mrb[20].mxu1 }
 0x106   :  { %v2922_v2 = vmax.f32 %v2666_v56, 0.0  ;;  %v3050_v3 = vmax.f32 %v2794_v57, 0.0  ;;  %v2667_v4 = vadd.f32 %v6226_v54, %v2404_v58  ;;  %v2795_v5 = vadd.f32 %v6226_v54, %v2532_v59  ;;  %v1435_v24 = vpop.f32.mrb[21].mxu0  ;;  %v1947_v25 = vpop.f32.mrb[21].mxu1 }
 0x107   :  { %v2920_v6 = vmax.f32 %v2664_v62, 0.0  ;;  %v3048_v7 = vmax.f32 %v2792_v63, 0.0  ;;  %v2665_v8 = vadd.f32 %v6226_v54, %v2402_v0  ;;  %v2793_v9 = vadd.f32 %v6226_v54, %v2530_v1  ;;  %v5374_v30 = vpop.f32.mrb[22].mxu0  ;;  %v5502_v31 = vpop.f32.mrb[22].mxu1 }
 0x108   :  { %v4979_v10 = vpack.c.bf16 %v2922_v2, %v2922_v2  ;;  %v5107_v11 = vpack.c.bf16 %v3050_v3, %v3050_v3  ;;  %v2923_v12 = vmax.f32 %v2667_v4, 0.0  ;;  %v3051_v13 = vmax.f32 %v2795_v5, 0.0  ;;  %v1438_v36 = vpop.f32.mrb[23].mxu0  ;;  %v1950_v37 = vpop.f32.mrb[23].mxu1 }
 0x109   :  { %v4977_v14 = vpack.c.bf16 %v2920_v6, %v2920_v6  ;;  %v5105_v15 = vpack.c.bf16 %v3048_v7, %v3048_v7  ;;  %v2921_v16 = vmax.f32 %v2665_v8, 0.0  ;;  %v3049_v17 = vmax.f32 %v2793_v9, 0.0 }
 0x10a   :  { %4203 = vst.msk [vmem:[%s7860_s4 + $0x48] sm:$0xf] %vm4184_vm3, %v4979_v10  ;;  %4331 = vst.msk [vmem:[%s7860_s4 + $0x248] sm:$0xf] %vm4184_vm3, %v5107_v11  ;;  %v4980_v20 = vpack.c.bf16 %v2923_v12, %v2923_v12  ;;  %v5108_v21 = vpack.c.bf16 %v3051_v13, %v3051_v13  ;;  %v2407_v22 = vmul.f32 %v5373_v18, %v6219_v52 }
 0x10b   :  { %v2535_v23 = vmul.f32 %v5501_v19, %v6219_v52  ;;  %4201 = vst.msk [vmem:[%s7860_s4 + $0x40] sm:$0xf] %vm4184_vm3, %v4977_v14  ;;  %4329 = vst.msk [vmem:[%s7860_s4 + $0x240] sm:$0xf] %vm4184_vm3, %v5105_v15  ;;  %v4978_v26 = vpack.c.bf16 %v2921_v16, %v2921_v16  ;;  %v5106_v27 = vpack.c.bf16 %v3049_v17, %v3049_v17 }
 0x10c   :  { %v2405_v28 = vmul.f32 %v6219_v52, %v1435_v24  ;;  %v2533_v29 = vmul.f32 %v6219_v52, %v1947_v25  ;;  %4204 = vst.msk [vmem:[%s7860_s4 + $0x4c] sm:$0xf] %vm4184_vm3, %v4980_v20  ;;  %4332 = vst.msk [vmem:[%s7860_s4 + $0x24c] sm:$0xf] %vm4184_vm3, %v5108_v21  ;;  %v2670_v32 = vadd.f32 %v6226_v54, %v2407_v22 }
 0x10d   :  { %v2798_v33 = vadd.f32 %v6226_v54, %v2535_v23  ;;  %v2408_v34 = vmul.f32 %v5374_v30, %v6219_v52  ;;  %v2536_v35 = vmul.f32 %v5502_v31, %v6219_v52  ;;  %4202 = vst.msk [vmem:[%s7860_s4 + $0x44] sm:$0xf] %vm4184_vm3, %v4978_v26  ;;  %4330 = vst.msk [vmem:[%s7860_s4 + $0x244] sm:$0xf] %vm4184_vm3, %v5106_v27  ;;  %v5377_v60 = vpop.f32.mrb[24].mxu0  ;;  %v5505_v61 = vpop.f32.mrb[24].mxu1 }
 0x10e   :  { %v2668_v38 = vadd.f32 %v6226_v54, %v2405_v28  ;;  %v2796_v39 = vadd.f32 %v6226_v54, %v2533_v29  ;;  %v2406_v40 = vmul.f32 %v6219_v52, %v1438_v36  ;;  %v2534_v41 = vmul.f32 %v6219_v52, %v1950_v37  ;;  %v1451_v2 = vpop.f32.mrb[25].mxu0  ;;  %v1963_v3 = vpop.f32.mrb[25].mxu1 }
 0x10f   :  { %v2926_v42 = vmax.f32 %v2670_v32, 0.0  ;;  %v3054_v43 = vmax.f32 %v2798_v33, 0.0  ;;  %v2671_v44 = vadd.f32 %v6226_v54, %v2408_v34  ;;  %v2799_v45 = vadd.f32 %v6226_v54, %v2536_v35  ;;  %v5378_v8 = vpop.f32.mrb[26].mxu0  ;;  %v5506_v9 = vpop.f32.mrb[26].mxu1 }
 0x110   :  { %v2924_v46 = vmax.f32 %v2668_v38, 0.0  ;;  %v3052_v47 = vmax.f32 %v2796_v39, 0.0  ;;  %v2669_v48 = vadd.f32 %v6226_v54, %v2406_v40  ;;  %v2797_v49 = vadd.f32 %v6226_v54, %v2534_v41  ;;  %v1454_v14 = vpop.f32.mrb[27].mxu0  ;;  %v1966_v15 = vpop.f32.mrb[27].mxu1 }
 0x111   :  { %v4983_v50 = vpack.c.bf16 %v2926_v42, %v2926_v42  ;;  %v5111_v51 = vpack.c.bf16 %v3054_v43, %v3054_v43  ;;  %v2927_v53 = vmax.f32 %v2671_v44, 0.0  ;;  %v3055_v55 = vmax.f32 %v2799_v45, 0.0 }
 0x112   :  { %v4981_v56 = vpack.c.bf16 %v2924_v46, %v2924_v46  ;;  %v5109_v57 = vpack.c.bf16 %v3052_v47, %v3052_v47  ;;  %v2925_v58 = vmax.f32 %v2669_v48, 0.0  ;;  %v3053_v59 = vmax.f32 %v2797_v49, 0.0 }
 0x113   :  { %4207 = vst.msk [vmem:[%s7860_s4 + $0x58] sm:$0xf] %vm4184_vm3, %v4983_v50  ;;  %4335 = vst.msk [vmem:[%s7860_s4 + $0x258] sm:$0xf] %vm4184_vm3, %v5111_v51  ;;  %v4984_v62 = vpack.c.bf16 %v2927_v53, %v2927_v53  ;;  %v5112_v63 = vpack.c.bf16 %v3055_v55, %v3055_v55  ;;  %v2411_v0 = vmul.f32 %v5377_v60, %v6219_v52 }
 0x114   :  { %v2539_v1 = vmul.f32 %v5505_v61, %v6219_v52  ;;  %4205 = vst.msk [vmem:[%s7860_s4 + $0x50] sm:$0xf] %vm4184_vm3, %v4981_v56  ;;  %4333 = vst.msk [vmem:[%s7860_s4 + $0x250] sm:$0xf] %vm4184_vm3, %v5109_v57  ;;  %v4982_v4 = vpack.c.bf16 %v2925_v58, %v2925_v58  ;;  %v5110_v5 = vpack.c.bf16 %v3053_v59, %v3053_v59 }
 0x115   :  { %v2409_v6 = vmul.f32 %v6219_v52, %v1451_v2  ;;  %v2537_v7 = vmul.f32 %v6219_v52, %v1963_v3  ;;  %4208 = vst.msk [vmem:[%s7860_s4 + $0x5c] sm:$0xf] %vm4184_vm3, %v4984_v62  ;;  %4336 = vst.msk [vmem:[%s7860_s4 + $0x25c] sm:$0xf] %vm4184_vm3, %v5112_v63  ;;  %v2674_v10 = vadd.f32 %v6226_v54, %v2411_v0  ;;  %v5381_v36 = vpop.f32.mrb[28].mxu0  ;;  %v5509_v37 = vpop.f32.mrb[28].mxu1 }
 0x116   :  { %v2802_v11 = vadd.f32 %v6226_v54, %v2539_v1  ;;  %v2412_v12 = vmul.f32 %v5378_v8, %v6219_v52  ;;  %v2540_v13 = vmul.f32 %v5506_v9, %v6219_v52  ;;  %4206 = vst.msk [vmem:[%s7860_s4 + $0x54] sm:$0xf] %vm4184_vm3, %v4982_v4  ;;  %4334 = vst.msk [vmem:[%s7860_s4 + $0x254] sm:$0xf] %vm4184_vm3, %v5110_v5  ;;  %v1467_v42 = vpop.f32.mrb[29].mxu0  ;;  %v1979_v43 = vpop.f32.mrb[29].mxu1 }
 0x117   :  { %v2672_v16 = vadd.f32 %v6226_v54, %v2409_v6  ;;  %v2800_v17 = vadd.f32 %v6226_v54, %v2537_v7  ;;  %v2410_v18 = vmul.f32 %v6219_v52, %v1454_v14  ;;  %v2538_v19 = vmul.f32 %v6219_v52, %v1966_v15  ;;  %v5382_v48 = vpop.f32.mrb[30].mxu0  ;;  %v5510_v49 = vpop.f32.mrb[30].mxu1 }
 0x118   :  { %v2930_v20 = vmax.f32 %v2674_v10, 0.0  ;;  %v3058_v21 = vmax.f32 %v2802_v11, 0.0  ;;  %v2675_v22 = vadd.f32 %v6226_v54, %v2412_v12  ;;  %v2803_v23 = vadd.f32 %v6226_v54, %v2540_v13  ;;  %v1470_v56 = vpop.f32.mrb[31].mxu0  ;;  %v1982_v57 = vpop.f32.mrb[31].mxu1 }
 0x119   :  { %v2928_v24 = vmax.f32 %v2672_v16, 0.0  ;;  %v3056_v25 = vmax.f32 %v2800_v17, 0.0  ;;  %v2673_v26 = vadd.f32 %v6226_v54, %v2410_v18  ;;  %v2801_v27 = vadd.f32 %v6226_v54, %v2538_v19 }
 0x11a   :  { %v4987_v28 = vpack.c.bf16 %v2930_v20, %v2930_v20  ;;  %v5115_v29 = vpack.c.bf16 %v3058_v21, %v3058_v21  ;;  %v2931_v30 = vmax.f32 %v2675_v22, 0.0  ;;  %v3059_v31 = vmax.f32 %v2803_v23, 0.0 }
 0x11b   :  { %v4985_v32 = vpack.c.bf16 %v2928_v24, %v2928_v24  ;;  %v5113_v33 = vpack.c.bf16 %v3056_v25, %v3056_v25  ;;  %v2929_v34 = vmax.f32 %v2673_v26, 0.0  ;;  %v3057_v35 = vmax.f32 %v2801_v27, 0.0 }
 0x11c   :  { %4211 = vst.msk [vmem:[%s7860_s4 + $0x68] sm:$0xf] %vm4184_vm3, %v4987_v28  ;;  %4339 = vst.msk [vmem:[%s7860_s4 + $0x268] sm:$0xf] %vm4184_vm3, %v5115_v29  ;;  %v4988_v38 = vpack.c.bf16 %v2931_v30, %v2931_v30  ;;  %v5116_v39 = vpack.c.bf16 %v3059_v31, %v3059_v31  ;;  %v2415_v40 = vmul.f32 %v5381_v36, %v6219_v52 }
 0x11d   :  { %v2543_v41 = vmul.f32 %v5509_v37, %v6219_v52  ;;  %4209 = vst.msk [vmem:[%s7860_s4 + $0x60] sm:$0xf] %vm4184_vm3, %v4985_v32  ;;  %4337 = vst.msk [vmem:[%s7860_s4 + $0x260] sm:$0xf] %vm4184_vm3, %v5113_v33  ;;  %v4986_v44 = vpack.c.bf16 %v2929_v34, %v2929_v34  ;;  %v5114_v45 = vpack.c.bf16 %v3057_v35, %v3057_v35  ;;  %v5385_v14 = vpop.f32.mrb[32].mxu0  ;;  %v5513_v15 = vpop.f32.mrb[32].mxu1 }
 0x11e   :  { %v2413_v46 = vmul.f32 %v6219_v52, %v1467_v42  ;;  %v2541_v47 = vmul.f32 %v6219_v52, %v1979_v43  ;;  %4212 = vst.msk [vmem:[%s7860_s4 + $0x6c] sm:$0xf] %vm4184_vm3, %v4988_v38  ;;  %4340 = vst.msk [vmem:[%s7860_s4 + $0x26c] sm:$0xf] %vm4184_vm3, %v5116_v39  ;;  %v2678_v50 = vadd.f32 %v6226_v54, %v2415_v40  ;;  %v1483_v20 = vpop.f32.mrb[33].mxu0  ;;  %v1995_v21 = vpop.f32.mrb[33].mxu1 }
 0x11f   :  { %v2806_v51 = vadd.f32 %v6226_v54, %v2543_v41  ;;  %v2416_v53 = vmul.f32 %v5382_v48, %v6219_v52  ;;  %v2544_v55 = vmul.f32 %v5510_v49, %v6219_v52  ;;  %4210 = vst.msk [vmem:[%s7860_s4 + $0x64] sm:$0xf] %vm4184_vm3, %v4986_v44  ;;  %4338 = vst.msk [vmem:[%s7860_s4 + $0x264] sm:$0xf] %vm4184_vm3, %v5114_v45  ;;  %v5386_v26 = vpop.f32.mrb[34].mxu0  ;;  %v5514_v27 = vpop.f32.mrb[34].mxu1 }
 0x120   :  { %v2676_v58 = vadd.f32 %v6226_v54, %v2413_v46  ;;  %v2804_v59 = vadd.f32 %v6226_v54, %v2541_v47  ;;  %v2414_v60 = vmul.f32 %v6219_v52, %v1470_v56  ;;  %v2542_v61 = vmul.f32 %v6219_v52, %v1982_v57  ;;  %v1486_v32 = vpop.f32.mrb[35].mxu0  ;;  %v1998_v33 = vpop.f32.mrb[35].mxu1 }
 0x121   :  { %v2934_v62 = vmax.f32 %v2678_v50, 0.0  ;;  %v3062_v63 = vmax.f32 %v2806_v51, 0.0  ;;  %v2679_v0 = vadd.f32 %v6226_v54, %v2416_v53  ;;  %v2807_v1 = vadd.f32 %v6226_v54, %v2544_v55 }
 0x122   :  { %v2932_v2 = vmax.f32 %v2676_v58, 0.0  ;;  %v3060_v3 = vmax.f32 %v2804_v59, 0.0  ;;  %v2677_v4 = vadd.f32 %v6226_v54, %v2414_v60  ;;  %v2805_v5 = vadd.f32 %v6226_v54, %v2542_v61 }
 0x123   :  { %v4991_v6 = vpack.c.bf16 %v2934_v62, %v2934_v62  ;;  %v5119_v7 = vpack.c.bf16 %v3062_v63, %v3062_v63  ;;  %v2935_v8 = vmax.f32 %v2679_v0, 0.0  ;;  %v3063_v9 = vmax.f32 %v2807_v1, 0.0 }
 0x124   :  { %v4989_v10 = vpack.c.bf16 %v2932_v2, %v2932_v2  ;;  %v5117_v11 = vpack.c.bf16 %v3060_v3, %v3060_v3  ;;  %v2933_v12 = vmax.f32 %v2677_v4, 0.0  ;;  %v3061_v13 = vmax.f32 %v2805_v5, 0.0 }
 0x125   :  { %4215 = vst.msk [vmem:[%s7860_s4 + $0x78] sm:$0xf] %vm4184_vm3, %v4991_v6  ;;  %4343 = vst.msk [vmem:[%s7860_s4 + $0x278] sm:$0xf] %vm4184_vm3, %v5119_v7  ;;  %v4992_v16 = vpack.c.bf16 %v2935_v8, %v2935_v8  ;;  %v5120_v17 = vpack.c.bf16 %v3063_v9, %v3063_v9  ;;  %v2419_v18 = vmul.f32 %v5385_v14, %v6219_v52  ;;  %v5389_v56 = vpop.f32.mrb[36].mxu0  ;;  %v5517_v57 = vpop.f32.mrb[36].mxu1 }
 0x126   :  { %v2547_v19 = vmul.f32 %v5513_v15, %v6219_v52  ;;  %4213 = vst.msk [vmem:[%s7860_s4 + $0x70] sm:$0xf] %vm4184_vm3, %v4989_v10  ;;  %4341 = vst.msk [vmem:[%s7860_s4 + $0x270] sm:$0xf] %vm4184_vm3, %v5117_v11  ;;  %v4990_v22 = vpack.c.bf16 %v2933_v12, %v2933_v12  ;;  %v5118_v23 = vpack.c.bf16 %v3061_v13, %v3061_v13  ;;  %v1499_v62 = vpop.f32.mrb[37].mxu0  ;;  %v2011_v63 = vpop.f32.mrb[37].mxu1 }
 0x127   :  { %v2417_v24 = vmul.f32 %v6219_v52, %v1483_v20  ;;  %v2545_v25 = vmul.f32 %v6219_v52, %v1995_v21  ;;  %4216 = vst.msk [vmem:[%s7860_s4 + $0x7c] sm:$0xf] %vm4184_vm3, %v4992_v16  ;;  %4344 = vst.msk [vmem:[%s7860_s4 + $0x27c] sm:$0xf] %vm4184_vm3, %v5120_v17  ;;  %v2682_v28 = vadd.f32 %v6226_v54, %v2419_v18  ;;  %v5390_v4 = vpop.f32.mrb[38].mxu0  ;;  %v5518_v5 = vpop.f32.mrb[38].mxu1 }
 0x128   :  { %v2810_v29 = vadd.f32 %v6226_v54, %v2547_v19  ;;  %v2420_v30 = vmul.f32 %v5386_v26, %v6219_v52  ;;  %v2548_v31 = vmul.f32 %v5514_v27, %v6219_v52  ;;  %4214 = vst.msk [vmem:[%s7860_s4 + $0x74] sm:$0xf] %vm4184_vm3, %v4990_v22  ;;  %4342 = vst.msk [vmem:[%s7860_s4 + $0x274] sm:$0xf] %vm4184_vm3, %v5118_v23  ;;  %v1502_v10 = vpop.f32.mrb[39].mxu0  ;;  %v2014_v11 = vpop.f32.mrb[39].mxu1 }
 0x129   :  { %v2680_v34 = vadd.f32 %v6226_v54, %v2417_v24  ;;  %v2808_v35 = vadd.f32 %v6226_v54, %v2545_v25  ;;  %v2418_v36 = vmul.f32 %v6219_v52, %v1486_v32  ;;  %v2546_v37 = vmul.f32 %v6219_v52, %v1998_v33 }
 0x12a   :  { %v2938_v38 = vmax.f32 %v2682_v28, 0.0  ;;  %v3066_v39 = vmax.f32 %v2810_v29, 0.0  ;;  %v2683_v40 = vadd.f32 %v6226_v54, %v2420_v30  ;;  %v2811_v41 = vadd.f32 %v6226_v54, %v2548_v31 }
 0x12b   :  { %v2936_v42 = vmax.f32 %v2680_v34, 0.0  ;;  %v3064_v43 = vmax.f32 %v2808_v35, 0.0  ;;  %v2681_v44 = vadd.f32 %v6226_v54, %v2418_v36  ;;  %v2809_v45 = vadd.f32 %v6226_v54, %v2546_v37  ;;  %v6759_v34 = vld [vmem:[%s7858_s2] ss:$0 sm:$0xff] }
 0x12c   :  { %v4995_v46 = vpack.c.bf16 %v2938_v38, %v2938_v38  ;;  %v5123_v47 = vpack.c.bf16 %v3066_v39, %v3066_v39  ;;  %v2939_v48 = vmax.f32 %v2683_v40, 0.0  ;;  %v3067_v49 = vmax.f32 %v2811_v41, 0.0 }
 0x12d   :  { %v4993_v50 = vpack.c.bf16 %v2936_v42, %v2936_v42  ;;  %v5121_v51 = vpack.c.bf16 %v3064_v43, %v3064_v43  ;;  %v2937_v53 = vmax.f32 %v2681_v44, 0.0  ;;  %v3065_v55 = vmax.f32 %v2809_v45, 0.0  ;;  %v5393_v31 = vpop.f32.mrb[40].mxu0  ;;  %v5521_v32 = vpop.f32.mrb[40].mxu1  ;;  %v6784_v45 = vld [vmem:[%s7859_s3] ss:$0 sm:$0xff] }
 0x12e   :  { %4219 = vst.msk [vmem:[%s7860_s4 + $0x88] sm:$0xf] %vm4184_vm3, %v4995_v46  ;;  %4347 = vst.msk [vmem:[%s7860_s4 + $0x288] sm:$0xf] %vm4184_vm3, %v5123_v47  ;;  %v4996_v58 = vpack.c.bf16 %v2939_v48, %v2939_v48  ;;  %v5124_v59 = vpack.c.bf16 %v3067_v49, %v3067_v49  ;;  %v2423_v60 = vmul.f32 %v5389_v56, %v6219_v52  ;;  %v1515_v37 = vpop.f32.mrb[41].mxu0  ;;  %v2027_v38 = vpop.f32.mrb[41].mxu1 }
 0x12f   :  { %v2551_v61 = vmul.f32 %v5517_v57, %v6219_v52  ;;  %4217 = vst.msk [vmem:[%s7860_s4 + $0x80] sm:$0xf] %vm4184_vm3, %v4993_v50  ;;  %4345 = vst.msk [vmem:[%s7860_s4 + $0x280] sm:$0xf] %vm4184_vm3, %v5121_v51  ;;  %v4994_v0 = vpack.c.bf16 %v2937_v53, %v2937_v53  ;;  %v5122_v1 = vpack.c.bf16 %v3065_v55, %v3065_v55  ;;  %v5394_v43 = vpop.f32.mrb[42].mxu0  ;;  %v5522_v44 = vpop.f32.mrb[42].mxu1 }
 0x130   :  { %v2421_v2 = vmul.f32 %v6219_v52, %v1499_v62  ;;  %v2549_v3 = vmul.f32 %v6219_v52, %v2011_v63  ;;  %4220 = vst.msk [vmem:[%s7860_s4 + $0x8c] sm:$0xf] %vm4184_vm3, %v4996_v58  ;;  %4348 = vst.msk [vmem:[%s7860_s4 + $0x28c] sm:$0xf] %vm4184_vm3, %v5124_v59  ;;  %v2686_v6 = vadd.f32 %v6226_v54, %v2423_v60  ;;  %v1518_v50 = vpop.f32.mrb[43].mxu0  ;;  %v2030_v51 = vpop.f32.mrb[43].mxu1 }
 0x131   :  { %v2814_v7 = vadd.f32 %v6226_v54, %v2551_v61  ;;  %v2424_v8 = vmul.f32 %v5390_v4, %v6219_v52  ;;  %v2552_v9 = vmul.f32 %v5518_v5, %v6219_v52  ;;  %4218 = vst.msk [vmem:[%s7860_s4 + $0x84] sm:$0xf] %vm4184_vm3, %v4994_v0  ;;  %4346 = vst.msk [vmem:[%s7860_s4 + $0x284] sm:$0xf] %vm4184_vm3, %v5122_v1 }
 0x132   :  { %v2684_v12 = vadd.f32 %v6226_v54, %v2421_v2  ;;  %v2812_v13 = vadd.f32 %v6226_v54, %v2549_v3  ;;  %v2422_v14 = vmul.f32 %v6219_v52, %v1502_v10  ;;  %v2550_v15 = vmul.f32 %v6219_v52, %v2014_v11 }
 0x133   :  { %v2942_v16 = vmax.f32 %v2686_v6, 0.0  ;;  %v3070_v17 = vmax.f32 %v2814_v7, 0.0  ;;  %v2687_v18 = vadd.f32 %v6226_v54, %v2424_v8  ;;  %v2815_v19 = vadd.f32 %v6226_v54, %v2552_v9 }
 0x134   :  { %v2940_v20 = vmax.f32 %v2684_v12, 0.0  ;;  %v3068_v21 = vmax.f32 %v2812_v13, 0.0  ;;  %v2685_v22 = vadd.f32 %v6226_v54, %v2422_v14  ;;  %v2813_v23 = vadd.f32 %v6226_v54, %v2550_v15 }
 0x135   :  { %v4999_v24 = vpack.c.bf16 %v2942_v16, %v2942_v16  ;;  %v5127_v25 = vpack.c.bf16 %v3070_v17, %v3070_v17  ;;  %v2943_v26 = vmax.f32 %v2687_v18, 0.0  ;;  %v3071_v27 = vmax.f32 %v2815_v19, 0.0  ;;  %v5397_v10 = vpop.f32.mrb[44].mxu0  ;;  %v5525_v11 = vpop.f32.mrb[44].mxu1 }
 0x136   :  { %v4997_v28 = vpack.c.bf16 %v2940_v20, %v2940_v20  ;;  %v5125_v29 = vpack.c.bf16 %v3068_v21, %v3068_v21  ;;  %v2941_v30 = vmax.f32 %v2685_v22, 0.0  ;;  %v3069_v52 = vmax.f32 %v2813_v23, 0.0  ;;  %v1531_v16 = vpop.f32.mrb[45].mxu0  ;;  %v2043_v17 = vpop.f32.mrb[45].mxu1 }
 0x137   :  { %4223 = vst.msk [vmem:[%s7860_s4 + $0x98] sm:$0xf] %vm4184_vm3, %v4999_v24  ;;  %4351 = vst.msk [vmem:[%s7860_s4 + $0x298] sm:$0xf] %vm4184_vm3, %v5127_v25  ;;  %v5000_v54 = vpack.c.bf16 %v2943_v26, %v2943_v26  ;;  %v5128_v33 = vpack.c.bf16 %v3071_v27, %v3071_v27  ;;  %v2427_v35 = vmul.f32 %v6759_v34, %v5393_v31  ;;  %v5398_v22 = vpop.f32.mrb[46].mxu0  ;;  %v5526_v23 = vpop.f32.mrb[46].mxu1 }
 0x138   :  { %v2555_v36 = vmul.f32 %v6759_v34, %v5521_v32  ;;  %4221 = vst.msk [vmem:[%s7860_s4 + $0x90] sm:$0xf] %vm4184_vm3, %v4997_v28  ;;  %4349 = vst.msk [vmem:[%s7860_s4 + $0x290] sm:$0xf] %vm4184_vm3, %v5125_v29  ;;  %v4998_v39 = vpack.c.bf16 %v2941_v30, %v2941_v30  ;;  %v5126_v40 = vpack.c.bf16 %v3069_v52, %v3069_v52  ;;  %v1534_v28 = vpop.f32.mrb[47].mxu0  ;;  %v2046_v29 = vpop.f32.mrb[47].mxu1 }
 0x139   :  { %v2425_v41 = vmul.f32 %v6759_v34, %v1515_v37  ;;  %v2553_v42 = vmul.f32 %v6759_v34, %v2027_v38  ;;  %4224 = vst.msk [vmem:[%s7860_s4 + $0x9c] sm:$0xf] %vm4184_vm3, %v5000_v54  ;;  %4352 = vst.msk [vmem:[%s7860_s4 + $0x29c] sm:$0xf] %vm4184_vm3, %v5128_v33  ;;  %v2690_v46 = vadd.f32 %v6784_v45, %v2427_v35 }
 0x13a   :  { %v2818_v47 = vadd.f32 %v6784_v45, %v2555_v36  ;;  %v2428_v48 = vmul.f32 %v6759_v34, %v5394_v43  ;;  %v2556_v49 = vmul.f32 %v6759_v34, %v5522_v44  ;;  %4222 = vst.msk [vmem:[%s7860_s4 + $0x94] sm:$0xf] %vm4184_vm3, %v4998_v39  ;;  %4350 = vst.msk [vmem:[%s7860_s4 + $0x294] sm:$0xf] %vm4184_vm3, %v5126_v40 }
 0x13b   :  { %v2688_v53 = vadd.f32 %v6784_v45, %v2425_v41  ;;  %v2816_v55 = vadd.f32 %v6784_v45, %v2553_v42  ;;  %v2426_v56 = vmul.f32 %v6759_v34, %v1518_v50  ;;  %v2554_v57 = vmul.f32 %v6759_v34, %v2030_v51 }
 0x13c   :  { %v2946_v58 = vmax.f32 %v2690_v46, 0.0  ;;  %v3074_v59 = vmax.f32 %v2818_v47, 0.0  ;;  %v2691_v60 = vadd.f32 %v6784_v45, %v2428_v48  ;;  %v2819_v61 = vadd.f32 %v6784_v45, %v2556_v49 }
 0x13d   :  { %v2944_v62 = vmax.f32 %v2688_v53, 0.0  ;;  %v3072_v63 = vmax.f32 %v2816_v55, 0.0  ;;  %v2689_v0 = vadd.f32 %v6784_v45, %v2426_v56  ;;  %v2817_v1 = vadd.f32 %v6784_v45, %v2554_v57  ;;  %v5401_v50 = vpop.f32.mrb[48].mxu0  ;;  %v5529_v51 = vpop.f32.mrb[48].mxu1 }
 0x13e   :  { %v5003_v2 = vpack.c.bf16 %v2946_v58, %v2946_v58  ;;  %v5131_v3 = vpack.c.bf16 %v3074_v59, %v3074_v59  ;;  %v2947_v4 = vmax.f32 %v2691_v60, 0.0  ;;  %v3075_v5 = vmax.f32 %v2819_v61, 0.0  ;;  %v1547_v58 = vpop.f32.mrb[49].mxu0  ;;  %v2059_v59 = vpop.f32.mrb[49].mxu1 }
 0x13f   :  { %v5001_v6 = vpack.c.bf16 %v2944_v62, %v2944_v62  ;;  %v5129_v7 = vpack.c.bf16 %v3072_v63, %v3072_v63  ;;  %v2945_v8 = vmax.f32 %v2689_v0, 0.0  ;;  %v3073_v9 = vmax.f32 %v2817_v1, 0.0  ;;  %v5402_v0 = vpop.f32.mrb[50].mxu0  ;;  %v5530_v1 = vpop.f32.mrb[50].mxu1 }
 0x140   :  { %4227 = vst.msk [vmem:[%s7860_s4 + $0xa8] sm:$0xf] %vm4184_vm3, %v5003_v2  ;;  %4355 = vst.msk [vmem:[%s7860_s4 + $0x2a8] sm:$0xf] %vm4184_vm3, %v5131_v3  ;;  %v5004_v12 = vpack.c.bf16 %v2947_v4, %v2947_v4  ;;  %v5132_v13 = vpack.c.bf16 %v3075_v5, %v3075_v5  ;;  %v2431_v14 = vmul.f32 %v6759_v34, %v5397_v10 }
 0x141   :  { %v2559_v15 = vmul.f32 %v6759_v34, %v5525_v11  ;;  %4225 = vst.msk [vmem:[%s7860_s4 + $0xa0] sm:$0xf] %vm4184_vm3, %v5001_v6  ;;  %4353 = vst.msk [vmem:[%s7860_s4 + $0x2a0] sm:$0xf] %vm4184_vm3, %v5129_v7  ;;  %v5002_v18 = vpack.c.bf16 %v2945_v8, %v2945_v8  ;;  %v5130_v19 = vpack.c.bf16 %v3073_v9, %v3073_v9  ;;  %v1550_v6 = vpop.f32.mrb[51].mxu0  ;;  %v2062_v7 = vpop.f32.mrb[51].mxu1 }
 0x142   :  { %v2429_v20 = vmul.f32 %v6759_v34, %v1531_v16  ;;  %v2557_v21 = vmul.f32 %v6759_v34, %v2043_v17  ;;  %4228 = vst.msk [vmem:[%s7860_s4 + $0xac] sm:$0xf] %vm4184_vm3, %v5004_v12  ;;  %4356 = vst.msk [vmem:[%s7860_s4 + $0x2ac] sm:$0xf] %vm4184_vm3, %v5132_v13  ;;  %v2694_v24 = vadd.f32 %v6784_v45, %v2431_v14 }
 0x143   :  { %v2822_v25 = vadd.f32 %v6784_v45, %v2559_v15  ;;  %v2432_v26 = vmul.f32 %v6759_v34, %v5398_v22  ;;  %v2560_v27 = vmul.f32 %v6759_v34, %v5526_v23  ;;  %4226 = vst.msk [vmem:[%s7860_s4 + $0xa4] sm:$0xf] %vm4184_vm3, %v5002_v18  ;;  %4354 = vst.msk [vmem:[%s7860_s4 + $0x2a4] sm:$0xf] %vm4184_vm3, %v5130_v19 }
 0x144   :  { %v2692_v30 = vadd.f32 %v6784_v45, %v2429_v20  ;;  %v2820_v52 = vadd.f32 %v6784_v45, %v2557_v21  ;;  %v2430_v31 = vmul.f32 %v6759_v34, %v1534_v28  ;;  %v2558_v32 = vmul.f32 %v6759_v34, %v2046_v29 }
 0x145   :  { %v2950_v54 = vmax.f32 %v2694_v24, 0.0  ;;  %v3078_v33 = vmax.f32 %v2822_v25, 0.0  ;;  %v2695_v35 = vadd.f32 %v6784_v45, %v2432_v26  ;;  %v2823_v36 = vadd.f32 %v6784_v45, %v2560_v27  ;;  %v5405_v28 = vpop.f32.mrb[52].mxu0  ;;  %v5533_v29 = vpop.f32.mrb[52].mxu1 }
 0x146   :  { %v2948_v37 = vmax.f32 %v2692_v30, 0.0  ;;  %v3076_v38 = vmax.f32 %v2820_v52, 0.0  ;;  %v2693_v39 = vadd.f32 %v6784_v45, %v2430_v31  ;;  %v2821_v40 = vadd.f32 %v6784_v45, %v2558_v32 }
 0x147   :  { %v5007_v41 = vpack.c.bf16 %v2950_v54, %v2950_v54  ;;  %v5135_v42 = vpack.c.bf16 %v3078_v33, %v3078_v33  ;;  %v2951_v43 = vmax.f32 %v2695_v35, 0.0  ;;  %v3079_v44 = vmax.f32 %v2823_v36, 0.0  ;;  %v1563_v54 = vpop.f32.mrb[53].mxu0  ;;  %v2075_v33 = vpop.f32.mrb[53].mxu1 }
 0x148   :  { %v5005_v46 = vpack.c.bf16 %v2948_v37, %v2948_v37  ;;  %v5133_v47 = vpack.c.bf16 %v3076_v38, %v3076_v38  ;;  %v2949_v48 = vmax.f32 %v2693_v39, 0.0  ;;  %v3077_v49 = vmax.f32 %v2821_v40, 0.0  ;;  %v5406_v39 = vpop.f32.mrb[54].mxu0  ;;  %v5534_v40 = vpop.f32.mrb[54].mxu1 }
 0x149   :  { %4231 = vst.msk [vmem:[%s7860_s4 + $0xb8] sm:$0xf] %vm4184_vm3, %v5007_v41  ;;  %4359 = vst.msk [vmem:[%s7860_s4 + $0x2b8] sm:$0xf] %vm4184_vm3, %v5135_v42  ;;  %v5008_v53 = vpack.c.bf16 %v2951_v43, %v2951_v43  ;;  %v5136_v55 = vpack.c.bf16 %v3079_v44, %v3079_v44  ;;  %v2435_v56 = vmul.f32 %v6759_v34, %v5401_v50 }
 0x14a   :  { %v2563_v57 = vmul.f32 %v6759_v34, %v5529_v51  ;;  %4229 = vst.msk [vmem:[%s7860_s4 + $0xb0] sm:$0xf] %vm4184_vm3, %v5005_v46  ;;  %4357 = vst.msk [vmem:[%s7860_s4 + $0x2b0] sm:$0xf] %vm4184_vm3, %v5133_v47  ;;  %v5006_v60 = vpack.c.bf16 %v2949_v48, %v2949_v48  ;;  %v5134_v61 = vpack.c.bf16 %v3077_v49, %v3077_v49  ;;  %v1566_v46 = vpop.f32.mrb[55].mxu0  ;;  %v2078_v47 = vpop.f32.mrb[55].mxu1 }
 0x14b   :  { %v2433_v62 = vmul.f32 %v6759_v34, %v1547_v58  ;;  %v2561_v63 = vmul.f32 %v6759_v34, %v2059_v59  ;;  %4232 = vst.msk [vmem:[%s7860_s4 + $0xbc] sm:$0xf] %vm4184_vm3, %v5008_v53  ;;  %4360 = vst.msk [vmem:[%s7860_s4 + $0x2bc] sm:$0xf] %vm4184_vm3, %v5136_v55  ;;  %v2698_v2 = vadd.f32 %v6784_v45, %v2435_v56 }
 0x14c   :  { %v2826_v3 = vadd.f32 %v6784_v45, %v2563_v57  ;;  %v2436_v4 = vmul.f32 %v6759_v34, %v5402_v0  ;;  %v2564_v5 = vmul.f32 %v6759_v34, %v5530_v1  ;;  %4230 = vst.msk [vmem:[%s7860_s4 + $0xb4] sm:$0xf] %vm4184_vm3, %v5006_v60  ;;  %4358 = vst.msk [vmem:[%s7860_s4 + $0x2b4] sm:$0xf] %vm4184_vm3, %v5134_v61 }
 0x14d   :  { %v2696_v8 = vadd.f32 %v6784_v45, %v2433_v62  ;;  %v2824_v9 = vadd.f32 %v6784_v45, %v2561_v63  ;;  %v2434_v10 = vmul.f32 %v6759_v34, %v1550_v6  ;;  %v2562_v11 = vmul.f32 %v6759_v34, %v2062_v7  ;;  %v5409_v6 = vpop.f32.mrb[56].mxu0  ;;  %v5537_v7 = vpop.f32.mrb[56].mxu1 }
 0x14e   :  { %v2954_v12 = vmax.f32 %v2698_v2, 0.0  ;;  %v3082_v13 = vmax.f32 %v2826_v3, 0.0  ;;  %v2699_v14 = vadd.f32 %v6784_v45, %v2436_v4  ;;  %v2827_v15 = vadd.f32 %v6784_v45, %v2564_v5 }
 0x14f   :  { %v2952_v16 = vmax.f32 %v2696_v8, 0.0  ;;  %v3080_v17 = vmax.f32 %v2824_v9, 0.0  ;;  %v2697_v18 = vadd.f32 %v6784_v45, %v2434_v10  ;;  %v2825_v19 = vadd.f32 %v6784_v45, %v2562_v11 }
 0x150   :  { %v5011_v20 = vpack.c.bf16 %v2954_v12, %v2954_v12  ;;  %v5139_v21 = vpack.c.bf16 %v3082_v13, %v3082_v13  ;;  %v2955_v22 = vmax.f32 %v2699_v14, 0.0  ;;  %v3083_v23 = vmax.f32 %v2827_v15, 0.0  ;;  %v1579_v12 = vpop.f32.mrb[57].mxu0  ;;  %v2091_v13 = vpop.f32.mrb[57].mxu1 }
 0x151   :  { %v5009_v24 = vpack.c.bf16 %v2952_v16, %v2952_v16  ;;  %v5137_v25 = vpack.c.bf16 %v3080_v17, %v3080_v17  ;;  %v2953_v26 = vmax.f32 %v2697_v18, 0.0  ;;  %v3081_v27 = vmax.f32 %v2825_v19, 0.0  ;;  %v5410_v18 = vpop.f32.mrb[58].mxu0  ;;  %v5538_v19 = vpop.f32.mrb[58].mxu1 }
 0x152   :  { %4235 = vst.msk [vmem:[%s7860_s4 + $0xc8] sm:$0xf] %vm4184_vm3, %v5011_v20  ;;  %4363 = vst.msk [vmem:[%s7860_s4 + $0x2c8] sm:$0xf] %vm4184_vm3, %v5139_v21  ;;  %v5012_v30 = vpack.c.bf16 %v2955_v22, %v2955_v22  ;;  %v5140_v52 = vpack.c.bf16 %v3083_v23, %v3083_v23  ;;  %v2439_v31 = vmul.f32 %v6759_v34, %v5405_v28 }
 0x153   :  { %v2567_v32 = vmul.f32 %v6759_v34, %v5533_v29  ;;  %4233 = vst.msk [vmem:[%s7860_s4 + $0xc0] sm:$0xf] %vm4184_vm3, %v5009_v24  ;;  %4361 = vst.msk [vmem:[%s7860_s4 + $0x2c0] sm:$0xf] %vm4184_vm3, %v5137_v25  ;;  %v5010_v35 = vpack.c.bf16 %v2953_v26, %v2953_v26  ;;  %v5138_v36 = vpack.c.bf16 %v3081_v27, %v3081_v27  ;;  %v1582_v24 = vpop.f32.mrb[59].mxu0  ;;  %v2094_v25 = vpop.f32.mrb[59].mxu1 }
 0x154   :  { %v2437_v37 = vmul.f32 %v6759_v34, %v1563_v54  ;;  %v2565_v38 = vmul.f32 %v6759_v34, %v2075_v33  ;;  %4236 = vst.msk [vmem:[%s7860_s4 + $0xcc] sm:$0xf] %vm4184_vm3, %v5012_v30  ;;  %4364 = vst.msk [vmem:[%s7860_s4 + $0x2cc] sm:$0xf] %vm4184_vm3, %v5140_v52  ;;  %v2702_v41 = vadd.f32 %v6784_v45, %v2439_v31 }
 0x155   :  { %v2830_v42 = vadd.f32 %v6784_v45, %v2567_v32  ;;  %v2440_v43 = vmul.f32 %v6759_v34, %v5406_v39  ;;  %v2568_v44 = vmul.f32 %v6759_v34, %v5534_v40  ;;  %4234 = vst.msk [vmem:[%s7860_s4 + $0xc4] sm:$0xf] %vm4184_vm3, %v5010_v35  ;;  %4362 = vst.msk [vmem:[%s7860_s4 + $0x2c4] sm:$0xf] %vm4184_vm3, %v5138_v36 }
 0x156   :  { %v2700_v48 = vadd.f32 %v6784_v45, %v2437_v37  ;;  %v2828_v49 = vadd.f32 %v6784_v45, %v2565_v38  ;;  %v2438_v50 = vmul.f32 %v6759_v34, %v1566_v46  ;;  %v2566_v51 = vmul.f32 %v6759_v34, %v2078_v47  ;;  %v5413_v46 = vpop.f32.mrb[60].mxu0  ;;  %v5541_v47 = vpop.f32.mrb[60].mxu1 }
 0x157   :  { %v2958_v53 = vmax.f32 %v2702_v41, 0.0  ;;  %v3086_v55 = vmax.f32 %v2830_v42, 0.0  ;;  %v2703_v56 = vadd.f32 %v6784_v45, %v2440_v43  ;;  %v2831_v57 = vadd.f32 %v6784_v45, %v2568_v44 }
 0x158   :  { %v2956_v58 = vmax.f32 %v2700_v48, 0.0  ;;  %v3084_v59 = vmax.f32 %v2828_v49, 0.0  ;;  %v2701_v60 = vadd.f32 %v6784_v45, %v2438_v50  ;;  %v2829_v61 = vadd.f32 %v6784_v45, %v2566_v51 }
 0x159   :  { %v5015_v62 = vpack.c.bf16 %v2958_v53, %v2958_v53  ;;  %v5143_v63 = vpack.c.bf16 %v3086_v55, %v3086_v55  ;;  %v2959_v0 = vmax.f32 %v2703_v56, 0.0  ;;  %v3087_v1 = vmax.f32 %v2831_v57, 0.0  ;;  %v1595_v53 = vpop.f32.mrb[61].mxu0  ;;  %v2107_v55 = vpop.f32.mrb[61].mxu1 }
 0x15a   :  { %v5013_v2 = vpack.c.bf16 %v2956_v58, %v2956_v58  ;;  %v5141_v3 = vpack.c.bf16 %v3084_v59, %v3084_v59  ;;  %v2957_v4 = vmax.f32 %v2701_v60, 0.0  ;;  %v3085_v5 = vmax.f32 %v2829_v61, 0.0  ;;  %v5414_v60 = vpop.f32.mrb[62].mxu0  ;;  %v5542_v61 = vpop.f32.mrb[62].mxu1 }
 0x15b   :  { %4239 = vst.msk [vmem:[%s7860_s4 + $0xd8] sm:$0xf] %vm4184_vm3, %v5015_v62  ;;  %4367 = vst.msk [vmem:[%s7860_s4 + $0x2d8] sm:$0xf] %vm4184_vm3, %v5143_v63  ;;  %v5016_v8 = vpack.c.bf16 %v2959_v0, %v2959_v0  ;;  %v5144_v9 = vpack.c.bf16 %v3087_v1, %v3087_v1  ;;  %v2443_v10 = vmul.f32 %v6759_v34, %v5409_v6 }
 0x15c   :  { %v2571_v11 = vmul.f32 %v6759_v34, %v5537_v7  ;;  %4237 = vst.msk [vmem:[%s7860_s4 + $0xd0] sm:$0xf] %vm4184_vm3, %v5013_v2  ;;  %4365 = vst.msk [vmem:[%s7860_s4 + $0x2d0] sm:$0xf] %vm4184_vm3, %v5141_v3  ;;  %v5014_v14 = vpack.c.bf16 %v2957_v4, %v2957_v4  ;;  %v5142_v15 = vpack.c.bf16 %v3085_v5, %v3085_v5  ;;  %v1598_v2 = vpop.f32.mrb[63].mxu0  ;;  %v2110_v3 = vpop.f32.mrb[63].mxu1 }
 0x15d   :  { %v2441_v16 = vmul.f32 %v6759_v34, %v1579_v12  ;;  %v2569_v17 = vmul.f32 %v6759_v34, %v2091_v13  ;;  %4240 = vst.msk [vmem:[%s7860_s4 + $0xdc] sm:$0xf] %vm4184_vm3, %v5016_v8  ;;  %4368 = vst.msk [vmem:[%s7860_s4 + $0x2dc] sm:$0xf] %vm4184_vm3, %v5144_v9  ;;  %v2706_v20 = vadd.f32 %v6784_v45, %v2443_v10 }
 0x15e   :  { %v2834_v21 = vadd.f32 %v6784_v45, %v2571_v11  ;;  %v2444_v22 = vmul.f32 %v6759_v34, %v5410_v18  ;;  %v2572_v23 = vmul.f32 %v6759_v34, %v5538_v19  ;;  %4238 = vst.msk [vmem:[%s7860_s4 + $0xd4] sm:$0xf] %vm4184_vm3, %v5014_v14  ;;  %4366 = vst.msk [vmem:[%s7860_s4 + $0x2d4] sm:$0xf] %vm4184_vm3, %v5142_v15 }
 0x15f   :  { %v2704_v26 = vadd.f32 %v6784_v45, %v2441_v16  ;;  %v2832_v27 = vadd.f32 %v6784_v45, %v2569_v17  ;;  %v2442_v28 = vmul.f32 %v6759_v34, %v1582_v24  ;;  %v2570_v29 = vmul.f32 %v6759_v34, %v2094_v25  ;;  %v5417_v24 = vpop.f32.mrb[64].mxu0  ;;  %v5545_v25 = vpop.f32.mrb[64].mxu1 }
 0x160   :  { %v2962_v30 = vmax.f32 %v2706_v20, 0.0  ;;  %v3090_v52 = vmax.f32 %v2834_v21, 0.0  ;;  %v2707_v31 = vadd.f32 %v6784_v45, %v2444_v22  ;;  %v2835_v32 = vadd.f32 %v6784_v45, %v2572_v23 }
 0x161   :  { %v2960_v54 = vmax.f32 %v2704_v26, 0.0  ;;  %v3088_v33 = vmax.f32 %v2832_v27, 0.0  ;;  %v2705_v35 = vadd.f32 %v6784_v45, %v2442_v28  ;;  %v2833_v36 = vadd.f32 %v6784_v45, %v2570_v29 }
 0x162   :  { %v5019_v37 = vpack.c.bf16 %v2962_v30, %v2962_v30  ;;  %v5147_v38 = vpack.c.bf16 %v3090_v52, %v3090_v52  ;;  %v2963_v39 = vmax.f32 %v2707_v31, 0.0  ;;  %v3091_v40 = vmax.f32 %v2835_v32, 0.0  ;;  %v1611_v30 = vpop.f32.mrb[65].mxu0  ;;  %v2123_v52 = vpop.f32.mrb[65].mxu1 }
 0x163   :  { %v5017_v41 = vpack.c.bf16 %v2960_v54, %v2960_v54  ;;  %v5145_v42 = vpack.c.bf16 %v3088_v33, %v3088_v33  ;;  %v2961_v43 = vmax.f32 %v2705_v35, 0.0  ;;  %v3089_v44 = vmax.f32 %v2833_v36, 0.0  ;;  %v5418_v35 = vpop.f32.mrb[66].mxu0  ;;  %v5546_v36 = vpop.f32.mrb[66].mxu1 }
 0x164   :  { %4243 = vst.msk [vmem:[%s7860_s4 + $0xe8] sm:$0xf] %vm4184_vm3, %v5019_v37  ;;  %4371 = vst.msk [vmem:[%s7860_s4 + $0x2e8] sm:$0xf] %vm4184_vm3, %v5147_v38  ;;  %v5020_v48 = vpack.c.bf16 %v2963_v39, %v2963_v39  ;;  %v5148_v49 = vpack.c.bf16 %v3091_v40, %v3091_v40  ;;  %v2447_v50 = vmul.f32 %v6759_v34, %v5413_v46 }
 0x165   :  { %v2575_v51 = vmul.f32 %v6759_v34, %v5541_v47  ;;  %4241 = vst.msk [vmem:[%s7860_s4 + $0xe0] sm:$0xf] %vm4184_vm3, %v5017_v41  ;;  %4369 = vst.msk [vmem:[%s7860_s4 + $0x2e0] sm:$0xf] %vm4184_vm3, %v5145_v42  ;;  %v5018_v56 = vpack.c.bf16 %v2961_v43, %v2961_v43  ;;  %v5146_v57 = vpack.c.bf16 %v3089_v44, %v3089_v44  ;;  %v1614_v41 = vpop.f32.mrb[67].mxu0  ;;  %v2126_v42 = vpop.f32.mrb[67].mxu1 }
 0x166   :  { %v2445_v58 = vmul.f32 %v6759_v34, %v1595_v53  ;;  %v2573_v59 = vmul.f32 %v6759_v34, %v2107_v55  ;;  %4244 = vst.msk [vmem:[%s7860_s4 + $0xec] sm:$0xf] %vm4184_vm3, %v5020_v48  ;;  %4372 = vst.msk [vmem:[%s7860_s4 + $0x2ec] sm:$0xf] %vm4184_vm3, %v5148_v49  ;;  %v2710_v62 = vadd.f32 %v6784_v45, %v2447_v50 }
 0x167   :  { %v2838_v63 = vadd.f32 %v6784_v45, %v2575_v51  ;;  %v2448_v0 = vmul.f32 %v6759_v34, %v5414_v60  ;;  %v2576_v1 = vmul.f32 %v6759_v34, %v5542_v61  ;;  %4242 = vst.msk [vmem:[%s7860_s4 + $0xe4] sm:$0xf] %vm4184_vm3, %v5018_v56  ;;  %4370 = vst.msk [vmem:[%s7860_s4 + $0x2e4] sm:$0xf] %vm4184_vm3, %v5146_v57 }
 0x168   :  { %v2708_v4 = vadd.f32 %v6784_v45, %v2445_v58  ;;  %v2836_v5 = vadd.f32 %v6784_v45, %v2573_v59  ;;  %v2446_v6 = vmul.f32 %v6759_v34, %v1598_v2  ;;  %v2574_v7 = vmul.f32 %v6759_v34, %v2110_v3  ;;  %v5421_v2 = vpop.f32.mrb[68].mxu0  ;;  %v5549_v3 = vpop.f32.mrb[68].mxu1 }
 0x169   :  { %v2966_v8 = vmax.f32 %v2710_v62, 0.0  ;;  %v3094_v9 = vmax.f32 %v2838_v63, 0.0  ;;  %v2711_v10 = vadd.f32 %v6784_v45, %v2448_v0  ;;  %v2839_v11 = vadd.f32 %v6784_v45, %v2576_v1 }
 0x16a   :  { %v2964_v12 = vmax.f32 %v2708_v4, 0.0  ;;  %v3092_v13 = vmax.f32 %v2836_v5, 0.0  ;;  %v2709_v14 = vadd.f32 %v6784_v45, %v2446_v6  ;;  %v2837_v15 = vadd.f32 %v6784_v45, %v2574_v7 }
 0x16b   :  { %v5023_v16 = vpack.c.bf16 %v2966_v8, %v2966_v8  ;;  %v5151_v17 = vpack.c.bf16 %v3094_v9, %v3094_v9  ;;  %v2967_v18 = vmax.f32 %v2711_v10, 0.0  ;;  %v3095_v19 = vmax.f32 %v2839_v11, 0.0  ;;  %v1627_v8 = vpop.f32.mrb[69].mxu0  ;;  %v2139_v9 = vpop.f32.mrb[69].mxu1 }
 0x16c   :  { %v5021_v20 = vpack.c.bf16 %v2964_v12, %v2964_v12  ;;  %v5149_v21 = vpack.c.bf16 %v3092_v13, %v3092_v13  ;;  %v2965_v22 = vmax.f32 %v2709_v14, 0.0  ;;  %v3093_v23 = vmax.f32 %v2837_v15, 0.0  ;;  %v5422_v14 = vpop.f32.mrb[70].mxu0  ;;  %v5550_v15 = vpop.f32.mrb[70].mxu1 }
 0x16d   :  { %4247 = vst.msk [vmem:[%s7860_s4 + $0xf8] sm:$0xf] %vm4184_vm3, %v5023_v16  ;;  %4375 = vst.msk [vmem:[%s7860_s4 + $0x2f8] sm:$0xf] %vm4184_vm3, %v5151_v17  ;;  %v5024_v26 = vpack.c.bf16 %v2967_v18, %v2967_v18  ;;  %v5152_v27 = vpack.c.bf16 %v3095_v19, %v3095_v19  ;;  %v2451_v28 = vmul.f32 %v6759_v34, %v5417_v24 }
 0x16e   :  { %v2579_v29 = vmul.f32 %v6759_v34, %v5545_v25  ;;  %4245 = vst.msk [vmem:[%s7860_s4 + $0xf0] sm:$0xf] %vm4184_vm3, %v5021_v20  ;;  %4373 = vst.msk [vmem:[%s7860_s4 + $0x2f0] sm:$0xf] %vm4184_vm3, %v5149_v21  ;;  %v5022_v31 = vpack.c.bf16 %v2965_v22, %v2965_v22  ;;  %v5150_v32 = vpack.c.bf16 %v3093_v23, %v3093_v23  ;;  %v1630_v20 = vpop.f32.mrb[71].mxu0  ;;  %v2142_v21 = vpop.f32.mrb[71].mxu1 }
 0x16f   :  { %v2449_v54 = vmul.f32 %v6759_v34, %v1611_v30  ;;  %v2577_v33 = vmul.f32 %v6759_v34, %v2123_v52  ;;  %4248 = vst.msk [vmem:[%s7860_s4 + $0xfc] sm:$0xf] %vm4184_vm3, %v5024_v26  ;;  %4376 = vst.msk [vmem:[%s7860_s4 + $0x2fc] sm:$0xf] %vm4184_vm3, %v5152_v27  ;;  %v2714_v37 = vadd.f32 %v6784_v45, %v2451_v28 }
 0x170   :  { %v2842_v38 = vadd.f32 %v6784_v45, %v2579_v29  ;;  %v2452_v39 = vmul.f32 %v6759_v34, %v5418_v35  ;;  %v2580_v40 = vmul.f32 %v6759_v34, %v5546_v36  ;;  %4246 = vst.msk [vmem:[%s7860_s4 + $0xf4] sm:$0xf] %vm4184_vm3, %v5022_v31  ;;  %4374 = vst.msk [vmem:[%s7860_s4 + $0x2f4] sm:$0xf] %vm4184_vm3, %v5150_v32 }
 0x171   :  { %v2712_v43 = vadd.f32 %v6784_v45, %v2449_v54  ;;  %v2840_v44 = vadd.f32 %v6784_v45, %v2577_v33  ;;  %v2450_v46 = vmul.f32 %v6759_v34, %v1614_v41  ;;  %v2578_v47 = vmul.f32 %v6759_v34, %v2126_v42  ;;  %v5425_v41 = vpop.f32.mrb[72].mxu0  ;;  %v5553_v42 = vpop.f32.mrb[72].mxu1 }
 0x172   :  { %v2970_v48 = vmax.f32 %v2714_v37, 0.0  ;;  %v3098_v49 = vmax.f32 %v2842_v38, 0.0  ;;  %v2715_v50 = vadd.f32 %v6784_v45, %v2452_v39  ;;  %v2843_v51 = vadd.f32 %v6784_v45, %v2580_v40 }
 0x173   :  { %v2968_v53 = vmax.f32 %v2712_v43, 0.0  ;;  %v3096_v55 = vmax.f32 %v2840_v44, 0.0  ;;  %v2713_v56 = vadd.f32 %v6784_v45, %v2450_v46  ;;  %v2841_v57 = vadd.f32 %v6784_v45, %v2578_v47 }
 0x174   :  { %v5027_v58 = vpack.c.bf16 %v2970_v48, %v2970_v48  ;;  %v5155_v59 = vpack.c.bf16 %v3098_v49, %v3098_v49  ;;  %v2971_v60 = vmax.f32 %v2715_v50, 0.0  ;;  %v3099_v61 = vmax.f32 %v2843_v51, 0.0  ;;  %v1643_v48 = vpop.f32.mrb[73].mxu0  ;;  %v2155_v49 = vpop.f32.mrb[73].mxu1 }
 0x175   :  { %v5025_v62 = vpack.c.bf16 %v2968_v53, %v2968_v53  ;;  %v5153_v63 = vpack.c.bf16 %v3096_v55, %v3096_v55  ;;  %v2969_v0 = vmax.f32 %v2713_v56, 0.0  ;;  %v3097_v1 = vmax.f32 %v2841_v57, 0.0  ;;  %v5426_v56 = vpop.f32.mrb[74].mxu0  ;;  %v5554_v57 = vpop.f32.mrb[74].mxu1 }
 0x176   :  { %4251 = vst.msk [vmem:[%s7860_s4 + $0x108] sm:$0xf] %vm4184_vm3, %v5027_v58  ;;  %4379 = vst.msk [vmem:[%s7860_s4 + $0x308] sm:$0xf] %vm4184_vm3, %v5155_v59  ;;  %v5028_v4 = vpack.c.bf16 %v2971_v60, %v2971_v60  ;;  %v5156_v5 = vpack.c.bf16 %v3099_v61, %v3099_v61  ;;  %v2455_v6 = vmul.f32 %v6759_v34, %v5421_v2 }
 0x177   :  { %v2583_v7 = vmul.f32 %v6759_v34, %v5549_v3  ;;  %4249 = vst.msk [vmem:[%s7860_s4 + $0x100] sm:$0xf] %vm4184_vm3, %v5025_v62  ;;  %4377 = vst.msk [vmem:[%s7860_s4 + $0x300] sm:$0xf] %vm4184_vm3, %v5153_v63  ;;  %v5026_v10 = vpack.c.bf16 %v2969_v0, %v2969_v0  ;;  %v5154_v11 = vpack.c.bf16 %v3097_v1, %v3097_v1  ;;  %v1646_v62 = vpop.f32.mrb[75].mxu0  ;;  %v2158_v63 = vpop.f32.mrb[75].mxu1 }
 0x178   :  { %v2453_v12 = vmul.f32 %v6759_v34, %v1627_v8  ;;  %v2581_v13 = vmul.f32 %v6759_v34, %v2139_v9  ;;  %4252 = vst.msk [vmem:[%s7860_s4 + $0x10c] sm:$0xf] %vm4184_vm3, %v5028_v4  ;;  %4380 = vst.msk [vmem:[%s7860_s4 + $0x30c] sm:$0xf] %vm4184_vm3, %v5156_v5  ;;  %v2718_v16 = vadd.f32 %v6784_v45, %v2455_v6 }
 0x179   :  { %v2846_v17 = vadd.f32 %v6784_v45, %v2583_v7  ;;  %v2456_v18 = vmul.f32 %v6759_v34, %v5422_v14  ;;  %v2584_v19 = vmul.f32 %v6759_v34, %v5550_v15  ;;  %4250 = vst.msk [vmem:[%s7860_s4 + $0x104] sm:$0xf] %vm4184_vm3, %v5026_v10  ;;  %4378 = vst.msk [vmem:[%s7860_s4 + $0x304] sm:$0xf] %vm4184_vm3, %v5154_v11 }
 0x17a   :  { %v2716_v22 = vadd.f32 %v6784_v45, %v2453_v12  ;;  %v2844_v23 = vadd.f32 %v6784_v45, %v2581_v13  ;;  %v2454_v24 = vmul.f32 %v6759_v34, %v1630_v20  ;;  %v2582_v25 = vmul.f32 %v6759_v34, %v2142_v21  ;;  %v5429_v20 = vpop.f32.mrb[76].mxu0  ;;  %v5557_v21 = vpop.f32.mrb[76].mxu1 }
 0x17b   :  { %v2974_v26 = vmax.f32 %v2718_v16, 0.0  ;;  %v3102_v27 = vmax.f32 %v2846_v17, 0.0  ;;  %v2719_v28 = vadd.f32 %v6784_v45, %v2456_v18  ;;  %v2847_v29 = vadd.f32 %v6784_v45, %v2584_v19 }
 0x17c   :  { %v2972_v30 = vmax.f32 %v2716_v22, 0.0  ;;  %v3100_v52 = vmax.f32 %v2844_v23, 0.0  ;;  %v2717_v31 = vadd.f32 %v6784_v45, %v2454_v24  ;;  %v2845_v32 = vadd.f32 %v6784_v45, %v2582_v25 }
 0x17d   :  { %v5031_v54 = vpack.c.bf16 %v2974_v26, %v2974_v26  ;;  %v5159_v33 = vpack.c.bf16 %v3102_v27, %v3102_v27  ;;  %v2975_v35 = vmax.f32 %v2719_v28, 0.0  ;;  %v3103_v36 = vmax.f32 %v2847_v29, 0.0  ;;  %v1659_v26 = vpop.f32.mrb[77].mxu0  ;;  %v2171_v27 = vpop.f32.mrb[77].mxu1 }
 0x17e   :  { %v5029_v37 = vpack.c.bf16 %v2972_v30, %v2972_v30  ;;  %v5157_v38 = vpack.c.bf16 %v3100_v52, %v3100_v52  ;;  %v2973_v39 = vmax.f32 %v2717_v31, 0.0  ;;  %v3101_v40 = vmax.f32 %v2845_v32, 0.0  ;;  %v5430_v31 = vpop.f32.mrb[78].mxu0  ;;  %v5558_v32 = vpop.f32.mrb[78].mxu1 }
 0x17f   :  { %4255 = vst.msk [vmem:[%s7860_s4 + $0x118] sm:$0xf] %vm4184_vm3, %v5031_v54  ;;  %4383 = vst.msk [vmem:[%s7860_s4 + $0x318] sm:$0xf] %vm4184_vm3, %v5159_v33  ;;  %v5032_v43 = vpack.c.bf16 %v2975_v35, %v2975_v35  ;;  %v5160_v44 = vpack.c.bf16 %v3103_v36, %v3103_v36  ;;  %v2459_v46 = vmul.f32 %v6759_v34, %v5425_v41 }
 0x180   :  { %v2587_v47 = vmul.f32 %v6759_v34, %v5553_v42  ;;  %4253 = vst.msk [vmem:[%s7860_s4 + $0x110] sm:$0xf] %vm4184_vm3, %v5029_v37  ;;  %4381 = vst.msk [vmem:[%s7860_s4 + $0x310] sm:$0xf] %vm4184_vm3, %v5157_v38  ;;  %v5030_v50 = vpack.c.bf16 %v2973_v39, %v2973_v39  ;;  %v5158_v51 = vpack.c.bf16 %v3101_v40, %v3101_v40  ;;  %v1662_v37 = vpop.f32.mrb[79].mxu0  ;;  %v2174_v38 = vpop.f32.mrb[79].mxu1 }
 0x181   :  { %v2457_v53 = vmul.f32 %v6759_v34, %v1643_v48  ;;  %v2585_v55 = vmul.f32 %v6759_v34, %v2155_v49  ;;  %4256 = vst.msk [vmem:[%s7860_s4 + $0x11c] sm:$0xf] %vm4184_vm3, %v5032_v43  ;;  %4384 = vst.msk [vmem:[%s7860_s4 + $0x31c] sm:$0xf] %vm4184_vm3, %v5160_v44  ;;  %v2722_v58 = vadd.f32 %v6784_v45, %v2459_v46 }
 0x182   :  { %v2850_v59 = vadd.f32 %v6784_v45, %v2587_v47  ;;  %v2460_v60 = vmul.f32 %v6759_v34, %v5426_v56  ;;  %v2588_v61 = vmul.f32 %v6759_v34, %v5554_v57  ;;  %4254 = vst.msk [vmem:[%s7860_s4 + $0x114] sm:$0xf] %vm4184_vm3, %v5030_v50  ;;  %4382 = vst.msk [vmem:[%s7860_s4 + $0x314] sm:$0xf] %vm4184_vm3, %v5158_v51 }
 0x183   :  { %v2720_v0 = vadd.f32 %v6784_v45, %v2457_v53  ;;  %v2848_v1 = vadd.f32 %v6784_v45, %v2585_v55  ;;  %v2458_v2 = vmul.f32 %v6759_v34, %v1646_v62  ;;  %v2586_v3 = vmul.f32 %v6759_v34, %v2158_v63  ;;  %v5433_v62 = vpop.f32.mrb[80].mxu0  ;;  %v5561_v63 = vpop.f32.mrb[80].mxu1 }
 0x184   :  { %v2978_v4 = vmax.f32 %v2722_v58, 0.0  ;;  %v3106_v5 = vmax.f32 %v2850_v59, 0.0  ;;  %v2723_v6 = vadd.f32 %v6784_v45, %v2460_v60  ;;  %v2851_v7 = vadd.f32 %v6784_v45, %v2588_v61 }
 0x185   :  { %v2976_v8 = vmax.f32 %v2720_v0, 0.0  ;;  %v3104_v9 = vmax.f32 %v2848_v1, 0.0  ;;  %v2721_v10 = vadd.f32 %v6784_v45, %v2458_v2  ;;  %v2849_v11 = vadd.f32 %v6784_v45, %v2586_v3 }
 0x186   :  { %v5035_v12 = vpack.c.bf16 %v2978_v4, %v2978_v4  ;;  %v5163_v13 = vpack.c.bf16 %v3106_v5, %v3106_v5  ;;  %v2979_v14 = vmax.f32 %v2723_v6, 0.0  ;;  %v3107_v15 = vmax.f32 %v2851_v7, 0.0  ;;  %v1675_v4 = vpop.f32.mrb[81].mxu0  ;;  %v2187_v5 = vpop.f32.mrb[81].mxu1 }
 0x187   :  { %v5033_v16 = vpack.c.bf16 %v2976_v8, %v2976_v8  ;;  %v5161_v17 = vpack.c.bf16 %v3104_v9, %v3104_v9  ;;  %v2977_v18 = vmax.f32 %v2721_v10, 0.0  ;;  %v3105_v19 = vmax.f32 %v2849_v11, 0.0  ;;  %v5434_v10 = vpop.f32.mrb[82].mxu0  ;;  %v5562_v11 = vpop.f32.mrb[82].mxu1 }
 0x188   :  { %4259 = vst.msk [vmem:[%s7860_s4 + $0x128] sm:$0xf] %vm4184_vm3, %v5035_v12  ;;  %4387 = vst.msk [vmem:[%s7860_s4 + $0x328] sm:$0xf] %vm4184_vm3, %v5163_v13  ;;  %v5036_v22 = vpack.c.bf16 %v2979_v14, %v2979_v14  ;;  %v5164_v23 = vpack.c.bf16 %v3107_v15, %v3107_v15  ;;  %v2463_v24 = vmul.f32 %v6759_v34, %v5429_v20 }
 0x189   :  { %v2591_v25 = vmul.f32 %v6759_v34, %v5557_v21  ;;  %4257 = vst.msk [vmem:[%s7860_s4 + $0x120] sm:$0xf] %vm4184_vm3, %v5033_v16  ;;  %4385 = vst.msk [vmem:[%s7860_s4 + $0x320] sm:$0xf] %vm4184_vm3, %v5161_v17  ;;  %v5034_v28 = vpack.c.bf16 %v2977_v18, %v2977_v18  ;;  %v5162_v29 = vpack.c.bf16 %v3105_v19, %v3105_v19  ;;  %v1678_v16 = vpop.f32.mrb[83].mxu0  ;;  %v2190_v17 = vpop.f32.mrb[83].mxu1 }
 0x18a   :  { %v2461_v30 = vmul.f32 %v6759_v34, %v1659_v26  ;;  %v2589_v52 = vmul.f32 %v6759_v34, %v2171_v27  ;;  %4260 = vst.msk [vmem:[%s7860_s4 + $0x12c] sm:$0xf] %vm4184_vm3, %v5036_v22  ;;  %4388 = vst.msk [vmem:[%s7860_s4 + $0x32c] sm:$0xf] %vm4184_vm3, %v5164_v23  ;;  %v2726_v54 = vadd.f32 %v6784_v45, %v2463_v24 }
 0x18b   :  { %v2854_v33 = vadd.f32 %v6784_v45, %v2591_v25  ;;  %v2464_v35 = vmul.f32 %v6759_v34, %v5430_v31  ;;  %v2592_v36 = vmul.f32 %v6759_v34, %v5558_v32  ;;  %4258 = vst.msk [vmem:[%s7860_s4 + $0x124] sm:$0xf] %vm4184_vm3, %v5034_v28  ;;  %4386 = vst.msk [vmem:[%s7860_s4 + $0x324] sm:$0xf] %vm4184_vm3, %v5162_v29 }
 0x18c   :  { %v2724_v39 = vadd.f32 %v6784_v45, %v2461_v30  ;;  %v2852_v40 = vadd.f32 %v6784_v45, %v2589_v52  ;;  %v2462_v41 = vmul.f32 %v6759_v34, %v1662_v37  ;;  %v2590_v42 = vmul.f32 %v6759_v34, %v2174_v38  ;;  %v5565_v37 = vpop.f32.mrb[84].mxu1 }
 0x18d   :  { %v2982_v43 = vmax.f32 %v2726_v54, 0.0  ;;  %v3110_v44 = vmax.f32 %v2854_v33, 0.0  ;;  %v2727_v46 = vadd.f32 %v6784_v45, %v2464_v35  ;;  %v2855_v47 = vadd.f32 %v6784_v45, %v2592_v36  ;;  %v5437_v36 = vpop.f32.mrb[84].mxu0 }
 0x18e   :  { %v2980_v48 = vmax.f32 %v2724_v39, 0.0  ;;  %v3108_v49 = vmax.f32 %v2852_v40, 0.0  ;;  %v2725_v50 = vadd.f32 %v6784_v45, %v2462_v41  ;;  %v2853_v51 = vadd.f32 %v6784_v45, %v2590_v42  ;;  %v7297_v39 = vld [vmem:[%s7858_s2] ss:$0 sm:$0xff]  ;;  %v1691_v42 = vpop.f32.mrb[85].mxu0 }
 0x18f   :  { %v5039_v53 = vpack.c.bf16 %v2982_v43, %v2982_v43  ;;  %v5167_v55 = vpack.c.bf16 %v3110_v44, %v3110_v44  ;;  %v2983_v56 = vmax.f32 %v2727_v46, 0.0  ;;  %v3111_v57 = vmax.f32 %v2855_v47, 0.0  ;;  %v2203_v43 = vpop.f32.mrb[85].mxu1 }
 0x190   :  { %v5037_v58 = vpack.c.bf16 %v2980_v48, %v2980_v48  ;;  %v5165_v59 = vpack.c.bf16 %v3108_v49, %v3108_v49  ;;  %v2981_v60 = vmax.f32 %v2725_v50, 0.0  ;;  %v3109_v61 = vmax.f32 %v2853_v51, 0.0  ;;  %v5438_v49 = vpop.f32.mrb[86].mxu0  ;;  %v5566_v50 = vpop.f32.mrb[86].mxu1  ;;  %v7322_v51 = vld [vmem:[%s7859_s3] ss:$0 sm:$0xff] }
 0x191   :  { %4263 = vst.msk [vmem:[%s7860_s4 + $0x138] sm:$0xf] %vm4184_vm3, %v5039_v53  ;;  %4391 = vst.msk [vmem:[%s7860_s4 + $0x338] sm:$0xf] %vm4184_vm3, %v5167_v55  ;;  %v5040_v0 = vpack.c.bf16 %v2983_v56, %v2983_v56  ;;  %v5168_v1 = vpack.c.bf16 %v3111_v57, %v3111_v57  ;;  %v2467_v2 = vmul.f32 %v6759_v34, %v5433_v62 }
 0x192   :  { %v2595_v3 = vmul.f32 %v6759_v34, %v5561_v63  ;;  %4261 = vst.msk [vmem:[%s7860_s4 + $0x130] sm:$0xf] %vm4184_vm3, %v5037_v58  ;;  %4389 = vst.msk [vmem:[%s7860_s4 + $0x330] sm:$0xf] %vm4184_vm3, %v5165_v59  ;;  %v5038_v6 = vpack.c.bf16 %v2981_v60, %v2981_v60  ;;  %v5166_v7 = vpack.c.bf16 %v3109_v61, %v3109_v61  ;;  %v1694_v58 = vpop.f32.mrb[87].mxu0  ;;  %v2206_v59 = vpop.f32.mrb[87].mxu1 }
 0x193   :  { %v2465_v8 = vmul.f32 %v6759_v34, %v1675_v4  ;;  %v2593_v9 = vmul.f32 %v6759_v34, %v2187_v5  ;;  %4264 = vst.msk [vmem:[%s7860_s4 + $0x13c] sm:$0xf] %vm4184_vm3, %v5040_v0  ;;  %4392 = vst.msk [vmem:[%s7860_s4 + $0x33c] sm:$0xf] %vm4184_vm3, %v5168_v1  ;;  %v2730_v12 = vadd.f32 %v6784_v45, %v2467_v2 }
 0x194   :  { %v2858_v13 = vadd.f32 %v6784_v45, %v2595_v3  ;;  %v2468_v14 = vmul.f32 %v6759_v34, %v5434_v10  ;;  %v2596_v15 = vmul.f32 %v6759_v34, %v5562_v11  ;;  %4262 = vst.msk [vmem:[%s7860_s4 + $0x134] sm:$0xf] %vm4184_vm3, %v5038_v6  ;;  %4390 = vst.msk [vmem:[%s7860_s4 + $0x334] sm:$0xf] %vm4184_vm3, %v5166_v7 }
 0x195   :  { %v2728_v18 = vadd.f32 %v6784_v45, %v2465_v8  ;;  %v2856_v19 = vadd.f32 %v6784_v45, %v2593_v9  ;;  %v2466_v20 = vmul.f32 %v6759_v34, %v1678_v16  ;;  %v2594_v21 = vmul.f32 %v6759_v34, %v2190_v17  ;;  %v5441_v16 = vpop.f32.mrb[88].mxu0  ;;  %v5569_v17 = vpop.f32.mrb[88].mxu1 }
 0x196   :  { %v2986_v22 = vmax.f32 %v2730_v12, 0.0  ;;  %v3114_v23 = vmax.f32 %v2858_v13, 0.0  ;;  %v2731_v24 = vadd.f32 %v6784_v45, %v2468_v14  ;;  %v2859_v25 = vadd.f32 %v6784_v45, %v2596_v15 }
 0x197   :  { %v2984_v26 = vmax.f32 %v2728_v18, 0.0  ;;  %v3112_v27 = vmax.f32 %v2856_v19, 0.0  ;;  %v2729_v28 = vadd.f32 %v6784_v45, %v2466_v20  ;;  %v2857_v29 = vadd.f32 %v6784_v45, %v2594_v21 }
 0x198   :  { %v5043_v30 = vpack.c.bf16 %v2986_v22, %v2986_v22  ;;  %v5171_v52 = vpack.c.bf16 %v3114_v23, %v3114_v23  ;;  %v2987_v31 = vmax.f32 %v2731_v24, 0.0  ;;  %v3115_v32 = vmax.f32 %v2859_v25, 0.0  ;;  %v1707_v22 = vpop.f32.mrb[89].mxu0  ;;  %v2219_v23 = vpop.f32.mrb[89].mxu1 }
 0x199   :  { %v5041_v54 = vpack.c.bf16 %v2984_v26, %v2984_v26  ;;  %v5169_v33 = vpack.c.bf16 %v3112_v27, %v3112_v27  ;;  %v2985_v35 = vmax.f32 %v2729_v28, 0.0  ;;  %v3113_v34 = vmax.f32 %v2857_v29, 0.0  ;;  %v5442_v28 = vpop.f32.mrb[90].mxu0  ;;  %v5570_v29 = vpop.f32.mrb[90].mxu1 }
 0x19a   :  { %4267 = vst.msk [vmem:[%s7860_s4 + $0x148] sm:$0xf] %vm4184_vm3, %v5043_v30  ;;  %4395 = vst.msk [vmem:[%s7860_s4 + $0x348] sm:$0xf] %vm4184_vm3, %v5171_v52  ;;  %v5044_v45 = vpack.c.bf16 %v2987_v31, %v2987_v31  ;;  %v5172_v38 = vpack.c.bf16 %v3115_v32, %v3115_v32  ;;  %v2471_v40 = vmul.f32 %v7297_v39, %v5437_v36 }
 0x19b   :  { %v2599_v41 = vmul.f32 %v7297_v39, %v5565_v37  ;;  %4265 = vst.msk [vmem:[%s7860_s4 + $0x140] sm:$0xf] %vm4184_vm3, %v5041_v54  ;;  %4393 = vst.msk [vmem:[%s7860_s4 + $0x340] sm:$0xf] %vm4184_vm3, %v5169_v33  ;;  %v5042_v44 = vpack.c.bf16 %v2985_v35, %v2985_v35  ;;  %v5170_v46 = vpack.c.bf16 %v3113_v34, %v3113_v34  ;;  %v1710_v54 = vpop.f32.mrb[91].mxu0  ;;  %v2222_v33 = vpop.f32.mrb[91].mxu1 }
 0x19c   :  { %v2469_v47 = vmul.f32 %v7297_v39, %v1691_v42  ;;  %v2597_v48 = vmul.f32 %v7297_v39, %v2203_v43  ;;  %4268 = vst.msk [vmem:[%s7860_s4 + $0x14c] sm:$0xf] %vm4184_vm3, %v5044_v45  ;;  %4396 = vst.msk [vmem:[%s7860_s4 + $0x34c] sm:$0xf] %vm4184_vm3, %v5172_v38  ;;  %v2734_v53 = vadd.f32 %v7322_v51, %v2471_v40 }
 0x19d   :  { %v2862_v55 = vadd.f32 %v7322_v51, %v2599_v41  ;;  %v2472_v56 = vmul.f32 %v7297_v39, %v5438_v49  ;;  %v2600_v57 = vmul.f32 %v7297_v39, %v5566_v50  ;;  %4266 = vst.msk [vmem:[%s7860_s4 + $0x144] sm:$0xf] %vm4184_vm3, %v5042_v44  ;;  %4394 = vst.msk [vmem:[%s7860_s4 + $0x344] sm:$0xf] %vm4184_vm3, %v5170_v46 }
 0x19e   :  { %v2732_v60 = vadd.f32 %v7322_v51, %v2469_v47  ;;  %v2860_v61 = vadd.f32 %v7322_v51, %v2597_v48  ;;  %v2470_v62 = vmul.f32 %v7297_v39, %v1694_v58  ;;  %v2598_v63 = vmul.f32 %v7297_v39, %v2206_v59  ;;  %v5445_v58 = vpop.f32.mrb[92].mxu0  ;;  %v5573_v59 = vpop.f32.mrb[92].mxu1 }
 0x19f   :  { %v2990_v0 = vmax.f32 %v2734_v53, 0.0  ;;  %v3118_v1 = vmax.f32 %v2862_v55, 0.0  ;;  %v2735_v2 = vadd.f32 %v7322_v51, %v2472_v56  ;;  %v2863_v3 = vadd.f32 %v7322_v51, %v2600_v57 }
 0x1a0   :  { %v2988_v4 = vmax.f32 %v2732_v60, 0.0  ;;  %v3116_v5 = vmax.f32 %v2860_v61, 0.0  ;;  %v2733_v6 = vadd.f32 %v7322_v51, %v2470_v62  ;;  %v2861_v7 = vadd.f32 %v7322_v51, %v2598_v63 }
 0x1a1   :  { %v5047_v8 = vpack.c.bf16 %v2990_v0, %v2990_v0  ;;  %v5175_v9 = vpack.c.bf16 %v3118_v1, %v3118_v1  ;;  %v2991_v10 = vmax.f32 %v2735_v2, 0.0  ;;  %v3119_v11 = vmax.f32 %v2863_v3, 0.0  ;;  %v1723_v0 = vpop.f32.mrb[93].mxu0  ;;  %v2235_v1 = vpop.f32.mrb[93].mxu1 }
 0x1a2   :  { %v5045_v12 = vpack.c.bf16 %v2988_v4, %v2988_v4  ;;  %v5173_v13 = vpack.c.bf16 %v3116_v5, %v3116_v5  ;;  %v2989_v14 = vmax.f32 %v2733_v6, 0.0  ;;  %v3117_v15 = vmax.f32 %v2861_v7, 0.0  ;;  %v5446_v6 = vpop.f32.mrb[94].mxu0  ;;  %v5574_v7 = vpop.f32.mrb[94].mxu1 }
 0x1a3   :  { %4271 = vst.msk [vmem:[%s7860_s4 + $0x158] sm:$0xf] %vm4184_vm3, %v5047_v8  ;;  %4399 = vst.msk [vmem:[%s7860_s4 + $0x358] sm:$0xf] %vm4184_vm3, %v5175_v9  ;;  %v5048_v18 = vpack.c.bf16 %v2991_v10, %v2991_v10  ;;  %v5176_v19 = vpack.c.bf16 %v3119_v11, %v3119_v11  ;;  %v2475_v20 = vmul.f32 %v7297_v39, %v5441_v16 }
 0x1a4   :  { %v2603_v21 = vmul.f32 %v7297_v39, %v5569_v17  ;;  %4269 = vst.msk [vmem:[%s7860_s4 + $0x150] sm:$0xf] %vm4184_vm3, %v5045_v12  ;;  %4397 = vst.msk [vmem:[%s7860_s4 + $0x350] sm:$0xf] %vm4184_vm3, %v5173_v13  ;;  %v5046_v24 = vpack.c.bf16 %v2989_v14, %v2989_v14  ;;  %v5174_v25 = vpack.c.bf16 %v3117_v15, %v3117_v15  ;;  %v1726_v12 = vpop.f32.mrb[95].mxu0  ;;  %v2238_v13 = vpop.f32.mrb[95].mxu1 }
 0x1a5   :  { %v2473_v26 = vmul.f32 %v7297_v39, %v1707_v22  ;;  %v2601_v27 = vmul.f32 %v7297_v39, %v2219_v23  ;;  %4272 = vst.msk [vmem:[%s7860_s4 + $0x15c] sm:$0xf] %vm4184_vm3, %v5048_v18  ;;  %4400 = vst.msk [vmem:[%s7860_s4 + $0x35c] sm:$0xf] %vm4184_vm3, %v5176_v19  ;;  %v2738_v30 = vadd.f32 %v7322_v51, %v2475_v20 }
 0x1a6   :  { %v2866_v52 = vadd.f32 %v7322_v51, %v2603_v21  ;;  %v2476_v31 = vmul.f32 %v7297_v39, %v5442_v28  ;;  %v2604_v32 = vmul.f32 %v7297_v39, %v5570_v29  ;;  %4270 = vst.msk [vmem:[%s7860_s4 + $0x154] sm:$0xf] %vm4184_vm3, %v5046_v24  ;;  %4398 = vst.msk [vmem:[%s7860_s4 + $0x354] sm:$0xf] %vm4184_vm3, %v5174_v25 }
 0x1a7   :  { %v2736_v35 = vadd.f32 %v7322_v51, %v2473_v26  ;;  %v2864_v34 = vadd.f32 %v7322_v51, %v2601_v27  ;;  %v2474_v36 = vmul.f32 %v7297_v39, %v1710_v54  ;;  %v2602_v37 = vmul.f32 %v7297_v39, %v2222_v33  ;;  %v5449_v54 = vpop.f32.mrb[96].mxu0  ;;  %v5577_v33 = vpop.f32.mrb[96].mxu1 }
 0x1a8   :  { %v2994_v45 = vmax.f32 %v2738_v30, 0.0  ;;  %v3122_v38 = vmax.f32 %v2866_v52, 0.0  ;;  %v2739_v40 = vadd.f32 %v7322_v51, %v2476_v31  ;;  %v2867_v41 = vadd.f32 %v7322_v51, %v2604_v32 }
 0x1a9   :  { %v2992_v42 = vmax.f32 %v2736_v35, 0.0  ;;  %v3120_v43 = vmax.f32 %v2864_v34, 0.0  ;;  %v2737_v44 = vadd.f32 %v7322_v51, %v2474_v36  ;;  %v2865_v46 = vadd.f32 %v7322_v51, %v2602_v37 }
 0x1aa   :  { %v5051_v47 = vpack.c.bf16 %v2994_v45, %v2994_v45  ;;  %v5179_v48 = vpack.c.bf16 %v3122_v38, %v3122_v38  ;;  %v2995_v49 = vmax.f32 %v2739_v40, 0.0  ;;  %v3123_v50 = vmax.f32 %v2867_v41, 0.0  ;;  %v1739_v45 = vpop.f32.mrb[97].mxu0  ;;  %v2251_v38 = vpop.f32.mrb[97].mxu1 }
 0x1ab   :  { %v5049_v53 = vpack.c.bf16 %v2992_v42, %v2992_v42  ;;  %v5177_v55 = vpack.c.bf16 %v3120_v43, %v3120_v43  ;;  %v2993_v56 = vmax.f32 %v2737_v44, 0.0  ;;  %v3121_v57 = vmax.f32 %v2865_v46, 0.0  ;;  %v5450_v44 = vpop.f32.mrb[98].mxu0  ;;  %v5578_v46 = vpop.f32.mrb[98].mxu1 }
 0x1ac   :  { %4275 = vst.msk [vmem:[%s7860_s4 + $0x168] sm:$0xf] %vm4184_vm3, %v5051_v47  ;;  %4403 = vst.msk [vmem:[%s7860_s4 + $0x368] sm:$0xf] %vm4184_vm3, %v5179_v48  ;;  %v5052_v60 = vpack.c.bf16 %v2995_v49, %v2995_v49  ;;  %v5180_v61 = vpack.c.bf16 %v3123_v50, %v3123_v50  ;;  %v2479_v62 = vmul.f32 %v7297_v39, %v5445_v58 }
 0x1ad   :  { %v2607_v63 = vmul.f32 %v7297_v39, %v5573_v59  ;;  %4273 = vst.msk [vmem:[%s7860_s4 + $0x160] sm:$0xf] %vm4184_vm3, %v5049_v53  ;;  %4401 = vst.msk [vmem:[%s7860_s4 + $0x360] sm:$0xf] %vm4184_vm3, %v5177_v55  ;;  %v5050_v2 = vpack.c.bf16 %v2993_v56, %v2993_v56  ;;  %v5178_v3 = vpack.c.bf16 %v3121_v57, %v3121_v57  ;;  %v1742_v53 = vpop.f32.mrb[99].mxu0  ;;  %v2254_v55 = vpop.f32.mrb[99].mxu1 }
 0x1ae   :  { %v2477_v4 = vmul.f32 %v7297_v39, %v1723_v0  ;;  %v2605_v5 = vmul.f32 %v7297_v39, %v2235_v1  ;;  %4276 = vst.msk [vmem:[%s7860_s4 + $0x16c] sm:$0xf] %vm4184_vm3, %v5052_v60  ;;  %4404 = vst.msk [vmem:[%s7860_s4 + $0x36c] sm:$0xf] %vm4184_vm3, %v5180_v61  ;;  %v2742_v8 = vadd.f32 %v7322_v51, %v2479_v62 }
 0x1af   :  { %v2870_v9 = vadd.f32 %v7322_v51, %v2607_v63  ;;  %v2480_v10 = vmul.f32 %v7297_v39, %v5446_v6  ;;  %v2608_v11 = vmul.f32 %v7297_v39, %v5574_v7  ;;  %4274 = vst.msk [vmem:[%s7860_s4 + $0x164] sm:$0xf] %vm4184_vm3, %v5050_v2  ;;  %4402 = vst.msk [vmem:[%s7860_s4 + $0x364] sm:$0xf] %vm4184_vm3, %v5178_v3 }
 0x1b0   :  { %v2740_v14 = vadd.f32 %v7322_v51, %v2477_v4  ;;  %v2868_v15 = vadd.f32 %v7322_v51, %v2605_v5  ;;  %v2478_v16 = vmul.f32 %v7297_v39, %v1726_v12  ;;  %v2606_v17 = vmul.f32 %v7297_v39, %v2238_v13  ;;  %v5453_v12 = vpop.f32.mrb[100].mxu0  ;;  %v5581_v13 = vpop.f32.mrb[100].mxu1 }
 0x1b1   :  { %v2998_v18 = vmax.f32 %v2742_v8, 0.0  ;;  %v3126_v19 = vmax.f32 %v2870_v9, 0.0  ;;  %v2743_v20 = vadd.f32 %v7322_v51, %v2480_v10  ;;  %v2871_v21 = vadd.f32 %v7322_v51, %v2608_v11 }
 0x1b2   :  { %v2996_v22 = vmax.f32 %v2740_v14, 0.0  ;;  %v3124_v23 = vmax.f32 %v2868_v15, 0.0  ;;  %v2741_v24 = vadd.f32 %v7322_v51, %v2478_v16  ;;  %v2869_v25 = vadd.f32 %v7322_v51, %v2606_v17 }
 0x1b3   :  { %v5055_v26 = vpack.c.bf16 %v2998_v18, %v2998_v18  ;;  %v5183_v27 = vpack.c.bf16 %v3126_v19, %v3126_v19  ;;  %v2999_v28 = vmax.f32 %v2743_v20, 0.0  ;;  %v3127_v29 = vmax.f32 %v2871_v21, 0.0  ;;  %v1755_v18 = vpop.f32.mrb[101].mxu0  ;;  %v2267_v19 = vpop.f32.mrb[101].mxu1 }
 0x1b4   :  { %v5053_v30 = vpack.c.bf16 %v2996_v22, %v2996_v22  ;;  %v5181_v52 = vpack.c.bf16 %v3124_v23, %v3124_v23  ;;  %v2997_v31 = vmax.f32 %v2741_v24, 0.0  ;;  %v3125_v32 = vmax.f32 %v2869_v25, 0.0  ;;  %v5454_v24 = vpop.f32.mrb[102].mxu0  ;;  %v5582_v25 = vpop.f32.mrb[102].mxu1 }
 0x1b5   :  { %4279 = vst.msk [vmem:[%s7860_s4 + $0x178] sm:$0xf] %vm4184_vm3, %v5055_v26  ;;  %4407 = vst.msk [vmem:[%s7860_s4 + $0x378] sm:$0xf] %vm4184_vm3, %v5183_v27  ;;  %v5056_v35 = vpack.c.bf16 %v2999_v28, %v2999_v28  ;;  %v5184_v34 = vpack.c.bf16 %v3127_v29, %v3127_v29  ;;  %v2483_v36 = vmul.f32 %v7297_v39, %v5449_v54 }
 0x1b6   :  { %v2611_v37 = vmul.f32 %v7297_v39, %v5577_v33  ;;  %4277 = vst.msk [vmem:[%s7860_s4 + $0x170] sm:$0xf] %vm4184_vm3, %v5053_v30  ;;  %4405 = vst.msk [vmem:[%s7860_s4 + $0x370] sm:$0xf] %vm4184_vm3, %v5181_v52  ;;  %v5054_v40 = vpack.c.bf16 %v2997_v31, %v2997_v31  ;;  %v5182_v41 = vpack.c.bf16 %v3125_v32, %v3125_v32  ;;  %v1758_v30 = vpop.f32.mrb[103].mxu0  ;;  %v2270_v52 = vpop.f32.mrb[103].mxu1 }
 0x1b7   :  { %v2481_v42 = vmul.f32 %v7297_v39, %v1739_v45  ;;  %v2609_v43 = vmul.f32 %v7297_v39, %v2251_v38  ;;  %4280 = vst.msk [vmem:[%s7860_s4 + $0x17c] sm:$0xf] %vm4184_vm3, %v5056_v35  ;;  %4408 = vst.msk [vmem:[%s7860_s4 + $0x37c] sm:$0xf] %vm4184_vm3, %v5184_v34  ;;  %v2746_v47 = vadd.f32 %v7322_v51, %v2483_v36 }
 0x1b8   :  { %v2874_v48 = vadd.f32 %v7322_v51, %v2611_v37  ;;  %v2484_v49 = vmul.f32 %v7297_v39, %v5450_v44  ;;  %v2612_v50 = vmul.f32 %v7297_v39, %v5578_v46  ;;  %4278 = vst.msk [vmem:[%s7860_s4 + $0x174] sm:$0xf] %vm4184_vm3, %v5054_v40  ;;  %4406 = vst.msk [vmem:[%s7860_s4 + $0x374] sm:$0xf] %vm4184_vm3, %v5182_v41 }
 0x1b9   :  { %v2744_v56 = vadd.f32 %v7322_v51, %v2481_v42  ;;  %v2872_v57 = vadd.f32 %v7322_v51, %v2609_v43  ;;  %v2482_v58 = vmul.f32 %v7297_v39, %v1742_v53  ;;  %v2610_v59 = vmul.f32 %v7297_v39, %v2254_v55  ;;  %v5457_v53 = vpop.f32.mrb[104].mxu0  ;;  %v5585_v55 = vpop.f32.mrb[104].mxu1 }
 0x1ba   :  { %v3002_v60 = vmax.f32 %v2746_v47, 0.0  ;;  %v3130_v61 = vmax.f32 %v2874_v48, 0.0  ;;  %v2747_v62 = vadd.f32 %v7322_v51, %v2484_v49  ;;  %v2875_v63 = vadd.f32 %v7322_v51, %v2612_v50 }
 0x1bb   :  { %v3000_v0 = vmax.f32 %v2744_v56, 0.0  ;;  %v3128_v1 = vmax.f32 %v2872_v57, 0.0  ;;  %v2745_v2 = vadd.f32 %v7322_v51, %v2482_v58  ;;  %v2873_v3 = vadd.f32 %v7322_v51, %v2610_v59 }
 0x1bc   :  { %v5059_v4 = vpack.c.bf16 %v3002_v60, %v3002_v60  ;;  %v5187_v5 = vpack.c.bf16 %v3130_v61, %v3130_v61  ;;  %v3003_v6 = vmax.f32 %v2747_v62, 0.0  ;;  %v3131_v7 = vmax.f32 %v2875_v63, 0.0  ;;  %v1771_v60 = vpop.f32.mrb[105].mxu0  ;;  %v2283_v61 = vpop.f32.mrb[105].mxu1 }
 0x1bd   :  { %v5057_v8 = vpack.c.bf16 %v3000_v0, %v3000_v0  ;;  %v5185_v9 = vpack.c.bf16 %v3128_v1, %v3128_v1  ;;  %v3001_v10 = vmax.f32 %v2745_v2, 0.0  ;;  %v3129_v11 = vmax.f32 %v2873_v3, 0.0  ;;  %v5458_v2 = vpop.f32.mrb[106].mxu0  ;;  %v5586_v3 = vpop.f32.mrb[106].mxu1 }
 0x1be   :  { %4283 = vst.msk [vmem:[%s7860_s4 + $0x188] sm:$0xf] %vm4184_vm3, %v5059_v4  ;;  %4411 = vst.msk [vmem:[%s7860_s4 + $0x388] sm:$0xf] %vm4184_vm3, %v5187_v5  ;;  %v5060_v14 = vpack.c.bf16 %v3003_v6, %v3003_v6  ;;  %v5188_v15 = vpack.c.bf16 %v3131_v7, %v3131_v7  ;;  %v2487_v16 = vmul.f32 %v7297_v39, %v5453_v12 }
 0x1bf   :  { %v2615_v17 = vmul.f32 %v7297_v39, %v5581_v13  ;;  %4281 = vst.msk [vmem:[%s7860_s4 + $0x180] sm:$0xf] %vm4184_vm3, %v5057_v8  ;;  %4409 = vst.msk [vmem:[%s7860_s4 + $0x380] sm:$0xf] %vm4184_vm3, %v5185_v9  ;;  %v5058_v20 = vpack.c.bf16 %v3001_v10, %v3001_v10  ;;  %v5186_v21 = vpack.c.bf16 %v3129_v11, %v3129_v11  ;;  %v1774_v8 = vpop.f32.mrb[107].mxu0  ;;  %v2286_v9 = vpop.f32.mrb[107].mxu1 }
 0x1c0   :  { %v2485_v22 = vmul.f32 %v7297_v39, %v1755_v18  ;;  %v2613_v23 = vmul.f32 %v7297_v39, %v2267_v19  ;;  %4284 = vst.msk [vmem:[%s7860_s4 + $0x18c] sm:$0xf] %vm4184_vm3, %v5060_v14  ;;  %4412 = vst.msk [vmem:[%s7860_s4 + $0x38c] sm:$0xf] %vm4184_vm3, %v5188_v15  ;;  %v2750_v26 = vadd.f32 %v7322_v51, %v2487_v16 }
 0x1c1   :  { %v2878_v27 = vadd.f32 %v7322_v51, %v2615_v17  ;;  %v2488_v28 = vmul.f32 %v7297_v39, %v5454_v24  ;;  %v2616_v29 = vmul.f32 %v7297_v39, %v5582_v25  ;;  %4282 = vst.msk [vmem:[%s7860_s4 + $0x184] sm:$0xf] %vm4184_vm3, %v5058_v20  ;;  %4410 = vst.msk [vmem:[%s7860_s4 + $0x384] sm:$0xf] %vm4184_vm3, %v5186_v21 }
 0x1c2   :  { %v2748_v31 = vadd.f32 %v7322_v51, %v2485_v22  ;;  %v2876_v32 = vadd.f32 %v7322_v51, %v2613_v23  ;;  %v2486_v54 = vmul.f32 %v7297_v39, %v1758_v30  ;;  %v2614_v33 = vmul.f32 %v7297_v39, %v2270_v52  ;;  %v5461_v30 = vpop.f32.mrb[108].mxu0  ;;  %v5589_v52 = vpop.f32.mrb[108].mxu1 }
 0x1c3   :  { %v3006_v35 = vmax.f32 %v2750_v26, 0.0  ;;  %v3134_v34 = vmax.f32 %v2878_v27, 0.0  ;;  %v2751_v36 = vadd.f32 %v7322_v51, %v2488_v28  ;;  %v2879_v37 = vadd.f32 %v7322_v51, %v2616_v29 }
 0x1c4   :  { %v3004_v45 = vmax.f32 %v2748_v31, 0.0  ;;  %v3132_v38 = vmax.f32 %v2876_v32, 0.0  ;;  %v2749_v40 = vadd.f32 %v7322_v51, %v2486_v54  ;;  %v2877_v41 = vadd.f32 %v7322_v51, %v2614_v33 }
 0x1c5   :  { %v5063_v42 = vpack.c.bf16 %v3006_v35, %v3006_v35  ;;  %v5191_v43 = vpack.c.bf16 %v3134_v34, %v3134_v34  ;;  %v3007_v44 = vmax.f32 %v2751_v36, 0.0  ;;  %v3135_v46 = vmax.f32 %v2879_v37, 0.0  ;;  %v1787_v35 = vpop.f32.mrb[109].mxu0  ;;  %v2299_v34 = vpop.f32.mrb[109].mxu1 }
 0x1c6   :  { %v5061_v47 = vpack.c.bf16 %v3004_v45, %v3004_v45  ;;  %v5189_v48 = vpack.c.bf16 %v3132_v38, %v3132_v38  ;;  %v3005_v49 = vmax.f32 %v2749_v40, 0.0  ;;  %v3133_v50 = vmax.f32 %v2877_v41, 0.0  ;;  %v5462_v40 = vpop.f32.mrb[110].mxu0  ;;  %v5590_v41 = vpop.f32.mrb[110].mxu1 }
 0x1c7   :  { %4287 = vst.msk [vmem:[%s7860_s4 + $0x198] sm:$0xf] %vm4184_vm3, %v5063_v42  ;;  %4415 = vst.msk [vmem:[%s7860_s4 + $0x398] sm:$0xf] %vm4184_vm3, %v5191_v43  ;;  %v5064_v56 = vpack.c.bf16 %v3007_v44, %v3007_v44  ;;  %v5192_v57 = vpack.c.bf16 %v3135_v46, %v3135_v46  ;;  %v2491_v58 = vmul.f32 %v7297_v39, %v5457_v53 }
 0x1c8   :  { %v2619_v59 = vmul.f32 %v7297_v39, %v5585_v55  ;;  %4285 = vst.msk [vmem:[%s7860_s4 + $0x190] sm:$0xf] %vm4184_vm3, %v5061_v47  ;;  %4413 = vst.msk [vmem:[%s7860_s4 + $0x390] sm:$0xf] %vm4184_vm3, %v5189_v48  ;;  %v5062_v62 = vpack.c.bf16 %v3005_v49, %v3005_v49  ;;  %v5190_v63 = vpack.c.bf16 %v3133_v50, %v3133_v50  ;;  %v1790_v47 = vpop.f32.mrb[111].mxu0  ;;  %v2302_v48 = vpop.f32.mrb[111].mxu1 }
 0x1c9   :  { %v2489_v0 = vmul.f32 %v7297_v39, %v1771_v60  ;;  %v2617_v1 = vmul.f32 %v7297_v39, %v2283_v61  ;;  %4288 = vst.msk [vmem:[%s7860_s4 + $0x19c] sm:$0xf] %vm4184_vm3, %v5064_v56  ;;  %4416 = vst.msk [vmem:[%s7860_s4 + $0x39c] sm:$0xf] %vm4184_vm3, %v5192_v57  ;;  %v2754_v4 = vadd.f32 %v7322_v51, %v2491_v58 }
 0x1ca   :  { %v2882_v5 = vadd.f32 %v7322_v51, %v2619_v59  ;;  %v2492_v6 = vmul.f32 %v7297_v39, %v5458_v2  ;;  %v2620_v7 = vmul.f32 %v7297_v39, %v5586_v3  ;;  %4286 = vst.msk [vmem:[%s7860_s4 + $0x194] sm:$0xf] %vm4184_vm3, %v5062_v62  ;;  %4414 = vst.msk [vmem:[%s7860_s4 + $0x394] sm:$0xf] %vm4184_vm3, %v5190_v63 }
 0x1cb   :  { %v2752_v10 = vadd.f32 %v7322_v51, %v2489_v0  ;;  %v2880_v11 = vadd.f32 %v7322_v51, %v2617_v1  ;;  %v2490_v12 = vmul.f32 %v7297_v39, %v1774_v8  ;;  %v2618_v13 = vmul.f32 %v7297_v39, %v2286_v9  ;;  %v5465_v8 = vpop.f32.mrb[112].mxu0  ;;  %v5593_v9 = vpop.f32.mrb[112].mxu1 }
 0x1cc   :  { %v3010_v14 = vmax.f32 %v2754_v4, 0.0  ;;  %v3138_v15 = vmax.f32 %v2882_v5, 0.0  ;;  %v2755_v16 = vadd.f32 %v7322_v51, %v2492_v6  ;;  %v2883_v17 = vadd.f32 %v7322_v51, %v2620_v7 }
 0x1cd   :  { %v3008_v18 = vmax.f32 %v2752_v10, 0.0  ;;  %v3136_v19 = vmax.f32 %v2880_v11, 0.0  ;;  %v2753_v20 = vadd.f32 %v7322_v51, %v2490_v12  ;;  %v2881_v21 = vadd.f32 %v7322_v51, %v2618_v13 }
 0x1ce   :  { %v5067_v22 = vpack.c.bf16 %v3010_v14, %v3010_v14  ;;  %v5195_v23 = vpack.c.bf16 %v3138_v15, %v3138_v15  ;;  %v3011_v24 = vmax.f32 %v2755_v16, 0.0  ;;  %v3139_v25 = vmax.f32 %v2883_v17, 0.0  ;;  %v1803_v14 = vpop.f32.mrb[113].mxu0  ;;  %v2315_v15 = vpop.f32.mrb[113].mxu1 }
 0x1cf   :  { %v5065_v26 = vpack.c.bf16 %v3008_v18, %v3008_v18  ;;  %v5193_v27 = vpack.c.bf16 %v3136_v19, %v3136_v19  ;;  %v3009_v28 = vmax.f32 %v2753_v20, 0.0  ;;  %v3137_v29 = vmax.f32 %v2881_v21, 0.0  ;;  %v5466_v20 = vpop.f32.mrb[114].mxu0  ;;  %v5594_v21 = vpop.f32.mrb[114].mxu1 }
 0x1d0   :  { %4291 = vst.msk [vmem:[%s7860_s4 + $0x1a8] sm:$0xf] %vm4184_vm3, %v5067_v22  ;;  %4419 = vst.msk [vmem:[%s7860_s4 + $0x3a8] sm:$0xf] %vm4184_vm3, %v5195_v23  ;;  %v5068_v31 = vpack.c.bf16 %v3011_v24, %v3011_v24  ;;  %v5196_v32 = vpack.c.bf16 %v3139_v25, %v3139_v25  ;;  %v2495_v54 = vmul.f32 %v7297_v39, %v5461_v30 }
 0x1d1   :  { %v2623_v33 = vmul.f32 %v7297_v39, %v5589_v52  ;;  %4289 = vst.msk [vmem:[%s7860_s4 + $0x1a0] sm:$0xf] %vm4184_vm3, %v5065_v26  ;;  %4417 = vst.msk [vmem:[%s7860_s4 + $0x3a0] sm:$0xf] %vm4184_vm3, %v5193_v27  ;;  %v5066_v36 = vpack.c.bf16 %v3009_v28, %v3009_v28  ;;  %v5194_v37 = vpack.c.bf16 %v3137_v29, %v3137_v29  ;;  %v1806_v26 = vpop.f32.mrb[115].mxu0  ;;  %v2318_v27 = vpop.f32.mrb[115].mxu1 }
 0x1d2   :  { %v2493_v45 = vmul.f32 %v7297_v39, %v1787_v35  ;;  %v2621_v38 = vmul.f32 %v7297_v39, %v2299_v34  ;;  %4292 = vst.msk [vmem:[%s7860_s4 + $0x1ac] sm:$0xf] %vm4184_vm3, %v5068_v31  ;;  %4420 = vst.msk [vmem:[%s7860_s4 + $0x3ac] sm:$0xf] %vm4184_vm3, %v5196_v32  ;;  %v2758_v42 = vadd.f32 %v7322_v51, %v2495_v54 }
 0x1d3   :  { %v2886_v43 = vadd.f32 %v7322_v51, %v2623_v33  ;;  %v2496_v44 = vmul.f32 %v7297_v39, %v5462_v40  ;;  %v2624_v46 = vmul.f32 %v7297_v39, %v5590_v41  ;;  %4290 = vst.msk [vmem:[%s7860_s4 + $0x1a4] sm:$0xf] %vm4184_vm3, %v5066_v36  ;;  %4418 = vst.msk [vmem:[%s7860_s4 + $0x3a4] sm:$0xf] %vm4184_vm3, %v5194_v37 }
 0x1d4   :  { %v2756_v49 = vadd.f32 %v7322_v51, %v2493_v45  ;;  %v2884_v50 = vadd.f32 %v7322_v51, %v2621_v38  ;;  %v2494_v53 = vmul.f32 %v7297_v39, %v1790_v47  ;;  %v2622_v55 = vmul.f32 %v7297_v39, %v2302_v48  ;;  %v5469_v47 = vpop.f32.mrb[116].mxu0  ;;  %v5597_v48 = vpop.f32.mrb[116].mxu1 }
 0x1d5   :  { %v3014_v56 = vmax.f32 %v2758_v42, 0.0  ;;  %v3142_v57 = vmax.f32 %v2886_v43, 0.0  ;;  %v2759_v58 = vadd.f32 %v7322_v51, %v2496_v44  ;;  %v2887_v59 = vadd.f32 %v7322_v51, %v2624_v46 }
 0x1d6   :  { %v3012_v60 = vmax.f32 %v2756_v49, 0.0  ;;  %v3140_v61 = vmax.f32 %v2884_v50, 0.0  ;;  %v2757_v62 = vadd.f32 %v7322_v51, %v2494_v53  ;;  %v2885_v63 = vadd.f32 %v7322_v51, %v2622_v55 }
 0x1d7   :  { %v5071_v0 = vpack.c.bf16 %v3014_v56, %v3014_v56  ;;  %v5199_v1 = vpack.c.bf16 %v3142_v57, %v3142_v57  ;;  %v3015_v2 = vmax.f32 %v2759_v58, 0.0  ;;  %v3143_v3 = vmax.f32 %v2887_v59, 0.0  ;;  %v1819_v56 = vpop.f32.mrb[117].mxu0  ;;  %v2331_v57 = vpop.f32.mrb[117].mxu1 }
 0x1d8   :  { %v5069_v4 = vpack.c.bf16 %v3012_v60, %v3012_v60  ;;  %v5197_v5 = vpack.c.bf16 %v3140_v61, %v3140_v61  ;;  %v3013_v6 = vmax.f32 %v2757_v62, 0.0  ;;  %v3141_v7 = vmax.f32 %v2885_v63, 0.0  ;;  %v5470_v62 = vpop.f32.mrb[118].mxu0  ;;  %v5598_v63 = vpop.f32.mrb[118].mxu1 }
 0x1d9   :  { %4295 = vst.msk [vmem:[%s7860_s4 + $0x1b8] sm:$0xf] %vm4184_vm3, %v5071_v0  ;;  %4423 = vst.msk [vmem:[%s7860_s4 + $0x3b8] sm:$0xf] %vm4184_vm3, %v5199_v1  ;;  %v5072_v10 = vpack.c.bf16 %v3015_v2, %v3015_v2  ;;  %v5200_v11 = vpack.c.bf16 %v3143_v3, %v3143_v3  ;;  %v2499_v12 = vmul.f32 %v7297_v39, %v5465_v8 }
 0x1da   :  { %v2627_v13 = vmul.f32 %v7297_v39, %v5593_v9  ;;  %4293 = vst.msk [vmem:[%s7860_s4 + $0x1b0] sm:$0xf] %vm4184_vm3, %v5069_v4  ;;  %4421 = vst.msk [vmem:[%s7860_s4 + $0x3b0] sm:$0xf] %vm4184_vm3, %v5197_v5  ;;  %v5070_v16 = vpack.c.bf16 %v3013_v6, %v3013_v6  ;;  %v5198_v17 = vpack.c.bf16 %v3141_v7, %v3141_v7  ;;  %v1822_v4 = vpop.f32.mrb[119].mxu0  ;;  %v2334_v5 = vpop.f32.mrb[119].mxu1 }
 0x1db   :  { %v2497_v18 = vmul.f32 %v7297_v39, %v1803_v14  ;;  %v2625_v19 = vmul.f32 %v7297_v39, %v2315_v15  ;;  %4296 = vst.msk [vmem:[%s7860_s4 + $0x1bc] sm:$0xf] %vm4184_vm3, %v5072_v10  ;;  %4424 = vst.msk [vmem:[%s7860_s4 + $0x3bc] sm:$0xf] %vm4184_vm3, %v5200_v11  ;;  %v2762_v22 = vadd.f32 %v7322_v51, %v2499_v12 }
 0x1dc   :  { %v2890_v23 = vadd.f32 %v7322_v51, %v2627_v13  ;;  %v2500_v24 = vmul.f32 %v7297_v39, %v5466_v20  ;;  %v2628_v25 = vmul.f32 %v7297_v39, %v5594_v21  ;;  %4294 = vst.msk [vmem:[%s7860_s4 + $0x1b4] sm:$0xf] %vm4184_vm3, %v5070_v16  ;;  %4422 = vst.msk [vmem:[%s7860_s4 + $0x3b4] sm:$0xf] %vm4184_vm3, %v5198_v17 }
 0x1dd   :  { %v2760_v28 = vadd.f32 %v7322_v51, %v2497_v18  ;;  %v2888_v29 = vadd.f32 %v7322_v51, %v2625_v19  ;;  %v2498_v30 = vmul.f32 %v7297_v39, %v1806_v26  ;;  %v2626_v52 = vmul.f32 %v7297_v39, %v2318_v27  ;;  %v5473_v26 = vpop.f32.mrb[120].mxu0  ;;  %v5601_v27 = vpop.f32.mrb[120].mxu1 }
 0x1de   :  { %v3018_v31 = vmax.f32 %v2762_v22, 0.0  ;;  %v3146_v32 = vmax.f32 %v2890_v23, 0.0  ;;  %v2763_v54 = vadd.f32 %v7322_v51, %v2500_v24  ;;  %v2891_v33 = vadd.f32 %v7322_v51, %v2628_v25 }
 0x1df   :  { %v3016_v35 = vmax.f32 %v2760_v28, 0.0  ;;  %v3144_v34 = vmax.f32 %v2888_v29, 0.0  ;;  %v2761_v36 = vadd.f32 %v7322_v51, %v2498_v30  ;;  %v2889_v37 = vadd.f32 %v7322_v51, %v2626_v52 }
 0x1e0   :  { %v5075_v45 = vpack.c.bf16 %v3018_v31, %v3018_v31  ;;  %v5203_v38 = vpack.c.bf16 %v3146_v32, %v3146_v32  ;;  %v3019_v40 = vmax.f32 %v2763_v54, 0.0  ;;  %v3147_v41 = vmax.f32 %v2891_v33, 0.0  ;;  %v1835_v31 = vpop.f32.mrb[121].mxu0  ;;  %v2347_v32 = vpop.f32.mrb[121].mxu1 }
 0x1e1   :  { %v5073_v42 = vpack.c.bf16 %v3016_v35, %v3016_v35  ;;  %v5201_v43 = vpack.c.bf16 %v3144_v34, %v3144_v34  ;;  %v3017_v44 = vmax.f32 %v2761_v36, 0.0  ;;  %v3145_v46 = vmax.f32 %v2889_v37, 0.0  ;;  %v5474_v36 = vpop.f32.mrb[122].mxu0  ;;  %v5602_v37 = vpop.f32.mrb[122].mxu1 }
 0x1e2   :  { %4299 = vst.msk [vmem:[%s7860_s4 + $0x1c8] sm:$0xf] %vm4184_vm3, %v5075_v45  ;;  %4427 = vst.msk [vmem:[%s7860_s4 + $0x3c8] sm:$0xf] %vm4184_vm3, %v5203_v38  ;;  %v5076_v49 = vpack.c.bf16 %v3019_v40, %v3019_v40  ;;  %v5204_v50 = vpack.c.bf16 %v3147_v41, %v3147_v41  ;;  %v2503_v53 = vmul.f32 %v7297_v39, %v5469_v47 }
 0x1e3   :  { %v2631_v55 = vmul.f32 %v7297_v39, %v5597_v48  ;;  %4297 = vst.msk [vmem:[%s7860_s4 + $0x1c0] sm:$0xf] %vm4184_vm3, %v5073_v42  ;;  %4425 = vst.msk [vmem:[%s7860_s4 + $0x3c0] sm:$0xf] %vm4184_vm3, %v5201_v43  ;;  %v5074_v58 = vpack.c.bf16 %v3017_v44, %v3017_v44  ;;  %v5202_v59 = vpack.c.bf16 %v3145_v46, %v3145_v46  ;;  %v1838_v42 = vpop.f32.mrb[123].mxu0  ;;  %v2350_v43 = vpop.f32.mrb[123].mxu1 }
 0x1e4   :  { %v2501_v60 = vmul.f32 %v7297_v39, %v1819_v56  ;;  %v2629_v61 = vmul.f32 %v7297_v39, %v2331_v57  ;;  %4300 = vst.msk [vmem:[%s7860_s4 + $0x1cc] sm:$0xf] %vm4184_vm3, %v5076_v49  ;;  %4428 = vst.msk [vmem:[%s7860_s4 + $0x3cc] sm:$0xf] %vm4184_vm3, %v5204_v50  ;;  %v2766_v0 = vadd.f32 %v7322_v51, %v2503_v53 }
 0x1e5   :  { %v2894_v1 = vadd.f32 %v7322_v51, %v2631_v55  ;;  %v2504_v2 = vmul.f32 %v7297_v39, %v5470_v62  ;;  %v2632_v3 = vmul.f32 %v7297_v39, %v5598_v63  ;;  %4298 = vst.msk [vmem:[%s7860_s4 + $0x1c4] sm:$0xf] %vm4184_vm3, %v5074_v58  ;;  %4426 = vst.msk [vmem:[%s7860_s4 + $0x3c4] sm:$0xf] %vm4184_vm3, %v5202_v59 }
 0x1e6   :  { %v2764_v6 = vadd.f32 %v7322_v51, %v2501_v60  ;;  %v2892_v7 = vadd.f32 %v7322_v51, %v2629_v61  ;;  %v2502_v8 = vmul.f32 %v7297_v39, %v1822_v4  ;;  %v2630_v9 = vmul.f32 %v7297_v39, %v2334_v5  ;;  %v5477_v4 = vpop.f32.mrb[124].mxu0  ;;  %v5605_v5 = vpop.f32.mrb[124].mxu1 }
 0x1e7   :  { %v3022_v10 = vmax.f32 %v2766_v0, 0.0  ;;  %v3150_v11 = vmax.f32 %v2894_v1, 0.0  ;;  %v2767_v12 = vadd.f32 %v7322_v51, %v2504_v2  ;;  %v2895_v13 = vadd.f32 %v7322_v51, %v2632_v3 }
 0x1e8   :  { %v3020_v14 = vmax.f32 %v2764_v6, 0.0  ;;  %v3148_v15 = vmax.f32 %v2892_v7, 0.0  ;;  %v2765_v16 = vadd.f32 %v7322_v51, %v2502_v8  ;;  %v2893_v17 = vadd.f32 %v7322_v51, %v2630_v9 }
 0x1e9   :  { %v5079_v18 = vpack.c.bf16 %v3022_v10, %v3022_v10  ;;  %v5207_v19 = vpack.c.bf16 %v3150_v11, %v3150_v11  ;;  %v3023_v20 = vmax.f32 %v2767_v12, 0.0  ;;  %v3151_v21 = vmax.f32 %v2895_v13, 0.0  ;;  %v1851_v10 = vpop.f32.mrb[125].mxu0  ;;  %v2363_v11 = vpop.f32.mrb[125].mxu1 }
 0x1ea   :  { %v5077_v22 = vpack.c.bf16 %v3020_v14, %v3020_v14  ;;  %v5205_v23 = vpack.c.bf16 %v3148_v15, %v3148_v15  ;;  %v3021_v24 = vmax.f32 %v2765_v16, 0.0  ;;  %v3149_v25 = vmax.f32 %v2893_v17, 0.0  ;;  %v5478_v16 = vpop.f32.mrb[126].mxu0  ;;  %v5606_v17 = vpop.f32.mrb[126].mxu1 }
 0x1eb   :  { %4303 = vst.msk [vmem:[%s7860_s4 + $0x1d8] sm:$0xf] %vm4184_vm3, %v5079_v18  ;;  %4431 = vst.msk [vmem:[%s7860_s4 + $0x3d8] sm:$0xf] %vm4184_vm3, %v5207_v19  ;;  %v5080_v28 = vpack.c.bf16 %v3023_v20, %v3023_v20  ;;  %v5208_v29 = vpack.c.bf16 %v3151_v21, %v3151_v21  ;;  %v2507_v30 = vmul.f32 %v7297_v39, %v5473_v26 }
 0x1ec   :  { %v2635_v52 = vmul.f32 %v7297_v39, %v5601_v27  ;;  %4301 = vst.msk [vmem:[%s7860_s4 + $0x1d0] sm:$0xf] %vm4184_vm3, %v5077_v22  ;;  %4429 = vst.msk [vmem:[%s7860_s4 + $0x3d0] sm:$0xf] %vm4184_vm3, %v5205_v23  ;;  %v5078_v54 = vpack.c.bf16 %v3021_v24, %v3021_v24  ;;  %v5206_v33 = vpack.c.bf16 %v3149_v25, %v3149_v25  ;;  %v1854_v22 = vpop.f32.mrb[127].mxu0  ;;  %v2366_v23 = vpop.f32.mrb[127].mxu1 }
 0x1ed   :  { %v2505_v35 = vmul.f32 %v7297_v39, %v1835_v31  ;;  %v2633_v34 = vmul.f32 %v7297_v39, %v2347_v32  ;;  %4304 = vst.msk [vmem:[%s7860_s4 + $0x1dc] sm:$0xf] %vm4184_vm3, %v5080_v28  ;;  %4432 = vst.msk [vmem:[%s7860_s4 + $0x3dc] sm:$0xf] %vm4184_vm3, %v5208_v29  ;;  %v2770_v45 = vadd.f32 %v7322_v51, %v2507_v30 }
 0x1ee   :  { %v2898_v38 = vadd.f32 %v7322_v51, %v2635_v52  ;;  %v2508_v40 = vmul.f32 %v7297_v39, %v5474_v36  ;;  %v2636_v41 = vmul.f32 %v7297_v39, %v5602_v37  ;;  %4302 = vst.msk [vmem:[%s7860_s4 + $0x1d4] sm:$0xf] %vm4184_vm3, %v5078_v54  ;;  %4430 = vst.msk [vmem:[%s7860_s4 + $0x3d4] sm:$0xf] %vm4184_vm3, %v5206_v33 }
 0x1ef   :  { %v2768_v44 = vadd.f32 %v7322_v51, %v2505_v35  ;;  %v2896_v46 = vadd.f32 %v7322_v51, %v2633_v34  ;;  %v2506_v47 = vmul.f32 %v7297_v39, %v1838_v42  ;;  %v2634_v48 = vmul.f32 %v7297_v39, %v2350_v43 }
 0x1f0   :  { %v3026_v49 = vmax.f32 %v2770_v45, 0.0  ;;  %v3154_v50 = vmax.f32 %v2898_v38, 0.0  ;;  %v2771_v53 = vadd.f32 %v7322_v51, %v2508_v40  ;;  %v2899_v55 = vadd.f32 %v7322_v51, %v2636_v41 }
 0x1f1   :  { %v3024_v56 = vmax.f32 %v2768_v44, 0.0  ;;  %v3152_v57 = vmax.f32 %v2896_v46, 0.0  ;;  %v2769_v58 = vadd.f32 %v7322_v51, %v2506_v47  ;;  %v2897_v59 = vadd.f32 %v7322_v51, %v2634_v48 }
 0x1f2   :  { %v5083_v60 = vpack.c.bf16 %v3026_v49, %v3026_v49  ;;  %v5211_v61 = vpack.c.bf16 %v3154_v50, %v3154_v50  ;;  %v3027_v62 = vmax.f32 %v2771_v53, 0.0  ;;  %v3155_v63 = vmax.f32 %v2899_v55, 0.0 }
 0x1f3   :  { %v5081_v0 = vpack.c.bf16 %v3024_v56, %v3024_v56  ;;  %v5209_v1 = vpack.c.bf16 %v3152_v57, %v3152_v57  ;;  %v3025_v2 = vmax.f32 %v2769_v58, 0.0  ;;  %v3153_v3 = vmax.f32 %v2897_v59, 0.0 }
 0x1f4   :  { %4307 = vst.msk [vmem:[%s7860_s4 + $0x1e8] sm:$0xf] %vm4184_vm3, %v5083_v60  ;;  %4435 = vst.msk [vmem:[%s7860_s4 + $0x3e8] sm:$0xf] %vm4184_vm3, %v5211_v61  ;;  %v5084_v6 = vpack.c.bf16 %v3027_v62, %v3027_v62  ;;  %v5212_v7 = vpack.c.bf16 %v3155_v63, %v3155_v63  ;;  %v2511_v8 = vmul.f32 %v7297_v39, %v5477_v4 }
 0x1f5   :  { %v2639_v9 = vmul.f32 %v7297_v39, %v5605_v5  ;;  %4305 = vst.msk [vmem:[%s7860_s4 + $0x1e0] sm:$0xf] %vm4184_vm3, %v5081_v0  ;;  %4433 = vst.msk [vmem:[%s7860_s4 + $0x3e0] sm:$0xf] %vm4184_vm3, %v5209_v1  ;;  %v5082_v12 = vpack.c.bf16 %v3025_v2, %v3025_v2  ;;  %v5210_v13 = vpack.c.bf16 %v3153_v3, %v3153_v3 }
 0x1f6   :  { %v2509_v14 = vmul.f32 %v7297_v39, %v1851_v10  ;;  %v2637_v15 = vmul.f32 %v7297_v39, %v2363_v11  ;;  %4308 = vst.msk [vmem:[%s7860_s4 + $0x1ec] sm:$0xf] %vm4184_vm3, %v5084_v6  ;;  %4436 = vst.msk [vmem:[%s7860_s4 + $0x3ec] sm:$0xf] %vm4184_vm3, %v5212_v7  ;;  %v2774_v18 = vadd.f32 %v7322_v51, %v2511_v8 }
 0x1f7   :  { %v2902_v19 = vadd.f32 %v7322_v51, %v2639_v9  ;;  %v2512_v20 = vmul.f32 %v7297_v39, %v5478_v16  ;;  %v2640_v21 = vmul.f32 %v7297_v39, %v5606_v17  ;;  %4306 = vst.msk [vmem:[%s7860_s4 + $0x1e4] sm:$0xf] %vm4184_vm3, %v5082_v12  ;;  %4434 = vst.msk [vmem:[%s7860_s4 + $0x3e4] sm:$0xf] %vm4184_vm3, %v5210_v13 }
 0x1f8   :  { %v2772_v24 = vadd.f32 %v7322_v51, %v2509_v14  ;;  %v2900_v25 = vadd.f32 %v7322_v51, %v2637_v15  ;;  %v2510_v26 = vmul.f32 %v7297_v39, %v1854_v22  ;;  %v2638_v27 = vmul.f32 %v7297_v39, %v2366_v23 }
 0x1f9   :  { %v3030_v28 = vmax.f32 %v2774_v18, 0.0  ;;  %v3158_v29 = vmax.f32 %v2902_v19, 0.0  ;;  %v2775_v30 = vadd.f32 %v7322_v51, %v2512_v20  ;;  %v2903_v52 = vadd.f32 %v7322_v51, %v2640_v21 }
 0x1fa   :  { %v3028_v31 = vmax.f32 %v2772_v24, 0.0  ;;  %v3156_v32 = vmax.f32 %v2900_v25, 0.0  ;;  %v2773_v54 = vadd.f32 %v7322_v51, %v2510_v26  ;;  %v2901_v33 = vadd.f32 %v7322_v51, %v2638_v27 }
 0x1fb   :  { %v5087_v35 = vpack.c.bf16 %v3030_v28, %v3030_v28  ;;  %v5215_v34 = vpack.c.bf16 %v3158_v29, %v3158_v29  ;;  %v3031_v36 = vmax.f32 %v2775_v30, 0.0  ;;  %v3159_v37 = vmax.f32 %v2903_v52, 0.0 }
 0x1fc   :  { %v5085_v45 = vpack.c.bf16 %v3028_v31, %v3028_v31  ;;  %v5213_v38 = vpack.c.bf16 %v3156_v32, %v3156_v32  ;;  %v3029_v40 = vmax.f32 %v2773_v54, 0.0  ;;  %v3157_v39 = vmax.f32 %v2901_v33, 0.0 }
 0x1fd   :  { %4311 = vst.msk [vmem:[%s7860_s4 + $0x1f8] sm:$0xf] %vm4184_vm3, %v5087_v35  ;;  %4439 = vst.msk [vmem:[%s7860_s4 + $0x3f8] sm:$0xf] %vm4184_vm3, %v5215_v34  ;;  %v5088_v41 = vpack.c.bf16 %v3031_v36, %v3031_v36  ;;  %v5216_v51 = vpack.c.bf16 %v3159_v37, %v3159_v37 }
 0x1fe   :  { %4309 = vst.msk [vmem:[%s7860_s4 + $0x1f0] sm:$0xf] %vm4184_vm3, %v5085_v45  ;;  %4437 = vst.msk [vmem:[%s7860_s4 + $0x3f0] sm:$0xf] %vm4184_vm3, %v5213_v38  ;;  %v5086_v42 = vpack.c.bf16 %v3029_v40, %v3029_v40  ;;  %v5214_v43 = vpack.c.bf16 %v3157_v39, %v3157_v39 }
 0x1ff   :  { %4312 = vst.msk [vmem:[%s7860_s4 + $0x1fc] sm:$0xf] %vm4184_vm3, %v5088_v41  ;;  %4440 = vst.msk [vmem:[%s7860_s4 + $0x3fc] sm:$0xf] %vm4184_vm3, %v5216_v51 }
 0x200   :  { %4310 = vst.msk [vmem:[%s7860_s4 + $0x1f4] sm:$0xf] %vm4184_vm3, %v5086_v42  ;;  %4438 = vst.msk [vmem:[%s7860_s4 + $0x3f4] sm:$0xf] %vm4184_vm3, %v5214_v43 }

</bundles_post_ra>
